<compile_context>
chip_gen: v6e
topology: v6e:2x2x1
jax: 0.10.0
libtpu: 0.0.40
codegen_flags: <defaults>
</compile_context>

<pallas_src>
import functools

import jax
import jax.numpy as jnp
from jax.experimental import pallas as pl
from jax.experimental.pallas import tpu as pltpu


def _round_up(x, m):
    return (x + m - 1) // m * m


# ------------------------- fused Pallas kernel -------------------------

def _fused_kernel(x_ref, wf_ref, bf_ref, wb_ref, bb_ref, o_ref,
                  pin_ref, pfe_ref, *, H, W, Cin, C, num_block, S):
    """conv_first + LeakyReLU(0.1) + num_block x ResidualBlockNoBN, fully on-chip.

    Layout: features are (channels, H*W) with the flattened spatial dim minor (lane-dense).
    pin_ref / pfe_ref are flat padded buffers of length L = S + W + 1 + H*W with the image
    interior at [S, S+H*W); S >= W+1 so every 3x3 tap is a non-negative lane-offset slice.
    """
    HW = H * W
    L = S + W + 1 + HW

    # Column masks in padded-buffer ("q") coordinates, built once per grid step.
    #   dx=0 taps must read 0 at output column x==0   -> zero where q % W == (S-1) % W
    #   dx=2 taps must read 0 at output column x==W-1 -> zero where q % W ==  S    % W
    qmod = jax.lax.broadcasted_iota(jnp.int32, (1, L), 1) % W
    mask_l = (qmod != (S - 1) % W).astype(jnp.bfloat16)
    mask_r = (qmod != S % W).astype(jnp.bfloat16)

    def zero_borders(pad_ref):
        c = pad_ref.shape[0]
        pad_ref[:, 0:S] = jnp.zeros((c, S), jnp.bfloat16)
        pad_ref[:, S + HW:L] = jnp.zeros((c, L - S - HW), jnp.bfloat16)

    # Border-only zeroing, once per grid step (interior is overwritten by every conv, so the
    # zero border stays valid for the whole chain).
    zero_borders(pin_ref)
    zero_borders(pfe_ref)

    def conv3x3(pad_ref, src_f32, w_taps, bias):
        """out (Cout, HW) f32 = bias + sum over 9 taps of w_tap @ shifted(src)."""
        # Write only the interior (bf16); the zero border persists across convs.
        pad_ref[:, S:S + HW] = src_f32.astype(jnp.bfloat16)
        pc = pad_ref[...]                      # center taps (dx == 1)
        p_l = pc * mask_l                      # left  taps (dx == 0), column-masked
        p_r = pc * mask_r                      # right taps (dx == 2), column-masked
        bufs = (p_l, pc, p_r)
        cout = w_taps[0].shape[0]
        acc = jnp.broadcast_to(bias, (cout, HW))        # hoisted bias init, f32
        for dy in range(3):
            for dx in range(3):
                k = dy * 3 + dx
                off = S - W - 1 + dy * W + dx           # static lane offset
                xs = bufs[dx][:, off:off + HW]          # (Cin, HW) bf16
                acc = acc + jnp.dot(w_taps[k], xs, preferred_element_type=jnp.float32)
        return acc

    # conv_first + LeakyReLU(0.1)
    feat = conv3x3(pin_ref, x_ref[0], [wf_ref[k] for k in range(9)], bf_ref[...])
    feat = jnp.maximum(feat, 0.1 * feat)

    # Residual blocks: feat stays on-chip for the whole chain.
    for b in range(num_block):
        t = conv3x3(pfe_ref, feat,
                    [wb_ref[b * 18 + k] for k in range(9)], bb_ref[2 * b])
        t = jnp.maximum(t, 0.0)                                       # ReLU
        u = conv3x3(pfe_ref, t,
                    [wb_ref[b * 18 + 9 + k] for k in range(9)], bb_ref[2 * b + 1])
        feat = feat + u                                               # residual add (f32)

    o_ref[0] = feat.astype(o_ref.dtype)


# ------------------------- host-side forward -------------------------

def conv_residual_blocks_forward(x_nchw, packed):
    """ConvResidualBlocks.forward. Input/output NCHW, like the PyTorch module."""
    N, Cin, H, W = x_nchw.shape
    HW = H * W
    C = packed["bf"].shape[0]
    num_block = packed["wb"].shape[0] // 18
    S = _round_up(W + 1, 128)          # lane-aligned interior start of the padded buffers
    L = S + W + 1 + HW

    x = x_nchw.reshape(N, Cin, HW)     # NCHW is already channel-major: reshape only, no transpose

    kernel = functools.partial(_fused_kernel, H=H, W=W, Cin=Cin, C=C,
                               num_block=num_block, S=S)

    flops = 2 * N * HW * (9 * Cin * C + num_block * 2 * 9 * C * C)
    cost = pl.CostEstimate(
        flops=flops,
        transcendentals=0,
        bytes_accessed=(x.size * 4 + packed["wf"].size * 2 + packed["wb"].size * 2
                        + packed["bf"].size * 4 + packed["bb"].size * 4 + N * HW * C * 4),
    )

    out = pl.pallas_call(
        kernel,
        grid=(N,),
        in_specs=[
            pl.BlockSpec((1, Cin, HW), lambda n: (n, 0, 0)),
            pl.BlockSpec((9, C, Cin), lambda n: (0, 0, 0)),
            pl.BlockSpec((C, 1), lambda n: (0, 0)),
            pl.BlockSpec((num_block * 18, C, C), lambda n: (0, 0, 0)),
            pl.BlockSpec((num_block * 2, C, 1), lambda n: (0, 0, 0)),
        ],
        out_specs=pl.BlockSpec((1, C, HW), lambda n: (n, 0, 0)),
        out_shape=jax.ShapeDtypeStruct((N, C, HW), jnp.float32),
        scratch_shapes=[
            pltpu.VMEM((Cin, L), jnp.bfloat16),   # padded input buffer (conv_first)
            pltpu.VMEM((C, L), jnp.bfloat16),     # padded feature buffer (all block convs)
        ],
        compiler_params=pltpu.CompilerParams(
            dimension_semantics=("parallel",),
            vmem_limit_bytes=32 * 1024 * 1024,
        ),
        cost_estimate=cost,
    )(x, packed["wf"], packed["bf"], packed["wb"], packed["bb"])

    return out.reshape(N, C, H, W)


# ------------------------- params (host-side packing) -------------------------

def init_params(key, num_in_ch, num_out_ch, num_block):
    """Deterministic synthetic weights in HWIO layout (f32 master copy)."""
    def conv_w(k, cin, cout):
        return 0.1 * jax.random.normal(k, (3, 3, cin, cout), jnp.float32)

    keys = jax.random.split(key, 2 + 4 * num_block)
    params = {
        "conv_first_w": conv_w(keys[0], num_in_ch, num_out_ch),
        "conv_first_b": 0.1 * jax.random.normal(keys[1], (num_out_ch,), jnp.float32),
        "blocks": [],
    }
    for i in range(num_block):
        k1, k2, k3, k4 = keys[2 + 4 * i: 6 + 4 * i]
        params["blocks"].append((
            conv_w(k1, num_out_ch, num_out_ch),
            0.1 * jax.random.normal(k2, (num_out_ch,), jnp.float32),
            conv_w(k3, num_out_ch, num_out_ch),
            0.1 * jax.random.normal(k4, (num_out_ch,), jnp.float32),
        ))
    return params


def pack_params(params):
    """Pre-pack HWIO (3,3,Cin,Cout) weights into per-tap transposed (9, Cout, Cin) bf16 blocks."""
    def pack_w(w):
        kh, kw, cin, cout = w.shape
        return jnp.transpose(w.reshape(kh * kw, cin, cout), (0, 2, 1)).astype(jnp.bfloat16)

    wb = jnp.concatenate(
        [jnp.concatenate([pack_w(w1), pack_w(w2)], axis=0)
         for (w1, b1, w2, b2) in params["blocks"]], axis=0)            # (num_block*18, C, C)
    bb = jnp.stack([b for blk in params["blocks"] for b in (blk[1], blk[3])],
                   axis=0)[..., None]                                   # (num_block*2, C, 1)
    return {
        "wf": pack_w(params["conv_first_w"]),                           # (9, Cout, Cin)
        "bf": params["conv_first_b"][:, None],                          # (Cout, 1)
        "wb": wb,
        "bb": bb,
    }


# ------------------------- plain-JAX reference -------------------------

def reference_forward(x_nchw, params, *, matmul_dtype=jnp.float32):
    """Reference via lax conv. matmul_dtype=bf16 mirrors the kernel's bf16 operands / f32 accum."""
    def conv(x, w, b):
        y = jax.lax.conv_general_dilated(
            x.astype(matmul_dtype), w.astype(matmul_dtype),
            window_strides=(1, 1), padding="SAME",
            dimension_numbers=("NHWC", "HWIO", "NHWC"),
            preferred_element_type=jnp.float32)
        return y + b

    x = jnp.transpose(x_nchw, (0, 2, 3, 1))
    feat = conv(x, params["conv_first_w"], params["conv_first_b"])
    feat = jnp.where(feat >= 0.0, feat, 0.1 * feat)
    for (w1, b1, w2, b2) in params["blocks"]:
        t = jnp.maximum(conv(feat, w1, b1), 0.0)
        feat = feat + conv(t, w2, b2)
    return jnp.transpose(feat, (0, 3, 1, 2))


# ------------------------- main -------------------------

if __name__ == "__main__":
    N, num_in_ch, H, W = 2, 4, 16, 16
    num_out_ch, num_block = 32, 2

    key = jax.random.PRNGKey(0)
    k_x, k_p = jax.random.split(key)
    x = jax.random.normal(k_x, (N, num_in_ch, H, W), jnp.float32)   # NCHW, like PyTorch
    params = init_params(k_p, num_in_ch, num_out_ch, num_block)
    packed = pack_params(params)

    out = jax.jit(conv_residual_blocks_forward)(x, packed)
    out = jax.block_until_ready(out)
    assert out.shape == (N, num_out_ch, H, W), out.shape

    # Tight check vs. a reference that uses the same bf16 operands / f32 accumulation.
    ref_bf16 = reference_forward(x, params, matmul_dtype=jnp.bfloat16)
    err_bf16 = float(jnp.max(jnp.abs(out - ref_bf16)))
    assert jnp.allclose(out, ref_bf16, atol=5e-3, rtol=5e-3), err_bf16

    # Looser check vs. the pure-f32 reference (drift comes only from bf16 matmul operands).
    ref_f32 = reference_forward(x, params)
    err_f32 = float(jnp.max(jnp.abs(out - ref_f32)))
    assert jnp.allclose(out, ref_f32, atol=5e-2, rtol=5e-2), err_f32

    print("KERNEL_OK")
</pallas_src>

<mosaic_0001>
module attributes {stable_mosaic.version = 11 : i64} {
  func.func @_fused_kernel(%arg0: i32, %arg1: memref<1x4x256xf32, #tpu.memory_space<vmem>>, %arg2: memref<9x32x4xbf16, #tpu.memory_space<vmem>>, %arg3: memref<32x1xf32, #tpu.memory_space<vmem>>, %arg4: memref<36x32x32xbf16, #tpu.memory_space<vmem>>, %arg5: memref<4x32x1xf32, #tpu.memory_space<vmem>>, %arg6: memref<1x32x256xf32, #tpu.memory_space<vmem>>, %arg7: memref<4x401xbf16, #tpu.memory_space<vmem>>, %arg8: memref<32x401xbf16, #tpu.memory_space<vmem>>) attributes {dimension_semantics = [#tpu.dimension_semantics<parallel>], iteration_bounds = array<i64: 2>, scalar_prefetch = 0 : i64, scratch_operands = 2 : i64, tpu.core_type = #tpu.core_type<tc>, window_params = [{transform_indices = @transform_0, window_bounds = array<i64: 1, 4, 256>}, {pipeline_mode = #tpu.pipeline_mode<synchronous>, transform_indices = @transform_1, window_bounds = array<i64: 9, 32, 4>}, {pipeline_mode = #tpu.pipeline_mode<synchronous>, transform_indices = @transform_2, window_bounds = array<i64: 32, 1>}, {pipeline_mode = #tpu.pipeline_mode<synchronous>, transform_indices = @transform_3, window_bounds = array<i64: 36, 32, 32>}, {pipeline_mode = #tpu.pipeline_mode<synchronous>, transform_indices = @transform_4, window_bounds = array<i64: 4, 32, 1>}, {transform_indices = @transform_5, window_bounds = array<i64: 1, 32, 256>}]} {
    %0 = tpu.iota {dimensions = array<i32: 1>} : vector<1x401xi32>
    %c16_i32 = arith.constant 16 : i32
    %c0_i32 = arith.constant 0 : i32
    %1 = arith.cmpi eq, %c16_i32, %c0_i32 : i32
    %c1_i32 = arith.constant 1 : i32
    %2 = arith.select %1, %c1_i32, %c16_i32 : i32
    %3 = vector.broadcast %2 : i32 to vector<1x401xi32>
    %4 = arith.remsi %0, %3 : vector<1x401xi32>
    %c0_i32_0 = arith.constant 0 : i32
    %5 = vector.broadcast %c0_i32_0 : i32 to vector<1x401xi32>
    %6 = arith.cmpi ne, %4, %5 : vector<1x401xi32>
    %c0_i32_1 = arith.constant 0 : i32
    %7 = vector.broadcast %c0_i32_1 : i32 to vector<1x401xi32>
    %8 = arith.cmpi slt, %4, %7 : vector<1x401xi32>
    %c0_i32_2 = arith.constant 0 : i32
    %9 = arith.cmpi slt, %2, %c0_i32_2 : i32
    %10 = vector.broadcast %9 : i1 to vector<1x401xi1>
    %11 = vector.broadcast %10 : vector<1x401xi1> to vector<1x401xi1>
    %12 = arith.xori %8, %11 : vector<1x401xi1>
    %13 = arith.andi %12, %6 : vector<1x401xi1>
    %14 = vector.broadcast %2 : i32 to vector<1x401xi32>
    %15 = arith.addi %4, %14 : vector<1x401xi32>
    %16 = arith.select %13, %15, %4 : vector<1x401xi1>, vector<1x401xi32>
    %c15_i32 = arith.constant 15 : i32
    %17 = vector.broadcast %c15_i32 : i32 to vector<1x401xi32>
    %18 = arith.cmpi ne, %16, %17 : vector<1x401xi32>
    %19 = arith.extui %18 : vector<1x401xi1> to vector<1x401xi32>
    %20 = arith.sitofp %19 : vector<1x401xi32> to vector<1x401xf32>
    %21 = arith.truncf %20 : vector<1x401xf32> to vector<1x401xbf16>
    %c0_i32_3 = arith.constant 0 : i32
    %22 = vector.broadcast %c0_i32_3 : i32 to vector<1x401xi32>
    %23 = arith.cmpi ne, %16, %22 : vector<1x401xi32>
    %24 = arith.extui %23 : vector<1x401xi1> to vector<1x401xi32>
    %25 = arith.sitofp %24 : vector<1x401xi32> to vector<1x401xf32>
    %26 = arith.truncf %25 : vector<1x401xf32> to vector<1x401xbf16>
    %cst = arith.constant 0.000000e+00 : bf16
    %27 = vector.broadcast %cst : bf16 to vector<4x128xbf16>
    %c0 = arith.constant 0 : index
    %c0_4 = arith.constant 0 : index
    %28 = vector.load %arg7[%c0, %c0_4] : memref<4x401xbf16, #tpu.memory_space<vmem>>, vector<4x128xbf16>
    tpu.vector_store %arg7[%c0, %c0_4], %27 {strides = array<i32>} : memref<4x401xbf16, #tpu.memory_space<vmem>>, vector<4x128xbf16>,
    %cst_5 = arith.constant 0.000000e+00 : bf16
    %29 = vector.broadcast %cst_5 : bf16 to vector<4x17xbf16>
    %c0_6 = arith.constant 0 : index
    %c384 = arith.constant 384 : index
    %30 = vector.load %arg7[%c0_6, %c384] : memref<4x401xbf16, #tpu.memory_space<vmem>>, vector<4x17xbf16>
    tpu.vector_store %arg7[%c0_6, %c384], %29 {strides = array<i32>} : memref<4x401xbf16, #tpu.memory_space<vmem>>, vector<4x17xbf16>,
    %cst_7 = arith.constant 0.000000e+00 : bf16
    %31 = vector.broadcast %cst_7 : bf16 to vector<32x128xbf16>
    %c0_8 = arith.constant 0 : index
    %c0_9 = arith.constant 0 : index
    %32 = vector.load %arg8[%c0_8, %c0_9] : memref<32x401xbf16, #tpu.memory_space<vmem>>, vector<32x128xbf16>
    tpu.vector_store %arg8[%c0_8, %c0_9], %31 {strides = array<i32>} : memref<32x401xbf16, #tpu.memory_space<vmem>>, vector<32x128xbf16>,
    %cst_10 = arith.constant 0.000000e+00 : bf16
    %33 = vector.broadcast %cst_10 : bf16 to vector<32x17xbf16>
    %c0_11 = arith.constant 0 : index
    %c384_12 = arith.constant 384 : index
    %34 = vector.load %arg8[%c0_11, %c384_12] : memref<32x401xbf16, #tpu.memory_space<vmem>>, vector<32x17xbf16>
    tpu.vector_store %arg8[%c0_11, %c384_12], %33 {strides = array<i32>} : memref<32x401xbf16, #tpu.memory_space<vmem>>, vector<32x17xbf16>,
    %c0_13 = arith.constant 0 : index
    %c0_14 = arith.constant 0 : index
    %c0_15 = arith.constant 0 : index
    %35 = vector.load %arg1[%c0_13, %c0_14, %c0_15] : memref<1x4x256xf32, #tpu.memory_space<vmem>>, vector<1x4x256xf32>
    %36 = vector.shape_cast %35 : vector<1x4x256xf32> to vector<4x256xf32>
    %c0_16 = arith.constant 0 : index
    %c0_17 = arith.constant 0 : index
    %c0_18 = arith.constant 0 : index
    %37 = vector.load %arg2[%c0_16, %c0_17, %c0_18] : memref<9x32x4xbf16, #tpu.memory_space<vmem>>, vector<1x32x4xbf16>
    %38 = vector.shape_cast %37 : vector<1x32x4xbf16> to vector<32x4xbf16>
    %c1 = arith.constant 1 : index
    %c0_19 = arith.constant 0 : index
    %c0_20 = arith.constant 0 : index
    %39 = vector.load %arg2[%c1, %c0_19, %c0_20] : memref<9x32x4xbf16, #tpu.memory_space<vmem>>, vector<1x32x4xbf16>
    %40 = vector.shape_cast %39 : vector<1x32x4xbf16> to vector<32x4xbf16>
    %c2 = arith.constant 2 : index
    %c0_21 = arith.constant 0 : index
    %c0_22 = arith.constant 0 : index
    %41 = vector.load %arg2[%c2, %c0_21, %c0_22] : memref<9x32x4xbf16, #tpu.memory_space<vmem>>, vector<1x32x4xbf16>
    %42 = vector.shape_cast %41 : vector<1x32x4xbf16> to vector<32x4xbf16>
    %c3 = arith.constant 3 : index
    %c0_23 = arith.constant 0 : index
    %c0_24 = arith.constant 0 : index
    %43 = vector.load %arg2[%c3, %c0_23, %c0_24] : memref<9x32x4xbf16, #tpu.memory_space<vmem>>, vector<1x32x4xbf16>
    %44 = vector.shape_cast %43 : vector<1x32x4xbf16> to vector<32x4xbf16>
    %c4 = arith.constant 4 : index
    %c0_25 = arith.constant 0 : index
    %c0_26 = arith.constant 0 : index
    %45 = vector.load %arg2[%c4, %c0_25, %c0_26] : memref<9x32x4xbf16, #tpu.memory_space<vmem>>, vector<1x32x4xbf16>
    %46 = vector.shape_cast %45 : vector<1x32x4xbf16> to vector<32x4xbf16>
    %c5 = arith.constant 5 : index
    %c0_27 = arith.constant 0 : index
    %c0_28 = arith.constant 0 : index
    %47 = vector.load %arg2[%c5, %c0_27, %c0_28] : memref<9x32x4xbf16, #tpu.memory_space<vmem>>, vector<1x32x4xbf16>
    %48 = vector.shape_cast %47 : vector<1x32x4xbf16> to vector<32x4xbf16>
    %c6 = arith.constant 6 : index
    %c0_29 = arith.constant 0 : index
    %c0_30 = arith.constant 0 : index
    %49 = vector.load %arg2[%c6, %c0_29, %c0_30] : memref<9x32x4xbf16, #tpu.memory_space<vmem>>, vector<1x32x4xbf16>
    %50 = vector.shape_cast %49 : vector<1x32x4xbf16> to vector<32x4xbf16>
    %c7 = arith.constant 7 : index
    %c0_31 = arith.constant 0 : index
    %c0_32 = arith.constant 0 : index
    %51 = vector.load %arg2[%c7, %c0_31, %c0_32] : memref<9x32x4xbf16, #tpu.memory_space<vmem>>, vector<1x32x4xbf16>
    %52 = vector.shape_cast %51 : vector<1x32x4xbf16> to vector<32x4xbf16>
    %c8 = arith.constant 8 : index
    %c0_33 = arith.constant 0 : index
    %c0_34 = arith.constant 0 : index
    %53 = vector.load %arg2[%c8, %c0_33, %c0_34] : memref<9x32x4xbf16, #tpu.memory_space<vmem>>, vector<1x32x4xbf16>
    %54 = vector.shape_cast %53 : vector<1x32x4xbf16> to vector<32x4xbf16>
    %c0_35 = arith.constant 0 : index
    %c0_36 = arith.constant 0 : index
    %55 = vector.load %arg3[%c0_35, %c0_36] : memref<32x1xf32, #tpu.memory_space<vmem>>, vector<32x1xf32>
    %56 = arith.truncf %36 : vector<4x256xf32> to vector<4x256xbf16>
    %c0_37 = arith.constant 0 : index
    %c128 = arith.constant 128 : index
    %57 = vector.load %arg7[%c0_37, %c128] : memref<4x401xbf16, #tpu.memory_space<vmem>>, vector<4x256xbf16>
    tpu.vector_store %arg7[%c0_37, %c128], %56 {strides = array<i32>} : memref<4x401xbf16, #tpu.memory_space<vmem>>, vector<4x256xbf16>,
    %c0_38 = arith.constant 0 : index
    %c0_39 = arith.constant 0 : index
    %58 = vector.load %arg7[%c0_38, %c0_39] : memref<4x401xbf16, #tpu.memory_space<vmem>>, vector<4x401xbf16>
    %59 = vector.broadcast %21 : vector<1x401xbf16> to vector<4x401xbf16>
    %60 = arith.mulf %58, %59 : vector<4x401xbf16>
    %61 = vector.broadcast %26 : vector<1x401xbf16> to vector<4x401xbf16>
    %62 = arith.mulf %58, %61 : vector<4x401xbf16>
    %63 = vector.shape_cast %55 : vector<32x1xf32> to vector<32x1xf32>
    %64 = vector.broadcast %63 : vector<32x1xf32> to vector<32x256xf32>
    %65 = vector.extract_strided_slice %60 {offsets = [0, 111], sizes = [4, 256], strides = [1, 1]} : vector<4x401xbf16> to vector<4x256xbf16>
    %cst_40 = arith.constant dense<0.000000e+00> : vector<32x256xf32>
    %66 = tpu.matmul %38, %65, %cst_40 {dimension_numbers = #tpu.dot_dimension_numbers<[1], [0], [0], [1], [0, 0, 1, 1], [], []>} : vector<32x4xbf16>, vector<4x256xbf16>, vector<32x256xf32> -> vector<32x256xf32>
    %67 = arith.addf %64, %66 : vector<32x256xf32>
    %68 = vector.extract_strided_slice %58 {offsets = [0, 112], sizes = [4, 256], strides = [1, 1]} : vector<4x401xbf16> to vector<4x256xbf16>
    %cst_41 = arith.constant dense<0.000000e+00> : vector<32x256xf32>
    %69 = tpu.matmul %40, %68, %cst_41 {dimension_numbers = #tpu.dot_dimension_numbers<[1], [0], [0], [1], [0, 0, 1, 1], [], []>} : vector<32x4xbf16>, vector<4x256xbf16>, vector<32x256xf32> -> vector<32x256xf32>
    %70 = arith.addf %67, %69 : vector<32x256xf32>
    %71 = vector.extract_strided_slice %62 {offsets = [0, 113], sizes = [4, 256], strides = [1, 1]} : vector<4x401xbf16> to vector<4x256xbf16>
    %cst_42 = arith.constant dense<0.000000e+00> : vector<32x256xf32>
    %72 = tpu.matmul %42, %71, %cst_42 {dimension_numbers = #tpu.dot_dimension_numbers<[1], [0], [0], [1], [0, 0, 1, 1], [], []>} : vector<32x4xbf16>, vector<4x256xbf16>, vector<32x256xf32> -> vector<32x256xf32>
    %73 = arith.addf %70, %72 : vector<32x256xf32>
    %74 = vector.extract_strided_slice %60 {offsets = [0, 127], sizes = [4, 256], strides = [1, 1]} : vector<4x401xbf16> to vector<4x256xbf16>
    %cst_43 = arith.constant dense<0.000000e+00> : vector<32x256xf32>
    %75 = tpu.matmul %44, %74, %cst_43 {dimension_numbers = #tpu.dot_dimension_numbers<[1], [0], [0], [1], [0, 0, 1, 1], [], []>} : vector<32x4xbf16>, vector<4x256xbf16>, vector<32x256xf32> -> vector<32x256xf32>
    %76 = arith.addf %73, %75 : vector<32x256xf32>
    %77 = vector.extract_strided_slice %58 {offsets = [0, 128], sizes = [4, 256], strides = [1, 1]} : vector<4x401xbf16> to vector<4x256xbf16>
    %cst_44 = arith.constant dense<0.000000e+00> : vector<32x256xf32>
    %78 = tpu.matmul %46, %77, %cst_44 {dimension_numbers = #tpu.dot_dimension_numbers<[1], [0], [0], [1], [0, 0, 1, 1], [], []>} : vector<32x4xbf16>, vector<4x256xbf16>, vector<32x256xf32> -> vector<32x256xf32>
    %79 = arith.addf %76, %78 : vector<32x256xf32>
    %80 = vector.extract_strided_slice %62 {offsets = [0, 129], sizes = [4, 256], strides = [1, 1]} : vector<4x401xbf16> to vector<4x256xbf16>
    %cst_45 = arith.constant dense<0.000000e+00> : vector<32x256xf32>
    %81 = tpu.matmul %48, %80, %cst_45 {dimension_numbers = #tpu.dot_dimension_numbers<[1], [0], [0], [1], [0, 0, 1, 1], [], []>} : vector<32x4xbf16>, vector<4x256xbf16>, vector<32x256xf32> -> vector<32x256xf32>
    %82 = arith.addf %79, %81 : vector<32x256xf32>
    %83 = vector.extract_strided_slice %60 {offsets = [0, 143], sizes = [4, 256], strides = [1, 1]} : vector<4x401xbf16> to vector<4x256xbf16>
    %cst_46 = arith.constant dense<0.000000e+00> : vector<32x256xf32>
    %84 = tpu.matmul %50, %83, %cst_46 {dimension_numbers = #tpu.dot_dimension_numbers<[1], [0], [0], [1], [0, 0, 1, 1], [], []>} : vector<32x4xbf16>, vector<4x256xbf16>, vector<32x256xf32> -> vector<32x256xf32>
    %85 = arith.addf %82, %84 : vector<32x256xf32>
    %86 = vector.extract_strided_slice %58 {offsets = [0, 144], sizes = [4, 256], strides = [1, 1]} : vector<4x401xbf16> to vector<4x256xbf16>
    %cst_47 = arith.constant dense<0.000000e+00> : vector<32x256xf32>
    %87 = tpu.matmul %52, %86, %cst_47 {dimension_numbers = #tpu.dot_dimension_numbers<[1], [0], [0], [1], [0, 0, 1, 1], [], []>} : vector<32x4xbf16>, vector<4x256xbf16>, vector<32x256xf32> -> vector<32x256xf32>
    %88 = arith.addf %85, %87 : vector<32x256xf32>
    %89 = vector.extract_strided_slice %62 {offsets = [0, 145], sizes = [4, 256], strides = [1, 1]} : vector<4x401xbf16> to vector<4x256xbf16>
    %cst_48 = arith.constant dense<0.000000e+00> : vector<32x256xf32>
    %90 = tpu.matmul %54, %89, %cst_48 {dimension_numbers = #tpu.dot_dimension_numbers<[1], [0], [0], [1], [0, 0, 1, 1], [], []>} : vector<32x4xbf16>, vector<4x256xbf16>, vector<32x256xf32> -> vector<32x256xf32>
    %91 = arith.addf %88, %90 : vector<32x256xf32>
    %cst_49 = arith.constant 1.000000e-01 : f32
    %92 = vector.broadcast %cst_49 : f32 to vector<32x256xf32>
    %93 = arith.mulf %92, %91 : vector<32x256xf32>
    %94 = arith.maximumf %91, %93 : vector<32x256xf32>
    %c0_50 = arith.constant 0 : index
    %c0_51 = arith.constant 0 : index
    %c0_52 = arith.constant 0 : index
    %95 = vector.load %arg4[%c0_50, %c0_51, %c0_52] : memref<36x32x32xbf16, #tpu.memory_space<vmem>>, vector<1x32x32xbf16>
    %96 = vector.shape_cast %95 : vector<1x32x32xbf16> to vector<32x32xbf16>
    %c1_53 = arith.constant 1 : index
    %c0_54 = arith.constant 0 : index
    %c0_55 = arith.constant 0 : index
    %97 = vector.load %arg4[%c1_53, %c0_54, %c0_55] : memref<36x32x32xbf16, #tpu.memory_space<vmem>>, vector<1x32x32xbf16>
    %98 = vector.shape_cast %97 : vector<1x32x32xbf16> to vector<32x32xbf16>
    %c2_56 = arith.constant 2 : index
    %c0_57 = arith.constant 0 : index
    %c0_58 = arith.constant 0 : index
    %99 = vector.load %arg4[%c2_56, %c0_57, %c0_58] : memref<36x32x32xbf16, #tpu.memory_space<vmem>>, vector<1x32x32xbf16>
    %100 = vector.shape_cast %99 : vector<1x32x32xbf16> to vector<32x32xbf16>
    %c3_59 = arith.constant 3 : index
    %c0_60 = arith.constant 0 : index
    %c0_61 = arith.constant 0 : index
    %101 = vector.load %arg4[%c3_59, %c0_60, %c0_61] : memref<36x32x32xbf16, #tpu.memory_space<vmem>>, vector<1x32x32xbf16>
    %102 = vector.shape_cast %101 : vector<1x32x32xbf16> to vector<32x32xbf16>
    %c4_62 = arith.constant 4 : index
    %c0_63 = arith.constant 0 : index
    %c0_64 = arith.constant 0 : index
    %103 = vector.load %arg4[%c4_62, %c0_63, %c0_64] : memref<36x32x32xbf16, #tpu.memory_space<vmem>>, vector<1x32x32xbf16>
    %104 = vector.shape_cast %103 : vector<1x32x32xbf16> to vector<32x32xbf16>
    %c5_65 = arith.constant 5 : index
    %c0_66 = arith.constant 0 : index
    %c0_67 = arith.constant 0 : index
    %105 = vector.load %arg4[%c5_65, %c0_66, %c0_67] : memref<36x32x32xbf16, #tpu.memory_space<vmem>>, vector<1x32x32xbf16>
    %106 = vector.shape_cast %105 : vector<1x32x32xbf16> to vector<32x32xbf16>
    %c6_68 = arith.constant 6 : index
    %c0_69 = arith.constant 0 : index
    %c0_70 = arith.constant 0 : index
    %107 = vector.load %arg4[%c6_68, %c0_69, %c0_70] : memref<36x32x32xbf16, #tpu.memory_space<vmem>>, vector<1x32x32xbf16>
    %108 = vector.shape_cast %107 : vector<1x32x32xbf16> to vector<32x32xbf16>
    %c7_71 = arith.constant 7 : index
    %c0_72 = arith.constant 0 : index
    %c0_73 = arith.constant 0 : index
    %109 = vector.load %arg4[%c7_71, %c0_72, %c0_73] : memref<36x32x32xbf16, #tpu.memory_space<vmem>>, vector<1x32x32xbf16>
    %110 = vector.shape_cast %109 : vector<1x32x32xbf16> to vector<32x32xbf16>
    %c8_74 = arith.constant 8 : index
    %c0_75 = arith.constant 0 : index
    %c0_76 = arith.constant 0 : index
    %111 = vector.load %arg4[%c8_74, %c0_75, %c0_76] : memref<36x32x32xbf16, #tpu.memory_space<vmem>>, vector<1x32x32xbf16>
    %112 = vector.shape_cast %111 : vector<1x32x32xbf16> to vector<32x32xbf16>
    %c0_77 = arith.constant 0 : index
    %c0_78 = arith.constant 0 : index
    %c0_79 = arith.constant 0 : index
    %113 = vector.load %arg5[%c0_77, %c0_78, %c0_79] : memref<4x32x1xf32, #tpu.memory_space<vmem>>, vector<1x32x1xf32>
    %114 = vector.shape_cast %113 : vector<1x32x1xf32> to vector<32x1xf32>
    %115 = arith.truncf %94 : vector<32x256xf32> to vector<32x256xbf16>
    %c0_80 = arith.constant 0 : index
    %c128_81 = arith.constant 128 : index
    %116 = vector.load %arg8[%c0_80, %c128_81] : memref<32x401xbf16, #tpu.memory_space<vmem>>, vector<32x256xbf16>
    tpu.vector_store %arg8[%c0_80, %c128_81], %115 {strides = array<i32>} : memref<32x401xbf16, #tpu.memory_space<vmem>>, vector<32x256xbf16>,
    %c0_82 = arith.constant 0 : index
    %c0_83 = arith.constant 0 : index
    %117 = vector.load %arg8[%c0_82, %c0_83] : memref<32x401xbf16, #tpu.memory_space<vmem>>, vector<32x401xbf16>
    %118 = vector.broadcast %21 : vector<1x401xbf16> to vector<32x401xbf16>
    %119 = arith.mulf %117, %118 : vector<32x401xbf16>
    %120 = vector.broadcast %26 : vector<1x401xbf16> to vector<32x401xbf16>
    %121 = arith.mulf %117, %120 : vector<32x401xbf16>
    %122 = vector.shape_cast %114 : vector<32x1xf32> to vector<32x1xf32>
    %123 = vector.broadcast %122 : vector<32x1xf32> to vector<32x256xf32>
    %124 = vector.extract_strided_slice %119 {offsets = [0, 111], sizes = [32, 256], strides = [1, 1]} : vector<32x401xbf16> to vector<32x256xbf16>
    %cst_84 = arith.constant dense<0.000000e+00> : vector<32x256xf32>
    %125 = tpu.matmul %96, %124, %cst_84 {dimension_numbers = #tpu.dot_dimension_numbers<[1], [0], [0], [1], [0, 0, 1, 1], [], []>} : vector<32x32xbf16>, vector<32x256xbf16>, vector<32x256xf32> -> vector<32x256xf32>
    %126 = arith.addf %123, %125 : vector<32x256xf32>
    %127 = vector.extract_strided_slice %117 {offsets = [0, 112], sizes = [32, 256], strides = [1, 1]} : vector<32x401xbf16> to vector<32x256xbf16>
    %cst_85 = arith.constant dense<0.000000e+00> : vector<32x256xf32>
    %128 = tpu.matmul %98, %127, %cst_85 {dimension_numbers = #tpu.dot_dimension_numbers<[1], [0], [0], [1], [0, 0, 1, 1], [], []>} : vector<32x32xbf16>, vector<32x256xbf16>, vector<32x256xf32> -> vector<32x256xf32>
    %129 = arith.addf %126, %128 : vector<32x256xf32>
    %130 = vector.extract_strided_slice %121 {offsets = [0, 113], sizes = [32, 256], strides = [1, 1]} : vector<32x401xbf16> to vector<32x256xbf16>
    %cst_86 = arith.constant dense<0.000000e+00> : vector<32x256xf32>
    %131 = tpu.matmul %100, %130, %cst_86 {dimension_numbers = #tpu.dot_dimension_numbers<[1], [0], [0], [1], [0, 0, 1, 1], [], []>} : vector<32x32xbf16>, vector<32x256xbf16>, vector<32x256xf32> -> vector<32x256xf32>
    %132 = arith.addf %129, %131 : vector<32x256xf32>
    %133 = vector.extract_strided_slice %119 {offsets = [0, 127], sizes = [32, 256], strides = [1, 1]} : vector<32x401xbf16> to vector<32x256xbf16>
    %cst_87 = arith.constant dense<0.000000e+00> : vector<32x256xf32>
    %134 = tpu.matmul %102, %133, %cst_87 {dimension_numbers = #tpu.dot_dimension_numbers<[1], [0], [0], [1], [0, 0, 1, 1], [], []>} : vector<32x32xbf16>, vector<32x256xbf16>, vector<32x256xf32> -> vector<32x256xf32>
    %135 = arith.addf %132, %134 : vector<32x256xf32>
    %136 = vector.extract_strided_slice %117 {offsets = [0, 128], sizes = [32, 256], strides = [1, 1]} : vector<32x401xbf16> to vector<32x256xbf16>
    %cst_88 = arith.constant dense<0.000000e+00> : vector<32x256xf32>
    %137 = tpu.matmul %104, %136, %cst_88 {dimension_numbers = #tpu.dot_dimension_numbers<[1], [0], [0], [1], [0, 0, 1, 1], [], []>} : vector<32x32xbf16>, vector<32x256xbf16>, vector<32x256xf32> -> vector<32x256xf32>
    %138 = arith.addf %135, %137 : vector<32x256xf32>
    %139 = vector.extract_strided_slice %121 {offsets = [0, 129], sizes = [32, 256], strides = [1, 1]} : vector<32x401xbf16> to vector<32x256xbf16>
    %cst_89 = arith.constant dense<0.000000e+00> : vector<32x256xf32>
    %140 = tpu.matmul %106, %139, %cst_89 {dimension_numbers = #tpu.dot_dimension_numbers<[1], [0], [0], [1], [0, 0, 1, 1], [], []>} : vector<32x32xbf16>, vector<32x256xbf16>, vector<32x256xf32> -> vector<32x256xf32>
    %141 = arith.addf %138, %140 : vector<32x256xf32>
    %142 = vector.extract_strided_slice %119 {offsets = [0, 143], sizes = [32, 256], strides = [1, 1]} : vector<32x401xbf16> to vector<32x256xbf16>
    %cst_90 = arith.constant dense<0.000000e+00> : vector<32x256xf32>
    %143 = tpu.matmul %108, %142, %cst_90 {dimension_numbers = #tpu.dot_dimension_numbers<[1], [0], [0], [1], [0, 0, 1, 1], [], []>} : vector<32x32xbf16>, vector<32x256xbf16>, vector<32x256xf32> -> vector<32x256xf32>
    %144 = arith.addf %141, %143 : vector<32x256xf32>
    %145 = vector.extract_strided_slice %117 {offsets = [0, 144], sizes = [32, 256], strides = [1, 1]} : vector<32x401xbf16> to vector<32x256xbf16>
    %cst_91 = arith.constant dense<0.000000e+00> : vector<32x256xf32>
    %146 = tpu.matmul %110, %145, %cst_91 {dimension_numbers = #tpu.dot_dimension_numbers<[1], [0], [0], [1], [0, 0, 1, 1], [], []>} : vector<32x32xbf16>, vector<32x256xbf16>, vector<32x256xf32> -> vector<32x256xf32>
    %147 = arith.addf %144, %146 : vector<32x256xf32>
    %148 = vector.extract_strided_slice %121 {offsets = [0, 145], sizes = [32, 256], strides = [1, 1]} : vector<32x401xbf16> to vector<32x256xbf16>
    %cst_92 = arith.constant dense<0.000000e+00> : vector<32x256xf32>
    %149 = tpu.matmul %112, %148, %cst_92 {dimension_numbers = #tpu.dot_dimension_numbers<[1], [0], [0], [1], [0, 0, 1, 1], [], []>} : vector<32x32xbf16>, vector<32x256xbf16>, vector<32x256xf32> -> vector<32x256xf32>
    %150 = arith.addf %147, %149 : vector<32x256xf32>
    %cst_93 = arith.constant 0.000000e+00 : f32
    %151 = vector.broadcast %cst_93 : f32 to vector<32x256xf32>
    %152 = arith.maximumf %150, %151 : vector<32x256xf32>
    %c9 = arith.constant 9 : index
    %c0_94 = arith.constant 0 : index
    %c0_95 = arith.constant 0 : index
    %153 = vector.load %arg4[%c9, %c0_94, %c0_95] : memref<36x32x32xbf16, #tpu.memory_space<vmem>>, vector<1x32x32xbf16>
    %154 = vector.shape_cast %153 : vector<1x32x32xbf16> to vector<32x32xbf16>
    %c10 = arith.constant 10 : index
    %c0_96 = arith.constant 0 : index
    %c0_97 = arith.constant 0 : index
    %155 = vector.load %arg4[%c10, %c0_96, %c0_97] : memref<36x32x32xbf16, #tpu.memory_space<vmem>>, vector<1x32x32xbf16>
    %156 = vector.shape_cast %155 : vector<1x32x32xbf16> to vector<32x32xbf16>
    %c11 = arith.constant 11 : index
    %c0_98 = arith.constant 0 : index
    %c0_99 = arith.constant 0 : index
    %157 = vector.load %arg4[%c11, %c0_98, %c0_99] : memref<36x32x32xbf16, #tpu.memory_space<vmem>>, vector<1x32x32xbf16>
    %158 = vector.shape_cast %157 : vector<1x32x32xbf16> to vector<32x32xbf16>
    %c12 = arith.constant 12 : index
    %c0_100 = arith.constant 0 : index
    %c0_101 = arith.constant 0 : index
    %159 = vector.load %arg4[%c12, %c0_100, %c0_101] : memref<36x32x32xbf16, #tpu.memory_space<vmem>>, vector<1x32x32xbf16>
    %160 = vector.shape_cast %159 : vector<1x32x32xbf16> to vector<32x32xbf16>
    %c13 = arith.constant 13 : index
    %c0_102 = arith.constant 0 : index
    %c0_103 = arith.constant 0 : index
    %161 = vector.load %arg4[%c13, %c0_102, %c0_103] : memref<36x32x32xbf16, #tpu.memory_space<vmem>>, vector<1x32x32xbf16>
    %162 = vector.shape_cast %161 : vector<1x32x32xbf16> to vector<32x32xbf16>
    %c14 = arith.constant 14 : index
    %c0_104 = arith.constant 0 : index
    %c0_105 = arith.constant 0 : index
    %163 = vector.load %arg4[%c14, %c0_104, %c0_105] : memref<36x32x32xbf16, #tpu.memory_space<vmem>>, vector<1x32x32xbf16>
    %164 = vector.shape_cast %163 : vector<1x32x32xbf16> to vector<32x32xbf16>
    %c15 = arith.constant 15 : index
    %c0_106 = arith.constant 0 : index
    %c0_107 = arith.constant 0 : index
    %165 = vector.load %arg4[%c15, %c0_106, %c0_107] : memref<36x32x32xbf16, #tpu.memory_space<vmem>>, vector<1x32x32xbf16>
    %166 = vector.shape_cast %165 : vector<1x32x32xbf16> to vector<32x32xbf16>
    %c16 = arith.constant 16 : index
    %c0_108 = arith.constant 0 : index
    %c0_109 = arith.constant 0 : index
    %167 = vector.load %arg4[%c16, %c0_108, %c0_109] : memref<36x32x32xbf16, #tpu.memory_space<vmem>>, vector<1x32x32xbf16>
    %168 = vector.shape_cast %167 : vector<1x32x32xbf16> to vector<32x32xbf16>
    %c17 = arith.constant 17 : index
    %c0_110 = arith.constant 0 : index
    %c0_111 = arith.constant 0 : index
    %169 = vector.load %arg4[%c17, %c0_110, %c0_111] : memref<36x32x32xbf16, #tpu.memory_space<vmem>>, vector<1x32x32xbf16>
    %170 = vector.shape_cast %169 : vector<1x32x32xbf16> to vector<32x32xbf16>
    %c1_112 = arith.constant 1 : index
    %c0_113 = arith.constant 0 : index
    %c0_114 = arith.constant 0 : index
    %171 = vector.load %arg5[%c1_112, %c0_113, %c0_114] : memref<4x32x1xf32, #tpu.memory_space<vmem>>, vector<1x32x1xf32>
    %172 = vector.shape_cast %171 : vector<1x32x1xf32> to vector<32x1xf32>
    %173 = arith.truncf %152 : vector<32x256xf32> to vector<32x256xbf16>
    %c0_115 = arith.constant 0 : index
    %c128_116 = arith.constant 128 : index
    %174 = vector.load %arg8[%c0_115, %c128_116] : memref<32x401xbf16, #tpu.memory_space<vmem>>, vector<32x256xbf16>
    tpu.vector_store %arg8[%c0_115, %c128_116], %173 {strides = array<i32>} : memref<32x401xbf16, #tpu.memory_space<vmem>>, vector<32x256xbf16>,
    %c0_117 = arith.constant 0 : index
    %c0_118 = arith.constant 0 : index
    %175 = vector.load %arg8[%c0_117, %c0_118] : memref<32x401xbf16, #tpu.memory_space<vmem>>, vector<32x401xbf16>
    %176 = vector.broadcast %21 : vector<1x401xbf16> to vector<32x401xbf16>
    %177 = arith.mulf %175, %176 : vector<32x401xbf16>
    %178 = vector.broadcast %26 : vector<1x401xbf16> to vector<32x401xbf16>
    %179 = arith.mulf %175, %178 : vector<32x401xbf16>
    %180 = vector.shape_cast %172 : vector<32x1xf32> to vector<32x1xf32>
    %181 = vector.broadcast %180 : vector<32x1xf32> to vector<32x256xf32>
    %182 = vector.extract_strided_slice %177 {offsets = [0, 111], sizes = [32, 256], strides = [1, 1]} : vector<32x401xbf16> to vector<32x256xbf16>
    %cst_119 = arith.constant dense<0.000000e+00> : vector<32x256xf32>
    %183 = tpu.matmul %154, %182, %cst_119 {dimension_numbers = #tpu.dot_dimension_numbers<[1], [0], [0], [1], [0, 0, 1, 1], [], []>} : vector<32x32xbf16>, vector<32x256xbf16>, vector<32x256xf32> -> vector<32x256xf32>
    %184 = arith.addf %181, %183 : vector<32x256xf32>
    %185 = vector.extract_strided_slice %175 {offsets = [0, 112], sizes = [32, 256], strides = [1, 1]} : vector<32x401xbf16> to vector<32x256xbf16>
    %cst_120 = arith.constant dense<0.000000e+00> : vector<32x256xf32>
    %186 = tpu.matmul %156, %185, %cst_120 {dimension_numbers = #tpu.dot_dimension_numbers<[1], [0], [0], [1], [0, 0, 1, 1], [], []>} : vector<32x32xbf16>, vector<32x256xbf16>, vector<32x256xf32> -> vector<32x256xf32>
    %187 = arith.addf %184, %186 : vector<32x256xf32>
    %188 = vector.extract_strided_slice %179 {offsets = [0, 113], sizes = [32, 256], strides = [1, 1]} : vector<32x401xbf16> to vector<32x256xbf16>
    %cst_121 = arith.constant dense<0.000000e+00> : vector<32x256xf32>
    %189 = tpu.matmul %158, %188, %cst_121 {dimension_numbers = #tpu.dot_dimension_numbers<[1], [0], [0], [1], [0, 0, 1, 1], [], []>} : vector<32x32xbf16>, vector<32x256xbf16>, vector<32x256xf32> -> vector<32x256xf32>
    %190 = arith.addf %187, %189 : vector<32x256xf32>
    %191 = vector.extract_strided_slice %177 {offsets = [0, 127], sizes = [32, 256], strides = [1, 1]} : vector<32x401xbf16> to vector<32x256xbf16>
    %cst_122 = arith.constant dense<0.000000e+00> : vector<32x256xf32>
    %192 = tpu.matmul %160, %191, %cst_122 {dimension_numbers = #tpu.dot_dimension_numbers<[1], [0], [0], [1], [0, 0, 1, 1], [], []>} : vector<32x32xbf16>, vector<32x256xbf16>, vector<32x256xf32> -> vector<32x256xf32>
    %193 = arith.addf %190, %192 : vector<32x256xf32>
    %194 = vector.extract_strided_slice %175 {offsets = [0, 128], sizes = [32, 256], strides = [1, 1]} : vector<32x401xbf16> to vector<32x256xbf16>
    %cst_123 = arith.constant dense<0.000000e+00> : vector<32x256xf32>
    %195 = tpu.matmul %162, %194, %cst_123 {dimension_numbers = #tpu.dot_dimension_numbers<[1], [0], [0], [1], [0, 0, 1, 1], [], []>} : vector<32x32xbf16>, vector<32x256xbf16>, vector<32x256xf32> -> vector<32x256xf32>
    %196 = arith.addf %193, %195 : vector<32x256xf32>
    %197 = vector.extract_strided_slice %179 {offsets = [0, 129], sizes = [32, 256], strides = [1, 1]} : vector<32x401xbf16> to vector<32x256xbf16>
    %cst_124 = arith.constant dense<0.000000e+00> : vector<32x256xf32>
    %198 = tpu.matmul %164, %197, %cst_124 {dimension_numbers = #tpu.dot_dimension_numbers<[1], [0], [0], [1], [0, 0, 1, 1], [], []>} : vector<32x32xbf16>, vector<32x256xbf16>, vector<32x256xf32> -> vector<32x256xf32>
    %199 = arith.addf %196, %198 : vector<32x256xf32>
    %200 = vector.extract_strided_slice %177 {offsets = [0, 143], sizes = [32, 256], strides = [1, 1]} : vector<32x401xbf16> to vector<32x256xbf16>
    %cst_125 = arith.constant dense<0.000000e+00> : vector<32x256xf32>
    %201 = tpu.matmul %166, %200, %cst_125 {dimension_numbers = #tpu.dot_dimension_numbers<[1], [0], [0], [1], [0, 0, 1, 1], [], []>} : vector<32x32xbf16>, vector<32x256xbf16>, vector<32x256xf32> -> vector<32x256xf32>
    %202 = arith.addf %199, %201 : vector<32x256xf32>
    %203 = vector.extract_strided_slice %175 {offsets = [0, 144], sizes = [32, 256], strides = [1, 1]} : vector<32x401xbf16> to vector<32x256xbf16>
    %cst_126 = arith.constant dense<0.000000e+00> : vector<32x256xf32>
    %204 = tpu.matmul %168, %203, %cst_126 {dimension_numbers = #tpu.dot_dimension_numbers<[1], [0], [0], [1], [0, 0, 1, 1], [], []>} : vector<32x32xbf16>, vector<32x256xbf16>, vector<32x256xf32> -> vector<32x256xf32>
    %205 = arith.addf %202, %204 : vector<32x256xf32>
    %206 = vector.extract_strided_slice %179 {offsets = [0, 145], sizes = [32, 256], strides = [1, 1]} : vector<32x401xbf16> to vector<32x256xbf16>
    %cst_127 = arith.constant dense<0.000000e+00> : vector<32x256xf32>
    %207 = tpu.matmul %170, %206, %cst_127 {dimension_numbers = #tpu.dot_dimension_numbers<[1], [0], [0], [1], [0, 0, 1, 1], [], []>} : vector<32x32xbf16>, vector<32x256xbf16>, vector<32x256xf32> -> vector<32x256xf32>
    %208 = arith.addf %205, %207 : vector<32x256xf32>
    %209 = arith.addf %94, %208 : vector<32x256xf32>
    %c18 = arith.constant 18 : index
    %c0_128 = arith.constant 0 : index
    %c0_129 = arith.constant 0 : index
    %210 = vector.load %arg4[%c18, %c0_128, %c0_129] : memref<36x32x32xbf16, #tpu.memory_space<vmem>>, vector<1x32x32xbf16>
    %211 = vector.shape_cast %210 : vector<1x32x32xbf16> to vector<32x32xbf16>
    %c19 = arith.constant 19 : index
    %c0_130 = arith.constant 0 : index
    %c0_131 = arith.constant 0 : index
    %212 = vector.load %arg4[%c19, %c0_130, %c0_131] : memref<36x32x32xbf16, #tpu.memory_space<vmem>>, vector<1x32x32xbf16>
    %213 = vector.shape_cast %212 : vector<1x32x32xbf16> to vector<32x32xbf16>
    %c20 = arith.constant 20 : index
    %c0_132 = arith.constant 0 : index
    %c0_133 = arith.constant 0 : index
    %214 = vector.load %arg4[%c20, %c0_132, %c0_133] : memref<36x32x32xbf16, #tpu.memory_space<vmem>>, vector<1x32x32xbf16>
    %215 = vector.shape_cast %214 : vector<1x32x32xbf16> to vector<32x32xbf16>
    %c21 = arith.constant 21 : index
    %c0_134 = arith.constant 0 : index
    %c0_135 = arith.constant 0 : index
    %216 = vector.load %arg4[%c21, %c0_134, %c0_135] : memref<36x32x32xbf16, #tpu.memory_space<vmem>>, vector<1x32x32xbf16>
    %217 = vector.shape_cast %216 : vector<1x32x32xbf16> to vector<32x32xbf16>
    %c22 = arith.constant 22 : index
    %c0_136 = arith.constant 0 : index
    %c0_137 = arith.constant 0 : index
    %218 = vector.load %arg4[%c22, %c0_136, %c0_137] : memref<36x32x32xbf16, #tpu.memory_space<vmem>>, vector<1x32x32xbf16>
    %219 = vector.shape_cast %218 : vector<1x32x32xbf16> to vector<32x32xbf16>
    %c23 = arith.constant 23 : index
    %c0_138 = arith.constant 0 : index
    %c0_139 = arith.constant 0 : index
    %220 = vector.load %arg4[%c23, %c0_138, %c0_139] : memref<36x32x32xbf16, #tpu.memory_space<vmem>>, vector<1x32x32xbf16>
    %221 = vector.shape_cast %220 : vector<1x32x32xbf16> to vector<32x32xbf16>
    %c24 = arith.constant 24 : index
    %c0_140 = arith.constant 0 : index
    %c0_141 = arith.constant 0 : index
    %222 = vector.load %arg4[%c24, %c0_140, %c0_141] : memref<36x32x32xbf16, #tpu.memory_space<vmem>>, vector<1x32x32xbf16>
    %223 = vector.shape_cast %222 : vector<1x32x32xbf16> to vector<32x32xbf16>
    %c25 = arith.constant 25 : index
    %c0_142 = arith.constant 0 : index
    %c0_143 = arith.constant 0 : index
    %224 = vector.load %arg4[%c25, %c0_142, %c0_143] : memref<36x32x32xbf16, #tpu.memory_space<vmem>>, vector<1x32x32xbf16>
    %225 = vector.shape_cast %224 : vector<1x32x32xbf16> to vector<32x32xbf16>
    %c26 = arith.constant 26 : index
    %c0_144 = arith.constant 0 : index
    %c0_145 = arith.constant 0 : index
    %226 = vector.load %arg4[%c26, %c0_144, %c0_145] : memref<36x32x32xbf16, #tpu.memory_space<vmem>>, vector<1x32x32xbf16>
    %227 = vector.shape_cast %226 : vector<1x32x32xbf16> to vector<32x32xbf16>
    %c2_146 = arith.constant 2 : index
    %c0_147 = arith.constant 0 : index
    %c0_148 = arith.constant 0 : index
    %228 = vector.load %arg5[%c2_146, %c0_147, %c0_148] : memref<4x32x1xf32, #tpu.memory_space<vmem>>, vector<1x32x1xf32>
    %229 = vector.shape_cast %228 : vector<1x32x1xf32> to vector<32x1xf32>
    %230 = arith.truncf %209 : vector<32x256xf32> to vector<32x256xbf16>
    %c0_149 = arith.constant 0 : index
    %c128_150 = arith.constant 128 : index
    %231 = vector.load %arg8[%c0_149, %c128_150] : memref<32x401xbf16, #tpu.memory_space<vmem>>, vector<32x256xbf16>
    tpu.vector_store %arg8[%c0_149, %c128_150], %230 {strides = array<i32>} : memref<32x401xbf16, #tpu.memory_space<vmem>>, vector<32x256xbf16>,
    %c0_151 = arith.constant 0 : index
    %c0_152 = arith.constant 0 : index
    %232 = vector.load %arg8[%c0_151, %c0_152] : memref<32x401xbf16, #tpu.memory_space<vmem>>, vector<32x401xbf16>
    %233 = vector.broadcast %21 : vector<1x401xbf16> to vector<32x401xbf16>
    %234 = arith.mulf %232, %233 : vector<32x401xbf16>
    %235 = vector.broadcast %26 : vector<1x401xbf16> to vector<32x401xbf16>
    %236 = arith.mulf %232, %235 : vector<32x401xbf16>
    %237 = vector.shape_cast %229 : vector<32x1xf32> to vector<32x1xf32>
    %238 = vector.broadcast %237 : vector<32x1xf32> to vector<32x256xf32>
    %239 = vector.extract_strided_slice %234 {offsets = [0, 111], sizes = [32, 256], strides = [1, 1]} : vector<32x401xbf16> to vector<32x256xbf16>
    %cst_153 = arith.constant dense<0.000000e+00> : vector<32x256xf32>
    %240 = tpu.matmul %211, %239, %cst_153 {dimension_numbers = #tpu.dot_dimension_numbers<[1], [0], [0], [1], [0, 0, 1, 1], [], []>} : vector<32x32xbf16>, vector<32x256xbf16>, vector<32x256xf32> -> vector<32x256xf32>
    %241 = arith.addf %238, %240 : vector<32x256xf32>
    %242 = vector.extract_strided_slice %232 {offsets = [0, 112], sizes = [32, 256], strides = [1, 1]} : vector<32x401xbf16> to vector<32x256xbf16>
    %cst_154 = arith.constant dense<0.000000e+00> : vector<32x256xf32>
    %243 = tpu.matmul %213, %242, %cst_154 {dimension_numbers = #tpu.dot_dimension_numbers<[1], [0], [0], [1], [0, 0, 1, 1], [], []>} : vector<32x32xbf16>, vector<32x256xbf16>, vector<32x256xf32> -> vector<32x256xf32>
    %244 = arith.addf %241, %243 : vector<32x256xf32>
    %245 = vector.extract_strided_slice %236 {offsets = [0, 113], sizes = [32, 256], strides = [1, 1]} : vector<32x401xbf16> to vector<32x256xbf16>
    %cst_155 = arith.constant dense<0.000000e+00> : vector<32x256xf32>
    %246 = tpu.matmul %215, %245, %cst_155 {dimension_numbers = #tpu.dot_dimension_numbers<[1], [0], [0], [1], [0, 0, 1, 1], [], []>} : vector<32x32xbf16>, vector<32x256xbf16>, vector<32x256xf32> -> vector<32x256xf32>
    %247 = arith.addf %244, %246 : vector<32x256xf32>
    %248 = vector.extract_strided_slice %234 {offsets = [0, 127], sizes = [32, 256], strides = [1, 1]} : vector<32x401xbf16> to vector<32x256xbf16>
    %cst_156 = arith.constant dense<0.000000e+00> : vector<32x256xf32>
    %249 = tpu.matmul %217, %248, %cst_156 {dimension_numbers = #tpu.dot_dimension_numbers<[1], [0], [0], [1], [0, 0, 1, 1], [], []>} : vector<32x32xbf16>, vector<32x256xbf16>, vector<32x256xf32> -> vector<32x256xf32>
    %250 = arith.addf %247, %249 : vector<32x256xf32>
    %251 = vector.extract_strided_slice %232 {offsets = [0, 128], sizes = [32, 256], strides = [1, 1]} : vector<32x401xbf16> to vector<32x256xbf16>
    %cst_157 = arith.constant dense<0.000000e+00> : vector<32x256xf32>
    %252 = tpu.matmul %219, %251, %cst_157 {dimension_numbers = #tpu.dot_dimension_numbers<[1], [0], [0], [1], [0, 0, 1, 1], [], []>} : vector<32x32xbf16>, vector<32x256xbf16>, vector<32x256xf32> -> vector<32x256xf32>
    %253 = arith.addf %250, %252 : vector<32x256xf32>
    %254 = vector.extract_strided_slice %236 {offsets = [0, 129], sizes = [32, 256], strides = [1, 1]} : vector<32x401xbf16> to vector<32x256xbf16>
    %cst_158 = arith.constant dense<0.000000e+00> : vector<32x256xf32>
    %255 = tpu.matmul %221, %254, %cst_158 {dimension_numbers = #tpu.dot_dimension_numbers<[1], [0], [0], [1], [0, 0, 1, 1], [], []>} : vector<32x32xbf16>, vector<32x256xbf16>, vector<32x256xf32> -> vector<32x256xf32>
    %256 = arith.addf %253, %255 : vector<32x256xf32>
    %257 = vector.extract_strided_slice %234 {offsets = [0, 143], sizes = [32, 256], strides = [1, 1]} : vector<32x401xbf16> to vector<32x256xbf16>
    %cst_159 = arith.constant dense<0.000000e+00> : vector<32x256xf32>
    %258 = tpu.matmul %223, %257, %cst_159 {dimension_numbers = #tpu.dot_dimension_numbers<[1], [0], [0], [1], [0, 0, 1, 1], [], []>} : vector<32x32xbf16>, vector<32x256xbf16>, vector<32x256xf32> -> vector<32x256xf32>
    %259 = arith.addf %256, %258 : vector<32x256xf32>
    %260 = vector.extract_strided_slice %232 {offsets = [0, 144], sizes = [32, 256], strides = [1, 1]} : vector<32x401xbf16> to vector<32x256xbf16>
    %cst_160 = arith.constant dense<0.000000e+00> : vector<32x256xf32>
    %261 = tpu.matmul %225, %260, %cst_160 {dimension_numbers = #tpu.dot_dimension_numbers<[1], [0], [0], [1], [0, 0, 1, 1], [], []>} : vector<32x32xbf16>, vector<32x256xbf16>, vector<32x256xf32> -> vector<32x256xf32>
    %262 = arith.addf %259, %261 : vector<32x256xf32>
    %263 = vector.extract_strided_slice %236 {offsets = [0, 145], sizes = [32, 256], strides = [1, 1]} : vector<32x401xbf16> to vector<32x256xbf16>
    %cst_161 = arith.constant dense<0.000000e+00> : vector<32x256xf32>
    %264 = tpu.matmul %227, %263, %cst_161 {dimension_numbers = #tpu.dot_dimension_numbers<[1], [0], [0], [1], [0, 0, 1, 1], [], []>} : vector<32x32xbf16>, vector<32x256xbf16>, vector<32x256xf32> -> vector<32x256xf32>
    %265 = arith.addf %262, %264 : vector<32x256xf32>
    %cst_162 = arith.constant 0.000000e+00 : f32
    %266 = vector.broadcast %cst_162 : f32 to vector<32x256xf32>
    %267 = arith.maximumf %265, %266 : vector<32x256xf32>
    %c27 = arith.constant 27 : index
    %c0_163 = arith.constant 0 : index
    %c0_164 = arith.constant 0 : index
    %268 = vector.load %arg4[%c27, %c0_163, %c0_164] : memref<36x32x32xbf16, #tpu.memory_space<vmem>>, vector<1x32x32xbf16>
    %269 = vector.shape_cast %268 : vector<1x32x32xbf16> to vector<32x32xbf16>
    %c28 = arith.constant 28 : index
    %c0_165 = arith.constant 0 : index
    %c0_166 = arith.constant 0 : index
    %270 = vector.load %arg4[%c28, %c0_165, %c0_166] : memref<36x32x32xbf16, #tpu.memory_space<vmem>>, vector<1x32x32xbf16>
    %271 = vector.shape_cast %270 : vector<1x32x32xbf16> to vector<32x32xbf16>
    %c29 = arith.constant 29 : index
    %c0_167 = arith.constant 0 : index
    %c0_168 = arith.constant 0 : index
    %272 = vector.load %arg4[%c29, %c0_167, %c0_168] : memref<36x32x32xbf16, #tpu.memory_space<vmem>>, vector<1x32x32xbf16>
    %273 = vector.shape_cast %272 : vector<1x32x32xbf16> to vector<32x32xbf16>
    %c30 = arith.constant 30 : index
    %c0_169 = arith.constant 0 : index
    %c0_170 = arith.constant 0 : index
    %274 = vector.load %arg4[%c30, %c0_169, %c0_170] : memref<36x32x32xbf16, #tpu.memory_space<vmem>>, vector<1x32x32xbf16>
    %275 = vector.shape_cast %274 : vector<1x32x32xbf16> to vector<32x32xbf16>
    %c31 = arith.constant 31 : index
    %c0_171 = arith.constant 0 : index
    %c0_172 = arith.constant 0 : index
    %276 = vector.load %arg4[%c31, %c0_171, %c0_172] : memref<36x32x32xbf16, #tpu.memory_space<vmem>>, vector<1x32x32xbf16>
    %277 = vector.shape_cast %276 : vector<1x32x32xbf16> to vector<32x32xbf16>
    %c32 = arith.constant 32 : index
    %c0_173 = arith.constant 0 : index
    %c0_174 = arith.constant 0 : index
    %278 = vector.load %arg4[%c32, %c0_173, %c0_174] : memref<36x32x32xbf16, #tpu.memory_space<vmem>>, vector<1x32x32xbf16>
    %279 = vector.shape_cast %278 : vector<1x32x32xbf16> to vector<32x32xbf16>
    %c33 = arith.constant 33 : index
    %c0_175 = arith.constant 0 : index
    %c0_176 = arith.constant 0 : index
    %280 = vector.load %arg4[%c33, %c0_175, %c0_176] : memref<36x32x32xbf16, #tpu.memory_space<vmem>>, vector<1x32x32xbf16>
    %281 = vector.shape_cast %280 : vector<1x32x32xbf16> to vector<32x32xbf16>
    %c34 = arith.constant 34 : index
    %c0_177 = arith.constant 0 : index
    %c0_178 = arith.constant 0 : index
    %282 = vector.load %arg4[%c34, %c0_177, %c0_178] : memref<36x32x32xbf16, #tpu.memory_space<vmem>>, vector<1x32x32xbf16>
    %283 = vector.shape_cast %282 : vector<1x32x32xbf16> to vector<32x32xbf16>
    %c35 = arith.constant 35 : index
    %c0_179 = arith.constant 0 : index
    %c0_180 = arith.constant 0 : index
    %284 = vector.load %arg4[%c35, %c0_179, %c0_180] : memref<36x32x32xbf16, #tpu.memory_space<vmem>>, vector<1x32x32xbf16>
    %285 = vector.shape_cast %284 : vector<1x32x32xbf16> to vector<32x32xbf16>
    %c3_181 = arith.constant 3 : index
    %c0_182 = arith.constant 0 : index
    %c0_183 = arith.constant 0 : index
    %286 = vector.load %arg5[%c3_181, %c0_182, %c0_183] : memref<4x32x1xf32, #tpu.memory_space<vmem>>, vector<1x32x1xf32>
    %287 = vector.shape_cast %286 : vector<1x32x1xf32> to vector<32x1xf32>
    %288 = arith.truncf %267 : vector<32x256xf32> to vector<32x256xbf16>
    %c0_184 = arith.constant 0 : index
    %c128_185 = arith.constant 128 : index
    %289 = vector.load %arg8[%c0_184, %c128_185] : memref<32x401xbf16, #tpu.memory_space<vmem>>, vector<32x256xbf16>
    tpu.vector_store %arg8[%c0_184, %c128_185], %288 {strides = array<i32>} : memref<32x401xbf16, #tpu.memory_space<vmem>>, vector<32x256xbf16>,
    %c0_186 = arith.constant 0 : index
    %c0_187 = arith.constant 0 : index
    %290 = vector.load %arg8[%c0_186, %c0_187] : memref<32x401xbf16, #tpu.memory_space<vmem>>, vector<32x401xbf16>
    %291 = vector.broadcast %21 : vector<1x401xbf16> to vector<32x401xbf16>
    %292 = arith.mulf %290, %291 : vector<32x401xbf16>
    %293 = vector.broadcast %26 : vector<1x401xbf16> to vector<32x401xbf16>
    %294 = arith.mulf %290, %293 : vector<32x401xbf16>
    %295 = vector.shape_cast %287 : vector<32x1xf32> to vector<32x1xf32>
    %296 = vector.broadcast %295 : vector<32x1xf32> to vector<32x256xf32>
    %297 = vector.extract_strided_slice %292 {offsets = [0, 111], sizes = [32, 256], strides = [1, 1]} : vector<32x401xbf16> to vector<32x256xbf16>
    %cst_188 = arith.constant dense<0.000000e+00> : vector<32x256xf32>
    %298 = tpu.matmul %269, %297, %cst_188 {dimension_numbers = #tpu.dot_dimension_numbers<[1], [0], [0], [1], [0, 0, 1, 1], [], []>} : vector<32x32xbf16>, vector<32x256xbf16>, vector<32x256xf32> -> vector<32x256xf32>
    %299 = arith.addf %296, %298 : vector<32x256xf32>
    %300 = vector.extract_strided_slice %290 {offsets = [0, 112], sizes = [32, 256], strides = [1, 1]} : vector<32x401xbf16> to vector<32x256xbf16>
    %cst_189 = arith.constant dense<0.000000e+00> : vector<32x256xf32>
    %301 = tpu.matmul %271, %300, %cst_189 {dimension_numbers = #tpu.dot_dimension_numbers<[1], [0], [0], [1], [0, 0, 1, 1], [], []>} : vector<32x32xbf16>, vector<32x256xbf16>, vector<32x256xf32> -> vector<32x256xf32>
    %302 = arith.addf %299, %301 : vector<32x256xf32>
    %303 = vector.extract_strided_slice %294 {offsets = [0, 113], sizes = [32, 256], strides = [1, 1]} : vector<32x401xbf16> to vector<32x256xbf16>
    %cst_190 = arith.constant dense<0.000000e+00> : vector<32x256xf32>
    %304 = tpu.matmul %273, %303, %cst_190 {dimension_numbers = #tpu.dot_dimension_numbers<[1], [0], [0], [1], [0, 0, 1, 1], [], []>} : vector<32x32xbf16>, vector<32x256xbf16>, vector<32x256xf32> -> vector<32x256xf32>
    %305 = arith.addf %302, %304 : vector<32x256xf32>
    %306 = vector.extract_strided_slice %292 {offsets = [0, 127], sizes = [32, 256], strides = [1, 1]} : vector<32x401xbf16> to vector<32x256xbf16>
    %cst_191 = arith.constant dense<0.000000e+00> : vector<32x256xf32>
    %307 = tpu.matmul %275, %306, %cst_191 {dimension_numbers = #tpu.dot_dimension_numbers<[1], [0], [0], [1], [0, 0, 1, 1], [], []>} : vector<32x32xbf16>, vector<32x256xbf16>, vector<32x256xf32> -> vector<32x256xf32>
    %308 = arith.addf %305, %307 : vector<32x256xf32>
    %309 = vector.extract_strided_slice %290 {offsets = [0, 128], sizes = [32, 256], strides = [1, 1]} : vector<32x401xbf16> to vector<32x256xbf16>
    %cst_192 = arith.constant dense<0.000000e+00> : vector<32x256xf32>
    %310 = tpu.matmul %277, %309, %cst_192 {dimension_numbers = #tpu.dot_dimension_numbers<[1], [0], [0], [1], [0, 0, 1, 1], [], []>} : vector<32x32xbf16>, vector<32x256xbf16>, vector<32x256xf32> -> vector<32x256xf32>
    %311 = arith.addf %308, %310 : vector<32x256xf32>
    %312 = vector.extract_strided_slice %294 {offsets = [0, 129], sizes = [32, 256], strides = [1, 1]} : vector<32x401xbf16> to vector<32x256xbf16>
    %cst_193 = arith.constant dense<0.000000e+00> : vector<32x256xf32>
    %313 = tpu.matmul %279, %312, %cst_193 {dimension_numbers = #tpu.dot_dimension_numbers<[1], [0], [0], [1], [0, 0, 1, 1], [], []>} : vector<32x32xbf16>, vector<32x256xbf16>, vector<32x256xf32> -> vector<32x256xf32>
    %314 = arith.addf %311, %313 : vector<32x256xf32>
    %315 = vector.extract_strided_slice %292 {offsets = [0, 143], sizes = [32, 256], strides = [1, 1]} : vector<32x401xbf16> to vector<32x256xbf16>
    %cst_194 = arith.constant dense<0.000000e+00> : vector<32x256xf32>
    %316 = tpu.matmul %281, %315, %cst_194 {dimension_numbers = #tpu.dot_dimension_numbers<[1], [0], [0], [1], [0, 0, 1, 1], [], []>} : vector<32x32xbf16>, vector<32x256xbf16>, vector<32x256xf32> -> vector<32x256xf32>
    %317 = arith.addf %314, %316 : vector<32x256xf32>
    %318 = vector.extract_strided_slice %290 {offsets = [0, 144], sizes = [32, 256], strides = [1, 1]} : vector<32x401xbf16> to vector<32x256xbf16>
    %cst_195 = arith.constant dense<0.000000e+00> : vector<32x256xf32>
    %319 = tpu.matmul %283, %318, %cst_195 {dimension_numbers = #tpu.dot_dimension_numbers<[1], [0], [0], [1], [0, 0, 1, 1], [], []>} : vector<32x32xbf16>, vector<32x256xbf16>, vector<32x256xf32> -> vector<32x256xf32>
    %320 = arith.addf %317, %319 : vector<32x256xf32>
    %321 = vector.extract_strided_slice %294 {offsets = [0, 145], sizes = [32, 256], strides = [1, 1]} : vector<32x401xbf16> to vector<32x256xbf16>
    %cst_196 = arith.constant dense<0.000000e+00> : vector<32x256xf32>
    %322 = tpu.matmul %285, %321, %cst_196 {dimension_numbers = #tpu.dot_dimension_numbers<[1], [0], [0], [1], [0, 0, 1, 1], [], []>} : vector<32x32xbf16>, vector<32x256xbf16>, vector<32x256xf32> -> vector<32x256xf32>
    %323 = arith.addf %320, %322 : vector<32x256xf32>
    %324 = arith.addf %209, %323 : vector<32x256xf32>
    %c0_197 = arith.constant 0 : index
    %c0_198 = arith.constant 0 : index
    %c0_199 = arith.constant 0 : index
    %325 = vector.load %arg6[%c0_197, %c0_198, %c0_199] : memref<1x32x256xf32, #tpu.memory_space<vmem>>, vector<1x32x256xf32>
    %326 = vector.shape_cast %325 : vector<1x32x256xf32> to vector<32x256xf32>
    %327 = vector.shape_cast %324 : vector<32x256xf32> to vector<1x32x256xf32>
    tpu.vector_store %arg6[%c0_197, %c0_198, %c0_199], %327 {strides = array<i32>} : memref<1x32x256xf32, #tpu.memory_space<vmem>>, vector<1x32x256xf32>,
    return
  }
  func.func @transform_0(%arg0: i32) -> (i32, i32, i32) {
    %c0_i32 = arith.constant 0 : i32
    %c0_i32_0 = arith.constant 0 : i32
    %c0_i32_1 = arith.constant 0 : i32
    return %arg0, %c0_i32, %c0_i32_0 : i32, i32, i32
  }
  func.func @transform_1(%arg0: i32) -> (i32, i32, i32) {
    %c0_i32 = arith.constant 0 : i32
    %c0_i32_0 = arith.constant 0 : i32
    %c0_i32_1 = arith.constant 0 : i32
    %c0_i32_2 = arith.constant 0 : i32
    return %c0_i32, %c0_i32_0, %c0_i32_1 : i32, i32, i32
  }
  func.func @transform_2(%arg0: i32) -> (i32, i32) {
    %c0_i32 = arith.constant 0 : i32
    %c0_i32_0 = arith.constant 0 : i32
    %c0_i32_1 = arith.constant 0 : i32
    return %c0_i32, %c0_i32_0 : i32, i32
  }
  func.func @transform_3(%arg0: i32) -> (i32, i32, i32) {
    %c0_i32 = arith.constant 0 : i32
    %c0_i32_0 = arith.constant 0 : i32
    %c0_i32_1 = arith.constant 0 : i32
    %c0_i32_2 = arith.constant 0 : i32
    return %c0_i32, %c0_i32_0, %c0_i32_1 : i32, i32, i32
  }
  func.func @transform_4(%arg0: i32) -> (i32, i32, i32) {
    %c0_i32 = arith.constant 0 : i32
    %c0_i32_0 = arith.constant 0 : i32
    %c0_i32_1 = arith.constant 0 : i32
    %c0_i32_2 = arith.constant 0 : i32
    return %c0_i32, %c0_i32_0, %c0_i32_1 : i32, i32, i32
  }
  func.func @transform_5(%arg0: i32) -> (i32, i32, i32) {
    %c0_i32 = arith.constant 0 : i32
    %c0_i32_0 = arith.constant 0 : i32
    %c0_i32_1 = arith.constant 0 : i32
    return %arg0, %c0_i32, %c0_i32_0 : i32, i32, i32
  }
}

</mosaic_0001>

<bundles_post_ra>
// kernel: conv_residual_blocks_forward.1
= control target key start
LH: loop header
LB: loop body
LE: loop exit
PB: predicated region body
PF: predicated region fallthrough
CT: control target
= control target key end

     0   :  { %s6488_s18 = smov 0   ;;  %s8012_s0 = inlined_call_operand.vmem [shape: f32[2,4,256], index: 0, kind: input, shape index: {}]   ;;  %s8013_s1 = inlined_call_operand.vmem [shape: bf16[9,32,4], index: 1, kind: input, shape index: {}]   ;;  %s8014_s2 = inlined_call_operand.vmem [shape: f32[32,1], index: 2, kind: input, shape index: {}]   ;;  %s8015_s3 = inlined_call_operand.vmem [shape: bf16[36,32,32], index: 3, kind: input, shape index: {}]   ;;  %s8016_s4 = inlined_call_operand.vmem [shape: f32[4,32,1], index: 4, kind: input, shape index: {}]   ;;  %s8017_s5 = inlined_call_operand.vmem [shape: f32[2,32,256], index: 5, kind: output, shape index: {}]  }
   0x1 LB: > { %s5757_s19 = sadd.s32 4294967295, %s6445_s18   ;;  %p5761_p0 = scmp.ge.s32.totalorder %s6445_s18, 1  ;;  %s6445_s18 = sphi %s6488_s18, %s15_s18  }
   0x2   : > { %p187_p1 = scmp.lt.s32.totalorder %s6445_s18, 3 }
   0x4   : > { %p188_p2 = pnand %p5761_p0, %p187_p1 }
   0x6   : > { %191 = sbr.rel (%p188_p2) target bundleno = 2143 (0x85f), region = 40 }
   0xb   : > { %p215_p3 = scmp.lt.s32.totalorder %s5757_s19, 1  ;;  %v226_v0 = vlaneseq  ;;  %vm312_vm0 = vcmask 132096   ;;  %v8018_v1 = vmov 0   ;;  %v6448_v3 = vmov 1983009808   ;;  %s6450_s24 = smov 17  }
   0xc   : > { %311 = vst [vmem:[#allocation2] sm:$0x3] %v8018_v1  ;;  %313 = vst.msk [vmem:[#allocation2 + $0x6] sm:$0x3] %vm312_vm0, %v8018_v1  ;;  %538 = vmatprep.mubr.bf16.mxu0 %v8018_v1  ;;  %548 = vmatprep.mubr.bf16.mxu1 %v8018_v1  ;;  %v397_v4 = vunpack.c.l.s4 %v6448_v3  ;;  %v6449_v15 = vmov 0.0   ;;  %s6451_s25 = smov 16  }
   0xd   : > { %314 = vst [vmem:[#allocation3] sm:$0xf] %v8018_v1  ;;  %315 = vst [vmem:[#allocation3 + $0x10] sm:$0xf] %v8018_v1  ;;  %s8158_s19 = smov (!%p215_p3, %s5757_s19), 1  ;;  %v227_v2 = vand.u32 127, %v226_v0  ;;  %6315 = vset.pattern.permute.xlu1 %v8018_v1  ;;  %6314 = vset.pattern.permute.xlu0 %v8018_v1 }
   0xe   : > { %316 = vst [vmem:[#allocation3 + $0x20] sm:$0xf] %v8018_v1  ;;  %317 = vst [vmem:[#allocation3 + $0x30] sm:$0xf] %v8018_v1  ;;  %v400_v5 = vshrl.u32 %v226_v0, 7  ;;  %s6271_s20 = sshll.u32 %s8158_s19, 3  ;;  %v398_v10 = vunpack.c.0.s8 %v397_v4 }
   0xf   : > { %v228_v6 = vadd.s32 128, %v227_v2  ;;  %v229_v7 = vadd.s32 256, %v227_v2  ;;  %v230_v8 = vadd.s32 384, %v227_v2  ;;  %v235_v9 = vand.u32 15, %v227_v2  ;;  %s219_s23 = scalar_lea.vmem %s8012_s0, %s6271_s20  ;;  %s6452_s26 = smov 15   ;;  %v370_v55 = vld [vmem:[%s8014_s2 + $0x10] sm:$0xff] }
  0x10   : > { %v323_v14 = vld [vmem:[%s219_s23] sm:$0xff]  ;;  %v401_v18 = vsub.s32 %v398_v10, %v400_v5  ;;  %s6453_s27 = smov 1   ;;  %s6454_s28 = smov 127   ;;  %v371_v56 = vld [vmem:[%s8014_s2 + $0x18] sm:$0xff]  ;;  %v369_v57 = vld [vmem:[%s8014_s2 + $0x8] sm:$0xff]  ;;  %vm489_vm9 = vcmask 138240  }
  0x11   : > { %v242_v11 = vand.u32 15, %v228_v6  ;;  %v249_v12 = vand.u32 15, %v229_v7  ;;  %v256_v13 = vand.u32 15, %v230_v8  ;;  %vm279_vm1 = vcmp.ne.s32.totalorder %v235_v9, 15  ;;  %s6455_s29 = smov 113   ;;  %s6456_s30 = smov 112  }
  0x12   : > { %v5766_v16 = vsel %vm279_vm1, 1.0, %v6449_v15  ;;  %vm295_vm2 = vcmp.ne.s32.totalorder %v235_v9, 0  ;;  %v373_v17 = vcombine.high %v323_v14, %v323_v14  ;;  %s6457_s6 = smov 111   ;;  %v368_v58 = vld [vmem:[%s8014_s2] sm:$0xff]  ;;  %vm499_vm10 = vcmask 1041408   ;;  %v6319_v4 = vld [vmem:[%s8013_s1 + $0x8] sm:$0xff]  }
  0x13   : > { %vm280_vm3 = vcmp.ne.s32.totalorder %v242_v11, 15  ;;  %vm281_vm4 = vcmp.ne.s32.totalorder %v249_v12, 15  ;;  %vm282_vm5 = vcmp.ne.s32.totalorder %v256_v13, 15  ;;  %vm296_vm6 = vcmp.ne.s32.totalorder %v242_v11, 0  ;;  %v6318_v3 = vld [vmem:[%s8013_s1] sm:$0xff]   ;;  %s6272_s16 = sshll.u32 %s8158_s19, 6 }
  0x14   : > { %v5767_v19 = vsel %vm280_vm3, 1.0, %v6449_v15  ;;  %v5768_v20 = vsel %vm281_vm4, 1.0, %v6449_v15  ;;  %v5769_v21 = vsel %vm282_vm5, 1.0, %v6449_v15  ;;  %vm297_vm7 = vcmp.ne.s32.totalorder %v249_v12, 0  ;;  %v6320_v12 = vld [vmem:[%s8013_s1 + $0x10] sm:$0xff]  }
  0x15   : > { %vm298_vm8 = vcmp.ne.s32.totalorder %v256_v13, 0  ;;  %v5770_v22 = vsel %vm295_vm2, 1.0, %v6449_v15  ;;  %v5771_v23 = vsel %vm296_vm6, 1.0, %v6449_v15  ;;  %v5772_v24 = vsel %vm297_vm7, 1.0, %v6449_v15 }
  0x16   : > { %v5773_v25 = vsel %vm298_vm8, 1.0, %v6449_v15  ;;  %v5806_v26 = vpack.c.bf16 %v373_v17, %v323_v14  ;;  %v6512_v27 = vpack.c.bf16 %v5767_v19, %v5766_v16  ;;  %v6514_v28 = vpack.c.bf16 %v5769_v21, %v5768_v20 }
  0x17   : > { %v6518_v31 = vpack.c.bf16 %v5771_v23, %v5770_v22  ;;  %v6520_v32 = vpack.c.bf16 %v5773_v25, %v5772_v24  ;;  %vm600_vm11 = vcmask 130048   ;;  %vm492_vm12 = vcmask 31744   ;;  %v6322_v24 = vld [vmem:[%s8013_s1 + $0x18] sm:$0xff]  }
  0x18   : > { %8059 = vst [vmem:[#allocation4_spill] sm:$0xff] %v6512_v27  ;;  %8060 = vst [vmem:[#allocation5_spill] sm:$0xff] %v6514_v28  ;;  %v402_v29 = vrot.slane %v6512_v27, %v401_v18  ;;  %v409_v30 = vrot.slane %v6514_v28, %v401_v18  ;;  %vm709_vm13 = vcmask 121856   ;;  %vm801_vm14 = vcmask 7168  }
  0x19   : > { %5807 = vst.sshfl [vmem:[#allocation2 + $0x2] sm:$0x33 pattern:$0x76325410] %v5806_v26  ;;  %8061 = vst [vmem:[#allocation6_spill] sm:$0xff] %v6518_v31  ;;  %v425_v34 = vrot.slane %v6518_v31, %v401_v18  ;;  %v432_v35 = vrot.slane %v6520_v32, %v401_v18  ;;  %vm977_vm15 = vcmask 1039360  }
  0x1a   : > { %8062 = vst [vmem:[#allocation7_spill] sm:$0xff] %v6520_v32  ;;  %v410_v33 = vcombine.low %v402_v29, %v409_v30  ;;  %v6323_v29 = vld [vmem:[%s8013_s1 + $0x28] sm:$0xff]   ;;  %vm1070_vm0 = vcmask 924672   ;;  %vm1163_vm1 = vcmask 916480   ;;  %vm1255_vm2 = vcmask 908288  }
  0x1b   : > { %v433_v40 = vcombine.low %v425_v34, %v432_v35  ;;  %vm318_vm3 = vcmask 134144   ;;  %vm1539_vm4 = vcmask 261120  }
  0x1c   : > { %319 = vst.msk [vmem:[#allocation3 + $0xc] sm:$0xf] %vm318_vm3, %v8018_v1  ;;  %320 = vst.msk [vmem:[#allocation3 + $0x1c] sm:$0xf] %vm318_vm3, %v8018_v1 }
  0x1d   : > { %321 = vst.msk [vmem:[#allocation3 + $0x2c] sm:$0xf] %vm318_vm3, %v8018_v1  ;;  %322 = vst.msk [vmem:[#allocation3 + $0x3c] sm:$0xf] %vm318_vm3, %v8018_v1 }
  0x20   : > { %v389_v36 = vld [vmem:[#allocation2] sm:$0xff] }
  0x21   : > { %v412_v37 = vmul.bf16 %v410_v33, %v389_v36  ;;  %v585_v43 = vrot.slane %v389_v36, %v401_v18  ;;  %v578_v44 = vcombine.high %v389_v36, %v389_v36  ;;  %v435_v45 = vmul.bf16 %v433_v40, %v389_v36  ;;  %v6324_v36 = vld [vmem:[%s8013_s1 + $0x30] sm:$0xff]  }
  0x23   : > { %v474_v38 = vrot.slane %v412_v37, %v401_v18  ;;  %v467_v39 = vcombine.high %v412_v37, %v412_v37  ;;  %v6527_v46 = vcombine.high %v585_v43, %v585_v43  ;;  %v6530_v47 = vrot.slane %v578_v44, %v401_v18 }
  0x24   : > { %v694_v48 = vrot.slane %v435_v45, %v401_v18  ;;  %v687_v49 = vcombine.high %v435_v45, %v435_v45 }
  0x25   : > { %483 = vrot.lane.b32.xlu0 %v474_v38, %s6450_s24  ;;  %v481_v41 = vrot.slane %v467_v39, %v401_v18  ;;  %v482_v42 = vcombine.high %v474_v38, %v474_v38  ;;  %v1156_v54 = vcombine.high %v6530_v47, %v6530_v47  ;;  %v894_v20 = vsel %vm499_vm10, %v6527_v46, 0 }
  0x26   : > { %v702_v50 = vcombine.high %v694_v48, %v694_v48  ;;  %v701_v51 = vrot.slane %v687_v49, %v401_v18  ;;  %v6321_v18 = vld [vmem:[%s8013_s1 + $0x20] sm:$0xff]  }
  0x27   : > { %487 = vrot.lane.b32.xlu1 %v481_v41, %s6450_s24  ;;  %v1063_v53 = vcombine.high %v481_v41, %v481_v41 }
  0x28   : > { %v970_v52 = vcombine.high %v701_v51, %v701_v51 }
  0x29   : > { %485 = vrot.lane.b32.xlu0 %v482_v42, %s6450_s24 }
  0x2b   : > { %594 = vrot.lane.b32.xlu1 %v585_v43, %s6451_s25 }
  0x2d   : > { %596 = vrot.lane.b32.xlu0 %v6527_v46, %s6451_s25 }
  0x2f   : > { %598 = vrot.lane.b32.xlu1 %v6530_v47, %s6451_s25 }
  0x31   : > { %703 = vrot.lane.b32.xlu0 %v694_v48, %s6452_s26 }
  0x33   : > { %705 = vrot.lane.b32.xlu1 %v702_v50, %s6452_s26 }
  0x35   : > { %707 = vrot.lane.b32.xlu0 %v701_v51, %s6452_s26 }
  0x37   : > { %795 = vrot.lane.b32.xlu1 %v474_v38, %s6453_s27 }
  0x39   : > { %797 = vrot.lane.b32.xlu0 %v482_v42, %s6453_s27 }
  0x3b   : > { %799 = vrot.lane.b32.xlu1 %v481_v41, %s6453_s27 }
  0x3d   : > { %971 = vrot.lane.b32.xlu0 %v702_v50, %s6454_s28 }
  0x3f   : > { %973 = vrot.lane.b32.xlu1 %v701_v51, %s6454_s28 }
  0x41   : > { %975 = vrot.lane.b32.xlu0 %v970_v52, %s6454_s28 }
  0x43   : > { %1064 = vrot.lane.b32.xlu1 %v482_v42, %s6455_s29 }
  0x45   : > { %1066 = vrot.lane.b32.xlu0 %v481_v41, %s6455_s29  ;;  %v6325_v41 = vld [vmem:[%s8013_s1 + $0x40] sm:$0xff]  }
  0x47   : > { %1068 = vrot.lane.b32.xlu1 %v1063_v53, %s6455_s29 }
  0x49   : > { %1157 = vrot.lane.b32.xlu0 %v6527_v46, %s6456_s30  ;;  %v6326_v46 = vld [vmem:[%s8013_s1 + $0x38] sm:$0xff]  }
  0x4b   : > { %1159 = vrot.lane.b32.xlu1 %v6530_v47, %s6456_s30 }
  0x4d   : > { %1161 = vrot.lane.b32.xlu0 %v1156_v54, %s6456_s30  ;;  %v6328_v54 = vld [vmem:[%s8013_s1 + $0x50] sm:$0xff]  }
  0x4f   : > { %1249 = vrot.lane.b32.xlu1 %v702_v50, %s6457_s6  ;;  %v6327_v50 = vld [vmem:[%s8013_s1 + $0x48] sm:$0xff]  }
  0x51   : > { %1251 = vrot.lane.b32.xlu0 %v701_v51, %s6457_s6 }
  0x53   : > { %1253 = vrot.lane.b32.xlu1 %v970_v52, %s6457_s6 }
  0x55   : > { %448 = vperm.xlu0 %6314, %v370_v55  }
  0x57   : > { %453 = vperm.xlu1 %6315, %v371_v56  }
  0x59   : > { %443 = vperm.xlu0 %6314, %v369_v57  }
  0x5b   : > { %438 = vperm.xlu1 %6315, %v368_v58  }
  0x97   : > { %v484_v59 = vpop.permute.xlu0 %483 }
  0x99   : > { %v488_v60 = vpop.permute.xlu1 %487 }
  0x9b   : > { %v486_v61 = vpop.permute.xlu0 %485 }
  0x9c   : > { %v491_v62 = vsel %vm489_vm9, %v486_v61, %v488_v60  ;;  %v490_v63 = vsel %vm489_vm9, %v484_v59, %v486_v61  ;;  %v6329_v59 = vld [vmem:[%s8013_s1 + $0x60] sm:$0xff]   ;;  %v6330_v61 = vld [vmem:[%s8013_s1 + $0x58] sm:$0xff]  }
  0x9d   : > { %5814 = vmatprep.subr.msk.bf16.mxu0 %vm499_vm10, %v491_v62  ;;  %6293 = vmatprep.subr.msk.bf16.mxu1 %vm499_vm10, %v491_v62  ;;  %v595_v0 = vpop.permute.xlu1 %594  ;;  %v501_v2 = vsel %vm499_vm10, %v490_v63, 0  ;;  %v6331_v62 = vld [vmem:[%s8013_s1 + $0x68] sm:$0xff]   ;;  %v6332_v63 = vld [vmem:[%s8013_s1 + $0x70] sm:$0xff]  }
  0x9e   : > { %521 = vmatpush1.bf16.msra.mxu0 %v501_v2  ;;  %6294 = vmatpush1.bf16.msra.mxu1 %v501_v2  ;;  %v6334_v2 = vld [vmem:[%s8013_s1 + $0x78] sm:$0xff]  }
  0x9f   : > { %v597_v5 = vpop.permute.xlu0 %596 }
  0xa0   : > { %v601_v6 = vsel %vm600_vm11, %v595_v0, %v597_v5  ;;  %v6333_v0 = vld [vmem:[%s8013_s1 + $0x80] sm:$0xff]  }
  0xa1   : > { %5815 = vmatmul.mubr.msk.bf16.vlgmr.msra.gmra.mxu0 %vm492_vm12, %v6318_v3  ;;  %5816 = vmatmul.mubr.msk.bf16.vlgmr.msra.gmra.mxu1 %vm492_vm12, %v6319_v4  ;;  %v599_v7 = vpop.permute.xlu1 %598  ;;  %v610_v10 = vsel %vm499_vm10, %v601_v6, 0  ;;  %v6335_v3 = vld [vmem:[%s8013_s1 + $0x88] sm:$0xff]  }
  0xa2   : > { %v602_v8 = vsel %vm600_vm11, %v597_v5, %v599_v7  ;;  %647 = vmatprep.mubr.bf16.mxu1 %v8018_v1  ;;  %756 = vmatprep.mubr.bf16.mxu0 %v8018_v1 }
  0xa3   : > { %v704_v9 = vpop.permute.xlu0 %703  ;;  %5819 = vmatprep.subr.msk.bf16.mxu1 %vm499_vm10, %v602_v8 }
  0xa4   : > { %630 = vmatpush1.bf16.msra.mxu1 %v610_v10 }
  0xa5   : > { %v706_v11 = vpop.permute.xlu1 %705 }
  0xa6   : > { %v710_v13 = vsel %vm709_vm13, %v704_v9, %v706_v11 }
  0xa7   : > { %v708_v14 = vpop.permute.xlu0 %707  ;;  %v719_v17 = vsel %vm499_vm10, %v710_v13, 0 }
  0xa8   : > { %v711_v15 = vsel %vm709_vm13, %v706_v11, %v708_v14 }
  0xa9   : > { %5820 = vmatmul.mubr.msk.bf16.vlgmr.msra.gmra.mxu1 %vm492_vm12, %v6320_v12  ;;  %5824 = vmatprep.subr.msk.bf16.mxu0 %vm499_vm10, %v711_v15  ;;  %v796_v16 = vpop.permute.xlu1 %795 }
  0xaa   : > { %739 = vmatpush1.bf16.msra.mxu0 %v719_v17  ;;  %657 = vmatprep.mubr.bf16.mxu1 %v8018_v1 }
  0xab   : > { %v798_v19 = vpop.permute.xlu0 %797  ;;  %5834 = vmatprep.subr.msk.bf16.mxu0 %vm499_vm10, %v6530_v47 }
  0xac   : > { %v802_v21 = vsel %vm801_vm14, %v796_v16, %v798_v19 }
  0xad   : > { %5825 = vmatmul.mubr.msk.bf16.vlgmr.msra.gmra.mxu0 %vm492_vm12, %v6321_v18  ;;  %v800_v22 = vpop.permute.xlu1 %799  ;;  %v811_v23 = vsel %vm499_vm10, %v802_v21, 0 }
  0xae   : > { %v803_v25 = vsel %vm801_vm14, %v798_v19, %v800_v22  ;;  %766 = vmatprep.mubr.bf16.mxu0 %v8018_v1  ;;  %914 = vmatpush1.bf16.msra.mxu0 %v894_v20 }
  0xaf   : > { %5829 = vmatprep.subr.msk.bf16.mxu1 %vm499_vm10, %v803_v25  ;;  %v972_v26 = vpop.permute.xlu0 %971 }
  0xb0   : > { %831 = vmatpush1.bf16.msra.mxu1 %v811_v23 }
  0xb1   : > { %5821 = vmatmul.mubr.msk.bf16.gmra.mxu1 %vm492_vm12, %v6322_v24  ;;  %v974_v30 = vpop.permute.xlu1 %973 }
  0xb2   : > { %848 = vmatprep.mubr.bf16.mxu1 %v8018_v1  ;;  %v978_v34 = vsel %vm977_vm15, %v972_v26, %v974_v30 }
  0xb3   : > { %v976_v33 = vpop.permute.xlu0 %975  ;;  %v987_v38 = vsel %vm499_vm10, %v978_v34, 0 }
  0xb4   : > { %v979_v35 = vsel %vm977_vm15, %v974_v30, %v976_v33 }
  0xb5   : > { %5826 = vmatmul.mubr.msk.bf16.gmra.mxu0 %vm492_vm12, %v6323_v29  ;;  %v1065_v37 = vpop.permute.xlu1 %1064  ;;  %5839 = vmatprep.subr.msk.bf16.mxu1 %vm499_vm10, %v979_v35 }
  0xb6   : > { %931 = vmatprep.mubr.bf16.mxu0 %v8018_v1 }
  0xb7   : > { %v1067_v39 = vpop.permute.xlu0 %1066 }
  0xb8   : > { %v1071_v40 = vsel %vm1070_vm0, %v1065_v37, %v1067_v39 }
  0xb9   : > { %5830 = vmatmul.mubr.msk.bf16.vlgmr.msra.gmra.mxu1 %vm492_vm12, %v6324_v36  ;;  %v1069_v42 = vpop.permute.xlu1 %1068  ;;  %v1080_v44 = vsel %vm499_vm10, %v1071_v40, 0 }
  0xba   : > { %1007 = vmatpush1.bf16.msra.mxu1 %v987_v38  ;;  %v1072_v43 = vsel %vm1070_vm0, %v1067_v39, %v1069_v42  ;;  %858 = vmatprep.mubr.bf16.mxu1 %v8018_v1 }
  0xbb   : > { %5844 = vmatprep.subr.msk.bf16.mxu0 %vm499_vm10, %v1072_v43  ;;  %v1158_v45 = vpop.permute.xlu0 %1157 }
  0xbd   : > { %5835 = vmatmul.mubr.msk.bf16.vlgmr.msra.gmra.mxu0 %vm492_vm12, %v6325_v41  ;;  %v1160_v47 = vpop.permute.xlu1 %1159 }
  0xbe   : > { %1100 = vmatpush1.bf16.msra.mxu0 %v1080_v44  ;;  %941 = vmatprep.mubr.bf16.mxu0 %v8018_v1  ;;  %v1164_v53 = vsel %vm1163_vm1, %v1158_v45, %v1160_v47 }
  0xbf   : > { %v1162_v48 = vpop.permute.xlu0 %1161  ;;  %v1173_v57 = vsel %vm499_vm10, %v1164_v53, 0 }
  0xc0   : > { %v1165_v49 = vsel %vm1163_vm1, %v1160_v47, %v1162_v48 }
  0xc1   : > { %5831 = vmatmul.mubr.msk.bf16.gmra.mxu1 %vm492_vm12, %v6326_v46  ;;  %v1250_v51 = vpop.permute.xlu1 %1249  ;;  %5849 = vmatprep.subr.msk.bf16.mxu1 %vm499_vm10, %v1165_v49 }
  0xc2   : > { %1024 = vmatprep.mubr.bf16.mxu1 %v8018_v1 }
  0xc3   : > { %v1252_v52 = vpop.permute.xlu0 %1251 }
  0xc4   : > { %v1256_v58 = vsel %vm1255_vm2, %v1250_v51, %v1252_v52 }
  0xc5   : > { %5836 = vmatmul.mubr.msk.bf16.gmra.mxu0 %vm492_vm12, %v6327_v50  ;;  %v1254_v55 = vpop.permute.xlu1 %1253  ;;  %v1265_v60 = vsel %vm499_vm10, %v1256_v58, 0 }
  0xc6   : > { %1117 = vmatprep.mubr.bf16.mxu0 %v8018_v1  ;;  %v1257_v56 = vsel %vm1255_vm2, %v1252_v52, %v1254_v55 }
  0xc7   : > { %5854 = vmatprep.subr.msk.bf16.mxu0 %vm499_vm10, %v1257_v56 }
  0xc9   : > { %5840 = vmatmul.mubr.msk.bf16.vlgmr.msra.gmra.mxu1 %vm492_vm12, %v6328_v54 }
  0xca   : > { %1193 = vmatpush1.bf16.msra.mxu1 %v1173_v57  ;;  %1034 = vmatprep.mubr.bf16.mxu1 %v8018_v1 }
  0xcd   : > { %5845 = vmatmul.mubr.msk.bf16.vlgmr.msra.gmra.mxu0 %vm492_vm12, %v6329_v59 }
  0xce   : > { %1285 = vmatpush1.bf16.msra.mxu0 %v1265_v60  ;;  %1127 = vmatprep.mubr.bf16.mxu0 %v8018_v1 }
  0xd0   : > { %v449_v47 = vpop.permute.xlu0 %448 }
  0xd1   : > { %5841 = vmatmul.mubr.msk.bf16.gmra.mxu1 %vm492_vm12, %v6330_v61 }
  0xd2   : > { %1210 = vmatprep.mubr.bf16.mxu1 %v8018_v1  ;;  %v454_v42 = vpop.permute.xlu1 %453 }
  0xd4   : > { %v444_v55 = vpop.permute.xlu0 %443 }
  0xd5   : > { %5846 = vmatmul.mubr.msk.bf16.gmra.mxu0 %vm492_vm12, %v6331_v62 }
  0xd6   : > { %1302 = vmatprep.mubr.bf16.mxu0 %v8018_v1  ;;  %v439_v50 = vpop.permute.xlu1 %438 }
  0xd9   : > { %5850 = vmatmul.mubr.msk.bf16.vlgmr.msra.gmra.mxu1 %vm492_vm12, %v6332_v63 }
  0xda   : > { %1220 = vmatprep.mubr.bf16.mxu1 %v8018_v1 }
  0xdd   : > { %5855 = vmatmul.mubr.msk.bf16.vlgmr.msra.gmra.mxu0 %vm492_vm12, %v6333_v0 }
  0xde   : > { %1312 = vmatprep.mubr.bf16.mxu0 %v8018_v1 }
  0xe1   : > { %5851 = vmatmul.mubr.msk.bf16.gmra.mxu1 %vm492_vm12, %v6334_v2 }
  0xe2   : > { %1578 = vmatprep.mubr.bf16.mxu1 %v8018_v1 }
  0xe5   : > { %5856 = vmatmul.mubr.msk.bf16.gmra.mxu0 %vm492_vm12, %v6335_v3 }
  0xe6   : > { %1701 = vmatprep.mubr.bf16.mxu0 %v8018_v1 }
 0x161   : > { %v540_v4 = vpop.f32.mrf.mxu0  ;;  %v6701_v5 = vpop.f32.mrf.mxu1 }
 0x162   : > { %v559_v56 = vadd.f32 %v540_v4, %v439_v50 }
 0x163   : > { %v542_v6 = vpop.f32.mrf.mxu0  ;;  %v6703_v7 = vpop.f32.mrf.mxu1 }
 0x164   : > { %v560_v60 = vadd.f32 %v542_v6, %v439_v50  ;;  %v563_v50 = vadd.f32 %v6701_v5, %v449_v47 }
 0x165   : > { %v6705_v8 = vpop.f32.mrf.mxu1  ;;  %v544_v9 = vpop.f32.mrf.mxu0 }
 0x166   : > { %v561_v63 = vadd.f32 %v544_v9, %v444_v55  ;;  %v564_v9 = vadd.f32 %v6703_v7, %v449_v47 }
 0x167   : > { %v6707_v10 = vpop.f32.mrf.mxu1  ;;  %v546_v12 = vpop.f32.mrf.mxu0 }
 0x168   : > { %v562_v32 = vadd.f32 %v546_v12, %v444_v55  ;;  %v566_v7 = vadd.f32 %v6707_v10, %v454_v42 }
 0x169   : > { %v649_v11 = vpop.f32.mrf.mxu1 }
 0x16a   : > { %v668_v59 = vadd.f32 %v649_v11, %v559_v56 }
 0x16b   : > { %v651_v13 = vpop.f32.mrf.mxu1 }
 0x16c   : > { %v669_v0 = vadd.f32 %v651_v13, %v560_v60 }
 0x16d   : > { %v653_v14 = vpop.f32.mrf.mxu1  ;;  %v758_v15 = vpop.f32.mrf.mxu0 }
 0x16e   : > { %v777_v2 = vadd.f32 %v758_v15, %v668_v59  ;;  %v670_v31 = vadd.f32 %v653_v14, %v561_v63 }
 0x16f   : > { %v655_v16 = vpop.f32.mrf.mxu1  ;;  %v760_v17 = vpop.f32.mrf.mxu0 }
 0x170   : > { %v778_v28 = vadd.f32 %v760_v17, %v669_v0  ;;  %v671_v4 = vadd.f32 %v655_v16, %v562_v32 }
 0x171   : > { %v6709_v18 = vpop.f32.mrf.mxu1  ;;  %v762_v19 = vpop.f32.mrf.mxu0 }
 0x172   : > { %v672_v55 = vadd.f32 %v6709_v18, %v563_v50 }
 0x173   : > { %v6711_v20 = vpop.f32.mrf.mxu1  ;;  %v764_v21 = vpop.f32.mrf.mxu0 }
 0x174   : > { %v780_v56 = vadd.f32 %v764_v21, %v671_v4  ;;  %v673_v32 = vadd.f32 %v6711_v20, %v564_v9 }
 0x175   : > { %v6713_v22 = vpop.f32.mrf.mxu1  ;;  %v6715_v23 = vpop.f32.mrf.mxu0 }
 0x176   : > { %v781_v21 = vadd.f32 %v6715_v23, %v672_v55 }
 0x177   : > { %v6717_v24 = vpop.f32.mrf.mxu1  ;;  %v6719_v25 = vpop.f32.mrf.mxu0 }
 0x178   : > { %v675_v47 = vadd.f32 %v6717_v24, %v566_v7 }
 0x179   : > { %v6721_v26 = vpop.f32.mrf.mxu0  ;;  %v850_v29 = vpop.f32.mrf.mxu1 }
 0x17a   : > { %v869_v27 = vadd.f32 %v850_v29, %v777_v2  ;;  %v565_v29 = vadd.f32 %v6705_v8, %v454_v42 }
 0x17b   : > { %v6723_v30 = vpop.f32.mrf.mxu0  ;;  %v852_v33 = vpop.f32.mrf.mxu1 }
 0x17c   : > { %v870_v11 = vadd.f32 %v852_v33, %v778_v28  ;;  %v674_v33 = vadd.f32 %v6713_v22, %v565_v29 }
 0x17d   : > { %v854_v34 = vpop.f32.mrf.mxu1  ;;  %v933_v35 = vpop.f32.mrf.mxu0 }
 0x17e   : > { %v952_v6 = vadd.f32 %v933_v35, %v869_v27 }
 0x17f   : > { %v856_v36 = vpop.f32.mrf.mxu1  ;;  %v935_v37 = vpop.f32.mrf.mxu0 }
 0x180   : > { %v953_v14 = vadd.f32 %v935_v37, %v870_v11  ;;  %v872_v27 = vadd.f32 %v856_v36, %v780_v56  ;;  %v783_v36 = vadd.f32 %v6721_v26, %v674_v33 }
 0x181   : > { %v6725_v38 = vpop.f32.mrf.mxu1  ;;  %v937_v39 = vpop.f32.mrf.mxu0 }
 0x183   : > { %v6727_v40 = vpop.f32.mrf.mxu1  ;;  %v939_v41 = vpop.f32.mrf.mxu0 }
 0x184   : > { %v955_v37 = vadd.f32 %v939_v41, %v872_v27 }
 0x185   : > { %v6729_v43 = vpop.f32.mrf.mxu1  ;;  %v6731_v44 = vpop.f32.mrf.mxu0 }
 0x186   : > { %v875_v41 = vadd.f32 %v6729_v43, %v783_v36 }
 0x187   : > { %v6733_v45 = vpop.f32.mrf.mxu1  ;;  %v6735_v46 = vpop.f32.mrf.mxu0 }
 0x188   : > { %8063 = vst [vmem:[#allocation8_spill] sm:$0xff] %v6733_v45  ;;  %v779_v45 = vadd.f32 %v762_v19, %v670_v31 }
 0x189   : > { %v6737_v48 = vpop.f32.mrf.mxu0  ;;  %v1026_v49 = vpop.f32.mrf.mxu1 }
 0x18a   : > { %8064 = vst [vmem:[#allocation9_spill] sm:$0xff] %v6737_v48  ;;  %v871_v12 = vadd.f32 %v854_v34, %v779_v45  ;;  %v1045_v17 = vadd.f32 %v1026_v49, %v952_v6  ;;  %v782_v34 = vadd.f32 %v6719_v25, %v673_v32 }
 0x18b   : > { %v6739_v51 = vpop.f32.mrf.mxu0  ;;  %v1028_v52 = vpop.f32.mrf.mxu1 }
 0x18c   : > { %8065 = vst [vmem:[#allocation10_spill] sm:$0xff] %v6739_v51  ;;  %v954_v16 = vadd.f32 %v937_v39, %v871_v12  ;;  %v1046_v5 = vadd.f32 %v1028_v52, %v953_v14  ;;  %v873_v39 = vadd.f32 %v6725_v38, %v781_v21  ;;  %v874_v10 = vadd.f32 %v6727_v40, %v782_v34 }
 0x18d   : > { %v1030_v53 = vpop.f32.mrf.mxu1  ;;  %v1119_v54 = vpop.f32.mrf.mxu0 }
 0x18e   : > { %v1138_v19 = vadd.f32 %v1119_v54, %v1045_v17  ;;  %v1047_v18 = vadd.f32 %v1030_v53, %v954_v16  ;;  %v784_v54 = vadd.f32 %v6723_v30, %v675_v47  ;;  %v956_v53 = vadd.f32 %v6731_v44, %v873_v39 }
 0x18f   : > { %v1032_v57 = vpop.f32.mrf.mxu1  ;;  %v1121_v58 = vpop.f32.mrf.mxu0  ;;  %v957_v24 = vadd.f32 %v6735_v46, %v874_v10  ;;  %v8066_v63 = vld [vmem:[#allocation8_spill] sm:$0xff] }
 0x190   : > { %v1139_v45 = vadd.f32 %v1121_v58, %v1046_v5  ;;  %v1048_v49 = vadd.f32 %v1032_v57, %v955_v37  ;;  %v876_v0 = vadd.f32 %v8066_v63, %v784_v54 }
 0x191   : > { %v6741_v61 = vpop.f32.mrf.mxu1  ;;  %v1123_v62 = vpop.f32.mrf.mxu0  ;;  %v8067_v57 = vld [vmem:[#allocation9_spill] sm:$0xff] }
 0x192   : > { %v1140_v23 = vadd.f32 %v1123_v62, %v1047_v18  ;;  %v958_v62 = vadd.f32 %v8067_v57, %v875_v41  ;;  %v1049_v2 = vadd.f32 %v6741_v61, %v956_v53 }
 0x193   : > { %v1038_v3 = vpop.f32.mrf.mxu1  ;;  %v1125_v1 = vpop.f32.mrf.mxu0  ;;  %v8068_v50 = vld [vmem:[#allocation10_spill] sm:$0xff] }
 0x194   : > { %v1141_v59 = vadd.f32 %v1125_v1, %v1048_v49  ;;  %v1050_v4 = vadd.f32 %v1038_v3, %v957_v24  ;;  %v959_v46 = vadd.f32 %v8068_v50, %v876_v0  ;;  %v8078_v0 = vld [vmem:[#allocation5_spill] sm:$0xff] }
 0x195   : > { %v6743_v51 = vpop.f32.mrf.mxu1  ;;  %v6745_v48 = vpop.f32.mrf.mxu0 }
 0x196   : > { %v1051_v9 = vadd.f32 %v6743_v51, %v958_v62  ;;  %v1142_v1 = vadd.f32 %v6745_v48, %v1049_v2 }
 0x197   : > { %v6749_v13 = vpop.f32.mrf.mxu1  ;;  %v1131_v15 = vpop.f32.mrf.mxu0 }
 0x198   : > { %v1143_v56 = vadd.f32 %v1131_v15, %v1050_v4  ;;  %v1052_v55 = vadd.f32 %v6749_v13, %v959_v46 }
 0x199   : > { %v1133_v31 = vpop.f32.mrf.mxu0  ;;  %v1212_v28 = vpop.f32.mrf.mxu1 }
 0x19a   : > { %v1231_v20 = vadd.f32 %v1212_v28, %v1138_v19  ;;  %v1144_v16 = vadd.f32 %v1133_v31, %v1051_v9 }
 0x19b   : > { %v1135_v35 = vpop.f32.mrf.mxu0  ;;  %v1214_v8 = vpop.f32.mrf.mxu1 }
 0x19c   : > { %v1232_v52 = vadd.f32 %v1214_v8, %v1139_v45  ;;  %v1145_v15 = vadd.f32 %v1135_v35, %v1052_v55 }
 0x19d   : > { %v1216_v42 = vpop.f32.mrf.mxu1  ;;  %v1304_v22 = vpop.f32.mrf.mxu0 }
 0x19e   : > { %v1323_v25 = vadd.f32 %v1304_v22, %v1231_v20  ;;  %v1233_v38 = vadd.f32 %v1216_v42, %v1140_v23 }
 0x19f   : > { %v1218_v58 = vpop.f32.mrf.mxu1  ;;  %v1306_v26 = vpop.f32.mrf.mxu0 }
 0x1a0   : > { %v1331_v60 = vmul.f32 0.1, %v1323_v25  ;;  %v1324_v40 = vadd.f32 %v1306_v26, %v1232_v52  ;;  %v1234_v43 = vadd.f32 %v1218_v58, %v1141_v59  ;;  %v8077_v59 = vld [vmem:[#allocation4_spill] sm:$0xff] }
 0x1a1   : > { %v1222_v30 = vpop.f32.mrf.mxu1  ;;  %v1308_v11 = vpop.f32.mrf.mxu0 }
 0x1a2   : > { %v1332_v6 = vmul.f32 0.1, %v1324_v40  ;;  %v1325_v44 = vadd.f32 %v1308_v11, %v1233_v38  ;;  %v6772_v17 = vmax.f32 %v1323_v25, %v1331_v60  ;;  %v1235_v32 = vadd.f32 %v1222_v30, %v1142_v1  ;;  %v8079_v30 = vld [vmem:[#allocation6_spill] sm:$0xff] }
 0x1a3   : > { %v1224_v12 = vpop.f32.mrf.mxu1  ;;  %v1310_v14 = vpop.f32.mrf.mxu0 }
 0x1a4   : > { %8069 = vst [vmem:[#allocation8_spill] sm:$0xff] %v6772_v17  ;;  %v6774_v29 = vmax.f32 %v1324_v40, %v1332_v6  ;;  %v1333_v61 = vmul.f32 0.1, %v1325_v44  ;;  %v1326_v3 = vadd.f32 %v1310_v14, %v1234_v43  ;;  %v1236_v5 = vadd.f32 %v1224_v12, %v1143_v56 }
 0x1a5   : > { %v1226_v28 = vpop.f32.mrf.mxu1  ;;  %v1314_v27 = vpop.f32.mrf.mxu0 }
 0x1a6   : > { %8070 = vst [vmem:[#allocation9_spill] sm:$0xff] %v6774_v29  ;;  %v6273_v51 = vpack.c.bf16 %v6774_v29, %v6772_v17  ;;  %v1334_v48 = vmul.f32 0.1, %v1326_v3  ;;  %v1327_v19 = vadd.f32 %v1314_v27, %v1235_v32  ;;  %v6779_v21 = vmax.f32 %v1325_v44, %v1333_v61 }
 0x1a7   : > { %v1228_v7 = vpop.f32.mrf.mxu1  ;;  %v1316_v33 = vpop.f32.mrf.mxu0  ;;  %v1237_v8 = vadd.f32 %v1226_v28, %v1144_v16 }
 0x1a8   : > { %1419 = vst [vmem:[#allocation3 + $0x4] sm:$0xff] %v6273_v51  ;;  %8071 = vst [vmem:[#allocation10_spill] sm:$0xff] %v6779_v21  ;;  %v6781_v34 = vmax.f32 %v1326_v3, %v1334_v48  ;;  %v1328_v13 = vadd.f32 %v1316_v33, %v1236_v5  ;;  %v1335_v37 = vmul.f32 0.1, %v1327_v19  ;;  %v1238_v45 = vadd.f32 %v1228_v7, %v1145_v15  ;;  %v8080_v51 = vld [vmem:[#allocation7_spill] sm:$0xff] }
 0x1a9   : > { %v1318_v18 = vpop.f32.mrf.mxu0 }
 0x1aa   : > { %8072 = vst [vmem:[#allocation11_spill] sm:$0xff] %v6781_v34  ;;  %v6274_v31 = vpack.c.bf16 %v6781_v34, %v6779_v21  ;;  %v1336_v20 = vmul.f32 0.1, %v1328_v13  ;;  %v1329_v47 = vadd.f32 %v1318_v18, %v1237_v8  ;;  %v6785_v35 = vmax.f32 %v1327_v19, %v1335_v37 }
 0x1ab   : > { %v1320_v36 = vpop.f32.mrf.mxu0 }
 0x1ac   : > { %1420 = vst [vmem:[#allocation3 + $0x14] sm:$0xff] %v6274_v31  ;;  %8073 = vst [vmem:[#allocation12_spill] sm:$0xff] %v6785_v35  ;;  %v6787_v39 = vmax.f32 %v1328_v13, %v1336_v20  ;;  %v1337_v10 = vmul.f32 0.1, %v1329_v47  ;;  %v1330_v42 = vadd.f32 %v1320_v36, %v1238_v45 }
 0x1ae   : > { %8074 = vst [vmem:[#allocation13_spill] sm:$0xff] %v6787_v39  ;;  %v6275_v22 = vpack.c.bf16 %v6787_v39, %v6785_v35  ;;  %v1338_v49 = vmul.f32 0.1, %v1330_v42  ;;  %v6791_v23 = vmax.f32 %v1329_v47, %v1337_v10 }
 0x1af   : > { %v6797_v54 = vld [vmem:[#allocation3 + $0x8] sm:$0xff]  ;;  %v1423_v53 = vld [vmem:[#allocation3] sm:$0xff] }
 0x1b0   : > { %1421 = vst [vmem:[#allocation3 + $0x24] sm:$0xff] %v6275_v22  ;;  %8075 = vst [vmem:[#allocation14_spill] sm:$0xff] %v6791_v23  ;;  %v6793_v52 = vmax.f32 %v1330_v42, %v1338_v49  ;;  %v1439_v60 = vmul.bf16 %v8077_v59, %v1423_v53  ;;  %v1440_v62 = vmul.bf16 %v8078_v0, %v6797_v54  ;;  %v1393_v42 = vld [vmem:[%s8016_s4 + $0x10] sm:$0xff]  ;;  %v1394_v22 = vld [vmem:[%s8016_s4 + $0x18] sm:$0xff] }
 0x1b1   : > { %v1455_v6 = vmul.bf16 %v8079_v30, %v1423_v53  ;;  %v1456_v48 = vmul.bf16 %v8080_v51, %v6797_v54  ;;  %v1391_v49 = vld [vmem:[%s8016_s4] sm:$0xff] }
 0x1b2   : > { %8076 = vst [vmem:[#allocation15_spill] sm:$0xff] %v6793_v52  ;;  %v6276_v25 = vpack.c.bf16 %v6793_v52, %v6791_v23 }
 0x1b3   : > { %v6799_v41 = vld [vmem:[#allocation3 + $0x18] sm:$0xff]  ;;  %v1425_v24 = vld [vmem:[#allocation3 + $0x10] sm:$0xff] }
 0x1b4   : > { %1422 = vst [vmem:[#allocation3 + $0x34] sm:$0xff] %v6276_v25  ;;  %v6803_v58 = vcombine.low %v6797_v54, %v6799_v41  ;;  %v6805_v26 = vcombine.high %v1423_v53, %v1425_v24  ;;  %v1441_v38 = vmul.bf16 %v8077_v59, %v1425_v24  ;;  %v5909_v40 = vcombine.low %v1423_v53, %v1425_v24  ;;  %v1392_v25 = vld [vmem:[%s8016_s4 + $0x8] sm:$0xff] }
 0x1b5   : > { %v1442_v57 = vmul.bf16 %v8078_v0, %v6799_v41  ;;  %v1457_v11 = vmul.bf16 %v8079_v30, %v1425_v24  ;;  %v1458_v5 = vmul.bf16 %v8080_v51, %v6799_v41  ;;  %v5949_v10 = vcombine.high %v6797_v54, %v6799_v41 }
 0x1b6   : > { %1647 = vrot.lane.b32.xlu0 %v6803_v58, %s6451_s25  ;;  %1645 = vrot.lane.b32.xlu1 %v6805_v26, %s6451_s25  ;;  %v5900_v63 = vcombine.high %v1439_v60, %v1441_v38  ;;  %v5899_v4 = vcombine.low %v1439_v60, %v1441_v38 }
 0x1b7   : > { %v5901_v2 = vcombine.low %v1440_v62, %v1442_v57  ;;  %v1427_v44 = vld [vmem:[#allocation3 + $0x20] sm:$0xff]  ;;  %v6825_v46 = vcombine.high %v1455_v6, %v1457_v11  ;;  %v1428_v1 = vld [vmem:[#allocation3 + $0x28] sm:$0xff]  ;;  %v5919_v16 = vcombine.low %v1455_v6, %v1457_v11  ;;  %v5921_v15 = vcombine.low %v1456_v48, %v1458_v5 }
 0x1b8   : > { %v1443_v3 = vmul.bf16 %v8077_v59, %v1427_v44  ;;  %v1444_v55 = vmul.bf16 %v8078_v0, %v1428_v1  ;;  %v1459_v7 = vmul.bf16 %v8079_v30, %v1427_v44  ;;  %v1460_v13 = vmul.bf16 %v8080_v51, %v1428_v1 }
 0x1b9   : > { %v5937_v31 = vcombine.high %v1456_v48, %v1458_v5  ;;  %v5943_v45 = vcombine.high %v1440_v62, %v1442_v57 }
 0x1ba   : > { %1643 = vrot.lane.b32.xlu1 %v5909_v40, %s6451_s25  ;;  %1521 = vrot.lane.b32.xlu0 %v5900_v63, %s6450_s24 }
 0x1bb   : > { %v1429_v43 = vld [vmem:[#allocation3 + $0x30] sm:$0xff]  ;;  %v1430_v9 = vld [vmem:[#allocation3 + $0x38] sm:$0xff] }
 0x1bc   : > { %v6823_v50 = vcombine.high %v1427_v44, %v1429_v43  ;;  %v5912_v56 = vcombine.low %v1427_v44, %v1429_v43  ;;  %v6831_v12 = vcombine.low %v1428_v1, %v1430_v9  ;;  %v1445_v14 = vmul.bf16 %v8077_v59, %v1429_v43 }
 0x1bd   : > { %v1446_v61 = vmul.bf16 %v8078_v0, %v1430_v9  ;;  %v1461_v19 = vmul.bf16 %v8079_v30, %v1429_v43  ;;  %v1462_v8 = vmul.bf16 %v8080_v51, %v1430_v9  ;;  %v5950_v20 = vcombine.high %v1428_v1, %v1430_v9  ;;  %v6344_v9 = vld [vmem:[%s8015_s3 + $0x10] sm:$0xff]  }
 0x1be   : > { %1523 = vrot.lane.b32.xlu1 %v5901_v2, %s6450_s24  ;;  %1519 = vrot.lane.b32.xlu0 %v5899_v4, %s6450_s24  ;;  %v5903_v32 = vcombine.high %v1443_v3, %v1445_v14  ;;  %v5902_v27 = vcombine.low %v1443_v3, %v1445_v14  ;;  %v8081_v3 = vmov 0  }
 0x1bf   : > { %v5904_v28 = vcombine.low %v1444_v55, %v1446_v61  ;;  %v5923_v33 = vcombine.high %v1459_v7, %v1461_v19  ;;  %v5924_v37 = vcombine.low %v1460_v13, %v1462_v8  ;;  %v5922_v18 = vcombine.low %v1459_v7, %v1461_v19  ;;  %v6345_v7 = vld [vmem:[%s8015_s3 + $0x8] sm:$0xff]  }
 0x1c0   : > { %v5938_v47 = vcombine.high %v1460_v13, %v1462_v8  ;;  %v5944_v36 = vcombine.high %v1444_v55, %v1446_v61 }
 0x1c2   : > { %1651 = vrot.lane.b32.xlu1 %v6823_v50, %s6451_s25  ;;  %1768 = vrot.lane.b32.xlu0 %v6825_v46, %s6452_s26 }
 0x1c6   : > { %1649 = vrot.lane.b32.xlu1 %v5912_v56, %s6451_s25  ;;  %1653 = vrot.lane.b32.xlu0 %v6831_v12, %s6451_s25 }
 0x1ca   : > { %1527 = vrot.lane.b32.xlu1 %v5903_v32, %s6450_s24  ;;  %1529 = vrot.lane.b32.xlu0 %v5904_v28, %s6450_s24 }
 0x1ce   : > { %1525 = vrot.lane.b32.xlu1 %v5902_v27, %s6450_s24  ;;  %1766 = vrot.lane.b32.xlu0 %v5919_v16, %s6452_s26  ;;  %v6346_v16 = vld [vmem:[%s8015_s3 + $0x18] sm:$0xff]  }
 0x1d2   : > { %1770 = vrot.lane.b32.xlu1 %v5921_v15, %s6452_s26  ;;  %1865 = vrot.lane.b32.xlu0 %v5900_v63, %s6453_s27 }
 0x1d6   : > { %1867 = vrot.lane.b32.xlu1 %v5901_v2, %s6453_s27  ;;  %1863 = vrot.lane.b32.xlu0 %v5899_v4, %s6453_s27 }
 0x1da   : > { %2049 = vrot.lane.b32.xlu1 %v5921_v15, %s6454_s28  ;;  %1774 = vrot.lane.b32.xlu0 %v5923_v33, %s6452_s26 }
 0x1de   : > { %1776 = vrot.lane.b32.xlu1 %v5924_v37, %s6452_s26  ;;  %1772 = vrot.lane.b32.xlu0 %v5922_v18, %s6452_s26 }
 0x1e2   : > { %2047 = vrot.lane.b32.xlu1 %v6825_v46, %s6454_s28  ;;  %2051 = vrot.lane.b32.xlu0 %v5937_v31, %s6454_s28 }
 0x1e6   : > { %1871 = vrot.lane.b32.xlu1 %v5903_v32, %s6453_s27  ;;  %2152 = vrot.lane.b32.xlu0 %v5901_v2, %s6455_s29 }
 0x1ea   : > { %1869 = vrot.lane.b32.xlu1 %v5902_v27, %s6453_s27  ;;  %1873 = vrot.lane.b32.xlu0 %v5904_v28, %s6453_s27  ;;  %v6343_v27 = vld [vmem:[%s8015_s3] sm:$0xff]  }
 0x1ee   : > { %2154 = vrot.lane.b32.xlu1 %v5943_v45, %s6455_s29  ;;  %2150 = vrot.lane.b32.xlu0 %v5900_v63, %s6455_s29 }
 0x1f2   : > { %2261 = vrot.lane.b32.xlu1 %v6831_v12, %s6456_s30  ;;  %2263 = vrot.lane.b32.xlu0 %v5950_v20, %s6456_s30 }
 0x1f6   : > { %2055 = vrot.lane.b32.xlu1 %v5924_v37, %s6454_s28  ;;  %2057 = vrot.lane.b32.xlu0 %v5938_v47, %s6454_s28 }
 0x1fa   : > { %2053 = vrot.lane.b32.xlu1 %v5923_v33, %s6454_s28  ;;  %2158 = vrot.lane.b32.xlu0 %v5904_v28, %s6455_s29 }
 0x1fe   : > { %2160 = vrot.lane.b32.xlu1 %v5944_v36, %s6455_s29  ;;  %2156 = vrot.lane.b32.xlu0 %v5903_v32, %s6455_s29 }
 0x202   : > { %2259 = vrot.lane.b32.xlu1 %v6823_v50, %s6456_s30  ;;  %2257 = vrot.lane.b32.xlu0 %v5949_v10, %s6456_s30 }
 0x206   : > { %2255 = vrot.lane.b32.xlu1 %v6803_v58, %s6456_s30  ;;  %2352 = vrot.lane.b32.xlu0 %v5921_v15, %s6457_s6 }
 0x20a   : > { %2253 = vrot.lane.b32.xlu1 %v6805_v26, %s6456_s30  ;;  %2358 = vrot.lane.b32.xlu0 %v5924_v37, %s6457_s6 }
 0x20e   : > { %2360 = vrot.lane.b32.xlu1 %v5938_v47, %s6457_s6  ;;  %2356 = vrot.lane.b32.xlu0 %v5923_v33, %s6457_s6  ;;  %v6347_v47 = vld [vmem:[%s8015_s3 + $0x20] sm:$0xff]  }
 0x212   : > { %2354 = vrot.lane.b32.xlu1 %v5937_v31, %s6457_s6  ;;  %2350 = vrot.lane.b32.xlu0 %v6825_v46, %s6457_s6 }
 0x216   : > { %1475 = vperm.xlu1 %6315, %v1393_v42   ;;  %1480 = vperm.xlu0 %6314, %v1394_v22  }
 0x21a   : > { %1465 = vperm.xlu1 %6315, %v1391_v49   ;;  %1470 = vperm.xlu0 %6314, %v1392_v25  }
 0x228   : > { %v1648_v54 = vpop.permute.xlu0 %1647  ;;  %v1646_v41 = vpop.permute.xlu1 %1645 }
 0x229   : > { %v1656_v11 = vsel %vm600_vm11, %v1646_v41, %v1648_v54 }
 0x22c   : > { %v1644_v53 = vpop.permute.xlu1 %1643  ;;  %v1522_v24 = vpop.permute.xlu0 %1521 }
 0x22d   : > { %v1655_v46 = vsel %vm600_vm11, %v1644_v53, %v1646_v41  ;;  %v6349_v53 = vld [vmem:[%s8015_s3 + $0x30] sm:$0xff]  }
 0x230   : > { %v1524_v38 = vpop.permute.xlu1 %1523  ;;  %v1520_v60 = vpop.permute.xlu0 %1519 }
 0x231   : > { %v1532_v61 = vsel %vm489_vm9, %v1522_v24, %v1524_v38  ;;  %v1531_v28 = vsel %vm489_vm9, %v1520_v60, %v1522_v24 }
 0x234   : > { %v1652_v40 = vpop.permute.xlu1 %1651  ;;  %v1769_v63 = vpop.permute.xlu0 %1768 }
 0x238   : > { %v1650_v57 = vpop.permute.xlu1 %1649  ;;  %v1654_v62 = vpop.permute.xlu0 %1653 }
 0x239   : > { %v1657_v2 = vsel %vm600_vm11, %v1650_v57, %v1652_v40  ;;  %v1658_v4 = vsel %vm600_vm11, %v1652_v40, %v1654_v62  ;;  %v6351_v57 = vld [vmem:[%s8015_s3 + $0x38] sm:$0xff]  }
 0x23a   : > { %1681 = vmatprep.subr.bf16.mxu0 %v1658_v4 }
 0x23b   : > { %1682 = vmatpush1.bf16.msra.mxu0 %v1657_v2 }
 0x23c   : > { %v1528_v43 = vpop.permute.xlu1 %1527  ;;  %1683 = vmatprep.subr.bf16.mxu0 %v1656_v11  ;;  %v1530_v6 = vpop.permute.xlu0 %1529  ;;  %v6352_v11 = vld [vmem:[%s8015_s3 + $0x48] sm:$0xff]  }
 0x23d   : > { %v1534_v44 = vsel %vm489_vm9, %v1528_v43, %v1530_v6 }
 0x23e   : > { %1558 = vmatprep.subr.bf16.mxu1 %v1534_v44 }
 0x23f   : > { %1684 = vmatpush1.bf16.msra.mxu0 %v1655_v46 }
 0x240   : > { %v1526_v1 = vpop.permute.xlu1 %1525  ;;  %v1767_v56 = vpop.permute.xlu0 %1766 }
 0x241   : > { %v1533_v14 = vsel %vm489_vm9, %v1526_v1, %v1528_v43  ;;  %v1778_v20 = vsel %vm709_vm13, %v1767_v56, %v1769_v63  ;;  %v6353_v56 = vld [vmem:[%s8015_s3 + $0x50] sm:$0xff]  }
 0x242   : > { %1559 = vmatpush1.bf16.msra.mxu1 %v1533_v14  ;;  %5915 = vmatmul.mubr.msk.bf16.vlgmr.msra.gmra.mxu0 %vm1539_vm4, %v6344_v9 }
 0x243   : > { %1560 = vmatprep.subr.bf16.mxu1 %v1532_v61  ;;  %1711 = vmatprep.mubr.bf16.mxu0 %v8081_v3 }
 0x244   : > { %v1771_v55 = vpop.permute.xlu1 %1770  ;;  %v1866_v32 = vpop.permute.xlu0 %1865 }
 0x245   : > { %v1779_v18 = vsel %vm709_vm13, %v1769_v63, %v1771_v55 }
 0x246   : > { %1561 = vmatpush1.bf16.msra.mxu1 %v1531_v28 }
 0x248   : > { %v1868_v5 = vpop.permute.xlu1 %1867  ;;  %v1864_v48 = vpop.permute.xlu0 %1863 }
 0x249   : > { %5905 = vmatmul.mubr.msk.bf16.vlgmr.msra.gmra.mxu1 %vm1539_vm4, %v6343_v27 }
 0x24a   : > { %1588 = vmatprep.mubr.bf16.mxu1 %v8081_v3  ;;  %5916 = vmatmul.mubr.msk.bf16.gmra.mxu0 %vm1539_vm4, %v6346_v16  ;;  %v6354_v16 = vld [vmem:[%s8015_s3 + $0x60] sm:$0xff]  }
 0x24b   : > { %1921 = vmatprep.mubr.bf16.mxu0 %v8081_v3 }
 0x24c   : > { %v6929_v15 = vpop.permute.xlu1 %2049  ;;  %v1775_v19 = vpop.permute.xlu0 %1774 }
 0x250   : > { %v1777_v33 = vpop.permute.xlu1 %1776  ;;  %v1773_v8 = vpop.permute.xlu0 %1772 }
 0x251   : > { %v1780_v13 = vsel %vm709_vm13, %v1773_v8, %v1775_v19  ;;  %5906 = vmatmul.mubr.msk.bf16.gmra.mxu1 %vm1539_vm4, %v6345_v7  ;;  %v1781_v37 = vsel %vm709_vm13, %v1775_v19, %v1777_v33  ;;  %v6355_v19 = vld [vmem:[%s8015_s3 + $0x58] sm:$0xff]  }
 0x252   : > { %1804 = vmatprep.subr.bf16.mxu1 %v1781_v37  ;;  %1824 = vmatprep.mubr.bf16.mxu1 %v8081_v3 }
 0x253   : > { %1805 = vmatpush1.bf16.msra.mxu1 %v1780_v13  ;;  %v6356_v13 = vld [vmem:[%s8015_s3 + $0x68] sm:$0xff]  }
 0x254   : > { %v2048_v31 = vpop.permute.xlu1 %2047  ;;  %1806 = vmatprep.subr.bf16.mxu1 %v1779_v18  ;;  %v2052_v45 = vpop.permute.xlu0 %2051 }
 0x255   : > { %v2060_v43 = vsel %vm977_vm15, %v6929_v15, %v2052_v45  ;;  %v2059_v1 = vsel %vm977_vm15, %v2048_v31, %v6929_v15 }
 0x257   : > { %1807 = vmatpush1.bf16.msra.mxu1 %v1778_v20  ;;  %v6357_v20 = vld [vmem:[%s8015_s3 + $0x70] sm:$0xff]  }
 0x258   : > { %v1872_v36 = vpop.permute.xlu1 %1871  ;;  %1982 = vmatprep.subr.bf16.mxu1 %v6831_v12  ;;  %v2153_v10 = vpop.permute.xlu0 %2152  ;;  %v6348_v12 = vld [vmem:[%s8015_s3 + $0x28] sm:$0xff]  }
 0x25a   : > { %5925 = vmatmul.mubr.msk.bf16.vlgmr.msra.gmra.mxu1 %vm1539_vm4, %v6347_v47 }
 0x25b   : > { %1983 = vmatpush1.bf16.msra.mxu1 %v6823_v50  ;;  %1834 = vmatprep.mubr.bf16.mxu1 %v8081_v3  ;;  %v1876_v50 = vsel %vm801_vm14, %v1866_v32, %v1868_v5 }
 0x25c   : > { %v1870_v42 = vpop.permute.xlu1 %1869  ;;  %1984 = vmatprep.subr.bf16.mxu1 %v6803_v58  ;;  %v1874_v22 = vpop.permute.xlu0 %1873  ;;  %v1875_v58 = vsel %vm801_vm14, %v1864_v48, %v1866_v32 }
 0x25d   : > { %v1877_v49 = vsel %vm801_vm14, %v1870_v42, %v1872_v36  ;;  %v1878_v25 = vsel %vm801_vm14, %v1872_v36, %v1874_v22  ;;  %v6358_v22 = vld [vmem:[%s8015_s3 + $0x80] sm:$0xff]  }
 0x25e   : > { %1901 = vmatprep.subr.bf16.mxu0 %v1878_v25  ;;  %v6360_v25 = vld [vmem:[%s8015_s3 + $0x88] sm:$0xff]  }
 0x25f   : > { %1902 = vmatpush1.bf16.msra.mxu0 %v1877_v49  ;;  %1985 = vmatpush1.bf16.msra.mxu1 %v6805_v26  ;;  %v6350_v26 = vld [vmem:[%s8015_s3 + $0x40] sm:$0xff]   ;;  %v6359_v49 = vld [vmem:[%s8015_s3 + $0x78] sm:$0xff]  }
 0x260   : > { %v2155_v54 = vpop.permute.xlu1 %2154  ;;  %1903 = vmatprep.subr.bf16.mxu0 %v1876_v50  ;;  %v2151_v41 = vpop.permute.xlu0 %2150 }
 0x261   : > { %v2163_v61 = vsel %vm1070_vm0, %v2153_v10, %v2155_v54  ;;  %v2162_v27 = vsel %vm1070_vm0, %v2151_v41, %v2153_v10 }
 0x262   : > { %5926 = vmatmul.mubr.msk.bf16.gmra.mxu1 %vm1539_vm4, %v6348_v12 }
 0x263   : > { %1904 = vmatpush1.bf16.msra.mxu0 %v1875_v58  ;;  %2002 = vmatprep.mubr.bf16.mxu1 %v8081_v3 }
 0x264   : > { %v2262_v24 = vpop.permute.xlu1 %2261  ;;  %v2264_v38 = vpop.permute.xlu0 %2263 }
 0x265   : > { %v2268_v14 = vsel %vm1163_vm1, %v2262_v24, %v2264_v38 }
 0x266   : > { %5929 = vmatmul.mubr.msk.bf16.vlgmr.msra.gmra.mxu0 %vm1539_vm4, %v6349_v53 }
 0x267   : > { %1931 = vmatprep.mubr.bf16.mxu0 %v8081_v3 }
 0x268   : > { %v2056_v60 = vpop.permute.xlu1 %2055  ;;  %v2058_v40 = vpop.permute.xlu0 %2057 }
 0x269   : > { %v2062_v63 = vsel %vm977_vm15, %v2056_v60, %v2058_v40 }
 0x26a   : > { %5933 = vmatmul.mubr.msk.bf16.vlgmr.msra.gmra.mxu1 %vm1539_vm4, %v6350_v26  ;;  %2085 = vmatprep.subr.bf16.mxu0 %v2062_v63 }
 0x26b   : > { %2012 = vmatprep.mubr.bf16.mxu1 %v8081_v3 }
 0x26c   : > { %v2054_v62 = vpop.permute.xlu1 %2053  ;;  %v2159_v2 = vpop.permute.xlu0 %2158 }
 0x26d   : > { %v2061_v4 = vsel %vm977_vm15, %v2054_v62, %v2056_v60 }
 0x26e   : > { %5930 = vmatmul.mubr.msk.bf16.gmra.mxu0 %vm1539_vm4, %v6351_v57 }
 0x26f   : > { %2086 = vmatpush1.bf16.msra.mxu0 %v2061_v4  ;;  %2105 = vmatprep.mubr.bf16.mxu0 %v8081_v3 }
 0x270   : > { %2087 = vmatprep.subr.bf16.mxu0 %v2060_v43  ;;  %v2161_v6 = vpop.permute.xlu1 %2160  ;;  %v2157_v44 = vpop.permute.xlu0 %2156 }
 0x271   : > { %v2164_v46 = vsel %vm1070_vm0, %v2157_v44, %v2159_v2  ;;  %v2165_v9 = vsel %vm1070_vm0, %v2159_v2, %v2161_v6 }
 0x272   : > { %5934 = vmatmul.mubr.msk.bf16.gmra.mxu1 %vm1539_vm4, %v6352_v11  ;;  %2188 = vmatprep.subr.bf16.mxu1 %v2165_v9 }
 0x273   : > { %2088 = vmatpush1.bf16.msra.mxu0 %v2059_v1  ;;  %2189 = vmatpush1.bf16.msra.mxu1 %v2164_v46 }
 0x274   : > { %2291 = vmatprep.subr.bf16.mxu0 %v2268_v14  ;;  %v2260_v55 = vpop.permute.xlu1 %2259  ;;  %2190 = vmatprep.subr.bf16.mxu1 %v2163_v61  ;;  %v2258_v32 = vpop.permute.xlu0 %2257 }
 0x275   : > { %v2267_v28 = vsel %vm1163_vm1, %v2260_v55, %v2262_v24  ;;  %2208 = vmatprep.mubr.bf16.mxu1 %v8081_v3 }
 0x276   : > { %5939 = vmatmul.mubr.msk.bf16.vlgmr.msra.gmra.mxu0 %vm1539_vm4, %v6353_v56 }
 0x277   : > { %2292 = vmatpush1.bf16.msra.mxu0 %v2267_v28  ;;  %2191 = vmatpush1.bf16.msra.mxu1 %v2162_v27 }
 0x278   : > { %v2256_v5 = vpop.permute.xlu1 %2255  ;;  %v2353_v48 = vpop.permute.xlu0 %2352  ;;  %2115 = vmatprep.mubr.bf16.mxu0 %v8081_v3 }
 0x279   : > { %v2266_v15 = vsel %vm1163_vm1, %v2256_v5, %v2258_v32 }
 0x27a   : > { %5945 = vmatmul.mubr.msk.bf16.vlgmr.msra.gmra.mxu1 %vm1539_vm4, %v6354_v16  ;;  %2293 = vmatprep.subr.bf16.mxu0 %v2266_v15 }
 0x27b   : > { %2218 = vmatprep.mubr.bf16.mxu1 %v8081_v3 }
 0x27c   : > { %v2254_v7 = vpop.permute.xlu1 %2253  ;;  %v2359_v33 = vpop.permute.xlu0 %2358 }
 0x27d   : > { %v2265_v8 = vsel %vm1163_vm1, %v2254_v7, %v2256_v5 }
 0x27e   : > { %5940 = vmatmul.mubr.msk.bf16.gmra.mxu0 %vm1539_vm4, %v6355_v19 }
 0x27f   : > { %2294 = vmatpush1.bf16.msra.mxu0 %v2265_v8  ;;  %2311 = vmatprep.mubr.bf16.mxu0 %v8081_v3 }
 0x280   : > { %v2361_v37 = vpop.permute.xlu1 %2360  ;;  %v2357_v18 = vpop.permute.xlu0 %2356 }
 0x281   : > { %v2364_v31 = vsel %vm1255_vm2, %v2357_v18, %v2359_v33  ;;  %v2365_v45 = vsel %vm1255_vm2, %v2359_v33, %v2361_v37 }
 0x282   : > { %5946 = vmatmul.mubr.msk.bf16.gmra.mxu1 %vm1539_vm4, %v6356_v13  ;;  %2388 = vmatprep.subr.bf16.mxu1 %v2365_v45 }
 0x283   : > { %2389 = vmatpush1.bf16.msra.mxu1 %v2364_v31  ;;  %2408 = vmatprep.mubr.bf16.mxu1 %v8081_v3 }
 0x284   : > { %v2355_v47 = vpop.permute.xlu1 %2354  ;;  %v2351_v36 = vpop.permute.xlu0 %2350 }
 0x285   : > { %v2362_v10 = vsel %vm1255_vm2, %v2351_v36, %v2353_v48  ;;  %v2363_v42 = vsel %vm1255_vm2, %v2353_v48, %v2355_v47 }
 0x286   : > { %5951 = vmatmul.mubr.msk.bf16.vlgmr.msra.gmra.mxu0 %vm1539_vm4, %v6357_v20  ;;  %2390 = vmatprep.subr.bf16.mxu1 %v2363_v42 }
 0x287   : > { %2391 = vmatpush1.bf16.msra.mxu1 %v2362_v10  ;;  %2321 = vmatprep.mubr.bf16.mxu0 %v8081_v3 }
 0x28a   : > { %5955 = vmatmul.mubr.msk.bf16.vlgmr.msra.gmra.mxu1 %vm1539_vm4, %v6358_v22 }
 0x28b   : > { %2418 = vmatprep.mubr.bf16.mxu1 %v8081_v3 }
 0x28e   : > { %5952 = vmatmul.mubr.msk.bf16.gmra.mxu0 %vm1539_vm4, %v6359_v49 }
 0x28f   : > { %2661 = vmatprep.mubr.bf16.mxu0 %v8081_v3 }
 0x291   : > { %v1476_v19 = vpop.permute.xlu1 %1475  ;;  %v1481_v37 = vpop.permute.xlu0 %1480 }
 0x292   : > { %5956 = vmatmul.mubr.msk.bf16.gmra.mxu1 %vm1539_vm4, %v6360_v25 }
 0x293   : > { %2784 = vmatprep.mubr.bf16.mxu1 %v8081_v3 }
 0x295   : > { %v1466_v45 = vpop.permute.xlu1 %1465  ;;  %v1471_v22 = vpop.permute.xlu0 %1470 }
 0x302   : > { %v1703_v12 = vpop.f32.mrf.mxu0 }
 0x304   : > { %v1705_v41 = vpop.f32.mrf.mxu0 }
 0x306   : > { %v1707_v24 = vpop.f32.mrf.mxu0 }
 0x308   : > { %v1709_v60 = vpop.f32.mrf.mxu0 }
 0x309   : > { %v1580_v50 = vpop.f32.mrf.mxu1 }
 0x30a   : > { %v1713_v57 = vpop.f32.mrf.mxu0  ;;  %v1599_v36 = vadd.f32 %v1580_v50, %v1466_v45 }
 0x30b   : > { %v1582_v54 = vpop.f32.mrf.mxu1 }
 0x30c   : > { %v7040_v2 = vpop.f32.mrf.mxu0  ;;  %v1600_v49 = vadd.f32 %v1582_v54, %v1466_v45  ;;  %v1722_v23 = vadd.f32 %v1703_v12, %v1599_v36 }
 0x30d   : > { %v1584_v58 = vpop.f32.mrf.mxu1 }
 0x30e   : > { %v7042_v43 = vpop.f32.mrf.mxu0  ;;  %v1601_v39 = vadd.f32 %v1584_v58, %v1471_v22  ;;  %v1723_v21 = vadd.f32 %v1705_v41, %v1600_v49 }
 0x30f   : > { %v1586_v53 = vpop.f32.mrf.mxu1 }
 0x310   : > { %v7046_v46 = vpop.f32.mrf.mxu0  ;;  %v1602_v29 = vadd.f32 %v1586_v53, %v1471_v22  ;;  %v1724_v0 = vadd.f32 %v1707_v24, %v1601_v39 }
 0x311   : > { %v1590_v38 = vpop.f32.mrf.mxu1 }
 0x312   : > { %v1603_v3 = vadd.f32 %v1590_v38, %v1476_v19 }
 0x313   : > { %v1592_v26 = vpop.f32.mrf.mxu1 }
 0x314   : > { %v1604_v50 = vadd.f32 %v1592_v26, %v1476_v19  ;;  %v1726_v12 = vadd.f32 %v1713_v57, %v1603_v3 }
 0x315   : > { %v7036_v40 = vpop.f32.mrf.mxu1 }
 0x316   : > { %v1605_v58 = vadd.f32 %v7036_v40, %v1481_v37  ;;  %v1727_v39 = vadd.f32 %v7040_v2, %v1604_v50 }
 0x317   : > { %v7038_v63 = vpop.f32.mrf.mxu1 }
 0x31a   : > { %v1826_v62 = vpop.f32.mrf.mxu1 }
 0x31b   : > { %v1845_v17 = vadd.f32 %v1826_v62, %v1722_v23 }
 0x31c   : > { %v1828_v4 = vpop.f32.mrf.mxu1 }
 0x31d   : > { %v1846_v59 = vadd.f32 %v1828_v4, %v1723_v21 }
 0x31e   : > { %v1830_v11 = vpop.f32.mrf.mxu1 }
 0x31f   : > { %v1847_v54 = vadd.f32 %v1830_v11, %v1724_v0 }
 0x320   : > { %v1832_v6 = vpop.f32.mrf.mxu1 }
 0x322   : > { %v7044_v44 = vpop.f32.mrf.mxu1 }
 0x323   : > { %v1849_v21 = vadd.f32 %v7044_v44, %v1726_v12 }
 0x324   : > { %v7048_v9 = vpop.f32.mrf.mxu1 }
 0x325   : > { %v1850_v40 = vadd.f32 %v7048_v9, %v1727_v39 }
 0x326   : > { %v7050_v1 = vpop.f32.mrf.mxu1  ;;  %v1923_v56 = vpop.f32.mrf.mxu0 }
 0x328   : > { %v7052_v14 = vpop.f32.mrf.mxu1  ;;  %v1925_v61 = vpop.f32.mrf.mxu0 }
 0x329   : > { %v1943_v45 = vadd.f32 %v1925_v61, %v1846_v59 }
 0x32a   : > { %v1927_v55 = vpop.f32.mrf.mxu0  ;;  %v2004_v32 = vpop.f32.mrf.mxu1 }
 0x32b   : > { %v1944_v23 = vadd.f32 %v1927_v55, %v1847_v54 }
 0x32c   : > { %v1929_v28 = vpop.f32.mrf.mxu0  ;;  %v2006_v27 = vpop.f32.mrf.mxu1 }
 0x32d   : > { %v2024_v38 = vadd.f32 %v2006_v27, %v1943_v45 }
 0x32e   : > { %v1933_v16 = vpop.f32.mrf.mxu0  ;;  %v2008_v5 = vpop.f32.mrf.mxu1 }
 0x32f   : > { %v2025_v59 = vadd.f32 %v2008_v5, %v1944_v23  ;;  %v1946_v57 = vadd.f32 %v1933_v16, %v1849_v21 }
 0x330   : > { %v7054_v48 = vpop.f32.mrf.mxu0  ;;  %v2010_v15 = vpop.f32.mrf.mxu1 }
 0x331   : > { %v1947_v55 = vadd.f32 %v7054_v48, %v1850_v40 }
 0x332   : > { %v7056_v7 = vpop.f32.mrf.mxu0  ;;  %v7058_v33 = vpop.f32.mrf.mxu1 }
 0x333   : > { %8082 = vst [vmem:[#allocation16_spill] sm:$0xff] %v7056_v7 }
 0x334   : > { %v7060_v8 = vpop.f32.mrf.mxu0  ;;  %v7062_v13 = vpop.f32.mrf.mxu1 }
 0x335   : > { %8083 = vst [vmem:[#allocation17_spill] sm:$0xff] %v7060_v8  ;;  %8084 = vst [vmem:[#allocation18_spill] sm:$0xff] %v7062_v13  ;;  %v1725_v13 = vadd.f32 %v1709_v60, %v1602_v29  ;;  %v1728_v60 = vadd.f32 %v7042_v43, %v1605_v58 }
 0x336   : > { %v7064_v18 = vpop.f32.mrf.mxu1  ;;  %v2107_v31 = vpop.f32.mrf.mxu0 }
 0x337   : > { %8085 = vst [vmem:[#allocation19_spill] sm:$0xff] %v7064_v18  ;;  %v1848_v53 = vadd.f32 %v1832_v6, %v1725_v13  ;;  %v1851_v44 = vadd.f32 %v7050_v1, %v1728_v60 }
 0x338   : > { %v7066_v20 = vpop.f32.mrf.mxu1  ;;  %v2109_v47 = vpop.f32.mrf.mxu0 }
 0x339   : > { %8086 = vst [vmem:[#allocation20_spill] sm:$0xff] %v7066_v20  ;;  %v1942_v20 = vadd.f32 %v1923_v56, %v1845_v17  ;;  %v1606_v17 = vadd.f32 %v7038_v63, %v1481_v37  ;;  %v1945_v0 = vadd.f32 %v1929_v28, %v1848_v53  ;;  %v2127_v26 = vadd.f32 %v2109_v47, %v2024_v38 }
 0x33a   : > { %v2111_v10 = vpop.f32.mrf.mxu0  ;;  %v2210_v42 = vpop.f32.mrf.mxu1 }
 0x33b   : > { %v2023_v7 = vadd.f32 %v2004_v32, %v1942_v20  ;;  %v2026_v6 = vadd.f32 %v2010_v15, %v1945_v0  ;;  %v2128_v56 = vadd.f32 %v2111_v10, %v2025_v59  ;;  %v1729_v63 = vadd.f32 %v7046_v46, %v1606_v17  ;;  %v8087_v15 = vld [vmem:[#allocation16_spill] sm:$0xff] }
 0x33c   : > { %v2113_v25 = vpop.f32.mrf.mxu0  ;;  %v2212_v52 = vpop.f32.mrf.mxu1  ;;  %v2027_v32 = vadd.f32 %v7058_v33, %v1946_v57  ;;  %v8089_v47 = vld [vmem:[#allocation17_spill] sm:$0xff] }
 0x33d   : > { %v2126_v62 = vadd.f32 %v2107_v31, %v2023_v7  ;;  %v2230_v2 = vadd.f32 %v2212_v52, %v2127_v26  ;;  %v2129_v43 = vadd.f32 %v2113_v25, %v2026_v6  ;;  %v1852_v19 = vadd.f32 %v7052_v14, %v1729_v63  ;;  %v8088_v52 = vld [vmem:[#allocation18_spill] sm:$0xff] }
 0x33e   : > { %v2117_v35 = vpop.f32.mrf.mxu0  ;;  %v2214_v34 = vpop.f32.mrf.mxu1  ;;  %v1948_v7 = vadd.f32 %v8087_v15, %v1851_v44  ;;  %v2028_v13 = vadd.f32 %v8088_v52, %v1947_v55  ;;  %v8090_v10 = vld [vmem:[#allocation19_spill] sm:$0xff] }
 0x33f   : > { %v2229_v3 = vadd.f32 %v2210_v42, %v2126_v62  ;;  %v2231_v5 = vadd.f32 %v2214_v34, %v2128_v56  ;;  %v2130_v37 = vadd.f32 %v2117_v35, %v2027_v32  ;;  %v1949_v33 = vadd.f32 %v8089_v47, %v1852_v19 }
 0x340   : > { %v2119_v51 = vpop.f32.mrf.mxu0  ;;  %v2216_v30 = vpop.f32.mrf.mxu1  ;;  %v2029_v42 = vadd.f32 %v8090_v10, %v1948_v7  ;;  %v8091_v12 = vld [vmem:[#allocation20_spill] sm:$0xff] }
 0x341   : > { %v2232_v1 = vadd.f32 %v2216_v30, %v2129_v43  ;;  %v2131_v22 = vadd.f32 %v2119_v51, %v2028_v13  ;;  %v2030_v58 = vadd.f32 %v8091_v12, %v1949_v33  ;;  %v8093_v13 = vld [vmem:[#allocation5_spill] sm:$0xff] }
 0x342   : > { %v2121_v18 = vpop.f32.mrf.mxu0  ;;  %v2220_v8 = vpop.f32.mrf.mxu1 }
 0x343   : > { %v2233_v34 = vadd.f32 %v2220_v8, %v2130_v37  ;;  %v2132_v35 = vadd.f32 %v2121_v18, %v2029_v42 }
 0x344   : > { %v2123_v36 = vpop.f32.mrf.mxu0  ;;  %v2222_v41 = vpop.f32.mrf.mxu1 }
 0x345   : > { %v2234_v30 = vadd.f32 %v2222_v41, %v2131_v22  ;;  %v2133_v17 = vadd.f32 %v2123_v36, %v2030_v58 }
 0x346   : > { %v2224_v24 = vpop.f32.mrf.mxu1  ;;  %v2313_v29 = vpop.f32.mrf.mxu0 }
 0x347   : > { %v2332_v61 = vadd.f32 %v2313_v29, %v2229_v3  ;;  %v2235_v21 = vadd.f32 %v2224_v24, %v2132_v35 }
 0x348   : > { %v2226_v4 = vpop.f32.mrf.mxu1  ;;  %v2315_v11 = vpop.f32.mrf.mxu0 }
 0x349   : > { %v2333_v9 = vadd.f32 %v2315_v11, %v2230_v2  ;;  %v2236_v40 = vadd.f32 %v2226_v4, %v2133_v17 }
 0x34a   : > { %v2317_v28 = vpop.f32.mrf.mxu0  ;;  %v2410_v27 = vpop.f32.mrf.mxu1 }
 0x34b   : > { %v2429_v16 = vadd.f32 %v2410_v27, %v2332_v61  ;;  %v2334_v20 = vadd.f32 %v2317_v28, %v2231_v5 }
 0x34c   : > { %v2319_v46 = vpop.f32.mrf.mxu0  ;;  %v2412_v31 = vpop.f32.mrf.mxu1 }
 0x34d   : > { %v2430_v48 = vadd.f32 %v2412_v31, %v2333_v9  ;;  %v2437_v50 = vmax.f32 %v2429_v16, 0.0  ;;  %v2335_v14 = vadd.f32 %v2319_v46, %v2232_v1  ;;  %v8092_v16 = vld [vmem:[#allocation4_spill] sm:$0xff] }
 0x34e   : > { %v2323_v49 = vpop.f32.mrf.mxu0  ;;  %v2414_v25 = vpop.f32.mrf.mxu1 }
 0x34f   : > { %v2438_v54 = vmax.f32 %v2430_v48, 0.0  ;;  %v2431_v45 = vadd.f32 %v2414_v25, %v2334_v20  ;;  %v2336_v62 = vadd.f32 %v2323_v49, %v2233_v34  ;;  %v8094_v20 = vld [vmem:[#allocation6_spill] sm:$0xff] }
 0x350   : > { %v2325_v53 = vpop.f32.mrf.mxu0  ;;  %v2416_v23 = vpop.f32.mrf.mxu1 }
 0x351   : > { %v6281_v38 = vpack.c.bf16 %v2438_v54, %v2437_v50  ;;  %v2432_v39 = vadd.f32 %v2416_v23, %v2335_v14  ;;  %v2439_v8 = vmax.f32 %v2431_v45, 0.0  ;;  %v2337_v0 = vadd.f32 %v2325_v53, %v2234_v30  ;;  %v8095_v30 = vld [vmem:[#allocation7_spill] sm:$0xff] }
 0x352   : > { %v2327_v29 = vpop.f32.mrf.mxu0  ;;  %v2420_v51 = vpop.f32.mrf.mxu1 }
 0x353   : > { %2519 = vst [vmem:[#allocation3 + $0x4] sm:$0xff] %v6281_v38  ;;  %v2440_v59 = vmax.f32 %v2432_v39, 0.0  ;;  %v2433_v26 = vadd.f32 %v2420_v51, %v2336_v62  ;;  %v2338_v18 = vadd.f32 %v2327_v29, %v2235_v21 }
 0x354   : > { %v2329_v3 = vpop.f32.mrf.mxu0  ;;  %v2422_v60 = vpop.f32.mrf.mxu1 }
 0x355   : > { %v6282_v57 = vpack.c.bf16 %v2440_v59, %v2439_v8  ;;  %v2434_v11 = vadd.f32 %v2422_v60, %v2337_v0  ;;  %v2441_v41 = vmax.f32 %v2433_v26, 0.0  ;;  %v2339_v56 = vadd.f32 %v2329_v3, %v2236_v40 }
 0x356   : > { %v2424_v6 = vpop.f32.mrf.mxu1 }
 0x357   : > { %2520 = vst [vmem:[#allocation3 + $0x14] sm:$0xff] %v6282_v57  ;;  %v2442_v2 = vmax.f32 %v2434_v11, 0.0  ;;  %v2435_v36 = vadd.f32 %v2424_v6, %v2338_v18  ;;  %v5995_v11 = vld [vmem:[%s8016_s4 + $0x30] sm:$0xff]  ;;  %v5996_v6 = vld [vmem:[%s8016_s4 + $0x38] sm:$0xff] }
 0x358   : > { %v2426_v24 = vpop.f32.mrf.mxu1 }
 0x359   : > { %v6283_v61 = vpack.c.bf16 %v2442_v2, %v2441_v41  ;;  %v2436_v63 = vadd.f32 %v2426_v24, %v2339_v56  ;;  %v2443_v44 = vmax.f32 %v2435_v36, 0.0  ;;  %v5993_v41 = vld [vmem:[%s8016_s4 + $0x20] sm:$0xff]  ;;  %v5994_v56 = vld [vmem:[%s8016_s4 + $0x28] sm:$0xff] }
 0x35a   : > { %v7084_v28 = vld [vmem:[#allocation3 + $0x8] sm:$0xff]  ;;  %v2523_v4 = vld [vmem:[#allocation3] sm:$0xff] }
 0x35b   : > { %2521 = vst [vmem:[#allocation3 + $0x24] sm:$0xff] %v6283_v61  ;;  %v2444_v55 = vmax.f32 %v2436_v63, 0.0  ;;  %v2531_v15 = vmul.bf16 %v8092_v16, %v2523_v4  ;;  %v2532_v46 = vmul.bf16 %v8093_v13, %v7084_v28  ;;  %v2539_v33 = vmul.bf16 %v8094_v20, %v2523_v4 }
 0x35c   : > { %v2540_v62 = vmul.bf16 %v8095_v30, %v7084_v28 }
 0x35d   : > { %v6284_v32 = vpack.c.bf16 %v2444_v55, %v2443_v44 }
 0x35e   : > { %v7086_v27 = vld [vmem:[#allocation3 + $0x18] sm:$0xff]  ;;  %v2525_v43 = vld [vmem:[#allocation3 + $0x10] sm:$0xff] }
 0x35f   : > { %2522 = vst [vmem:[#allocation3 + $0x34] sm:$0xff] %v6284_v32  ;;  %v7090_v5 = vcombine.low %v7084_v28, %v7086_v27  ;;  %v7092_v9 = vcombine.high %v2523_v4, %v2525_v43  ;;  %v2533_v19 = vmul.bf16 %v8092_v16, %v2525_v43  ;;  %v6013_v7 = vcombine.low %v2523_v4, %v2525_v43 }
 0x360   : > { %v2534_v37 = vmul.bf16 %v8093_v13, %v7086_v27  ;;  %v2541_v48 = vmul.bf16 %v8094_v20, %v2525_v43  ;;  %v2542_v38 = vmul.bf16 %v8095_v30, %v7086_v27  ;;  %v6053_v18 = vcombine.high %v7084_v28, %v7086_v27 }
 0x361   : > { %2730 = vrot.lane.b32.xlu0 %v7090_v5, %s6451_s25  ;;  %2728 = vrot.lane.b32.xlu1 %v7092_v9, %s6451_s25  ;;  %v6004_v52 = vcombine.high %v2531_v15, %v2533_v19  ;;  %v6003_v1 = vcombine.low %v2531_v15, %v2533_v19 }
 0x362   : > { %v6005_v31 = vcombine.low %v2532_v46, %v2534_v37  ;;  %v2527_v10 = vld [vmem:[#allocation3 + $0x20] sm:$0xff]  ;;  %v7112_v22 = vcombine.high %v2539_v33, %v2541_v48  ;;  %v2528_v49 = vld [vmem:[#allocation3 + $0x28] sm:$0xff]  ;;  %v6023_v23 = vcombine.low %v2539_v33, %v2541_v48  ;;  %v6025_v39 = vcombine.low %v2540_v62, %v2542_v38 }
 0x363   : > { %v2535_v45 = vmul.bf16 %v8092_v16, %v2527_v10  ;;  %v2536_v12 = vmul.bf16 %v8093_v13, %v2528_v49  ;;  %v2543_v21 = vmul.bf16 %v8094_v20, %v2527_v10  ;;  %v2544_v8 = vmul.bf16 %v8095_v30, %v2528_v49 }
 0x364   : > { %v6041_v26 = vcombine.high %v2540_v62, %v2542_v38  ;;  %v6047_v3 = vcombine.high %v2532_v46, %v2534_v37  ;;  %v6370_v46 = vld [vmem:[%s8015_s3 + $0xa0] sm:$0xff]   ;;  %v8096_v33 = vmov 0  }
 0x365   : > { %2726 = vrot.lane.b32.xlu1 %v6013_v7, %s6451_s25  ;;  %2605 = vrot.lane.b32.xlu0 %v6004_v52, %s6450_s24 }
 0x366   : > { %v2529_v47 = vld [vmem:[#allocation3 + $0x30] sm:$0xff]  ;;  %v2530_v34 = vld [vmem:[#allocation3 + $0x38] sm:$0xff] }
 0x367   : > { %v7110_v42 = vcombine.high %v2527_v10, %v2529_v47  ;;  %v6016_v25 = vcombine.low %v2527_v10, %v2529_v47  ;;  %v7118_v50 = vcombine.low %v2528_v49, %v2530_v34  ;;  %v2537_v14 = vmul.bf16 %v8092_v16, %v2529_v47 }
 0x368   : > { %v2538_v54 = vmul.bf16 %v8093_v13, %v2530_v34  ;;  %v2545_v17 = vmul.bf16 %v8094_v20, %v2529_v47  ;;  %v2546_v51 = vmul.bf16 %v8095_v30, %v2530_v34  ;;  %v6054_v60 = vcombine.high %v2528_v49, %v2530_v34  ;;  %v6369_v49 = vld [vmem:[%s8015_s3 + $0x90] sm:$0xff]  }
 0x369   : > { %2607 = vrot.lane.b32.xlu1 %v6005_v31, %s6450_s24  ;;  %2603 = vrot.lane.b32.xlu0 %v6003_v1, %s6450_s24  ;;  %v6007_v58 = vcombine.high %v2535_v45, %v2537_v14  ;;  %v6006_v53 = vcombine.low %v2535_v45, %v2537_v14 }
 0x36a   : > { %v6008_v35 = vcombine.low %v2536_v12, %v2538_v54  ;;  %v6027_v29 = vcombine.high %v2543_v21, %v2545_v17  ;;  %v6028_v0 = vcombine.low %v2544_v8, %v2546_v51  ;;  %v6026_v59 = vcombine.low %v2543_v21, %v2545_v17 }
 0x36b   : > { %v6042_v40 = vcombine.high %v2544_v8, %v2546_v51  ;;  %v6048_v57 = vcombine.high %v2536_v12, %v2538_v54 }
 0x36d   : > { %2734 = vrot.lane.b32.xlu1 %v7110_v42, %s6451_s25  ;;  %2851 = vrot.lane.b32.xlu0 %v7112_v22, %s6452_s26 }
 0x371   : > { %2732 = vrot.lane.b32.xlu1 %v6016_v25, %s6451_s25  ;;  %2736 = vrot.lane.b32.xlu0 %v7118_v50, %s6451_s25  ;;  %v6372_v25 = vld [vmem:[%s8015_s3 + $0xa8] sm:$0xff]  }
 0x375   : > { %2611 = vrot.lane.b32.xlu1 %v6007_v58, %s6450_s24  ;;  %2613 = vrot.lane.b32.xlu0 %v6008_v35, %s6450_s24 }
 0x379   : > { %2609 = vrot.lane.b32.xlu1 %v6006_v53, %s6450_s24  ;;  %2849 = vrot.lane.b32.xlu0 %v6023_v23, %s6452_s26 }
 0x37d   : > { %2853 = vrot.lane.b32.xlu1 %v6025_v39, %s6452_s26  ;;  %2948 = vrot.lane.b32.xlu0 %v6004_v52, %s6453_s27 }
 0x381   : > { %2950 = vrot.lane.b32.xlu1 %v6005_v31, %s6453_s27  ;;  %2946 = vrot.lane.b32.xlu0 %v6003_v1, %s6453_s27 }
 0x385   : > { %3132 = vrot.lane.b32.xlu1 %v6025_v39, %s6454_s28  ;;  %2857 = vrot.lane.b32.xlu0 %v6027_v29, %s6452_s26 }
 0x389   : > { %2859 = vrot.lane.b32.xlu1 %v6028_v0, %s6452_s26  ;;  %2855 = vrot.lane.b32.xlu0 %v6026_v59, %s6452_s26 }
 0x38d   : > { %3130 = vrot.lane.b32.xlu1 %v7112_v22, %s6454_s28  ;;  %3134 = vrot.lane.b32.xlu0 %v6041_v26, %s6454_s28 }
 0x391   : > { %2954 = vrot.lane.b32.xlu1 %v6007_v58, %s6453_s27  ;;  %3235 = vrot.lane.b32.xlu0 %v6005_v31, %s6455_s29 }
 0x395   : > { %2952 = vrot.lane.b32.xlu1 %v6006_v53, %s6453_s27  ;;  %2956 = vrot.lane.b32.xlu0 %v6008_v35, %s6453_s27 }
 0x399   : > { %3237 = vrot.lane.b32.xlu1 %v6047_v3, %s6455_s29  ;;  %3233 = vrot.lane.b32.xlu0 %v6004_v52, %s6455_s29 }
 0x39d   : > { %3344 = vrot.lane.b32.xlu1 %v7118_v50, %s6456_s30  ;;  %3346 = vrot.lane.b32.xlu0 %v6054_v60, %s6456_s30 }
 0x3a1   : > { %3138 = vrot.lane.b32.xlu1 %v6028_v0, %s6454_s28  ;;  %3140 = vrot.lane.b32.xlu0 %v6042_v40, %s6454_s28 }
 0x3a5   : > { %3136 = vrot.lane.b32.xlu1 %v6027_v29, %s6454_s28  ;;  %3241 = vrot.lane.b32.xlu0 %v6008_v35, %s6455_s29 }
 0x3a9   : > { %3243 = vrot.lane.b32.xlu1 %v6048_v57, %s6455_s29  ;;  %3239 = vrot.lane.b32.xlu0 %v6007_v58, %s6455_s29  ;;  %v6371_v58 = vld [vmem:[%s8015_s3 + $0x98] sm:$0xff]   ;;  %v6375_v57 = vld [vmem:[%s8015_s3 + $0xc0] sm:$0xff]  }
 0x3ad   : > { %3342 = vrot.lane.b32.xlu1 %v7110_v42, %s6456_s30  ;;  %3340 = vrot.lane.b32.xlu0 %v6053_v18, %s6456_s30 }
 0x3b1   : > { %3338 = vrot.lane.b32.xlu1 %v7090_v5, %s6456_s30  ;;  %3435 = vrot.lane.b32.xlu0 %v6025_v39, %s6457_s6 }
 0x3b5   : > { %3336 = vrot.lane.b32.xlu1 %v7092_v9, %s6456_s30  ;;  %3441 = vrot.lane.b32.xlu0 %v6028_v0, %s6457_s6 }
 0x3b9   : > { %3443 = vrot.lane.b32.xlu1 %v6042_v40, %s6457_s6  ;;  %3439 = vrot.lane.b32.xlu0 %v6027_v29, %s6457_s6  ;;  %v6373_v29 = vld [vmem:[%s8015_s3 + $0xb0] sm:$0xff]  }
 0x3bd   : > { %3437 = vrot.lane.b32.xlu1 %v6041_v26, %s6457_s6  ;;  %3433 = vrot.lane.b32.xlu0 %v7112_v22, %s6457_s6 }
 0x3c1   : > { %2559 = vperm.xlu1 %6315, %v5995_v11   ;;  %2564 = vperm.xlu0 %6314, %v5996_v6  }
 0x3c5   : > { %2549 = vperm.xlu1 %6315, %v5993_v41   ;;  %2554 = vperm.xlu0 %6314, %v5994_v56  }
 0x3d3   : > { %v2731_v2 = vpop.permute.xlu0 %2730  ;;  %v2729_v36 = vpop.permute.xlu1 %2728 }
 0x3d4   : > { %v2739_v19 = vsel %vm600_vm11, %v2729_v36, %v2731_v2  ;;  %v6377_v2 = vld [vmem:[%s8015_s3 + $0xc8] sm:$0xff]  }
 0x3d7   : > { %v2727_v24 = vpop.permute.xlu1 %2726  ;;  %v2606_v61 = vpop.permute.xlu0 %2605 }
 0x3d8   : > { %v2738_v37 = vsel %vm600_vm11, %v2727_v24, %v2729_v36 }
 0x3db   : > { %v2608_v63 = vpop.permute.xlu1 %2607  ;;  %v2604_v44 = vpop.permute.xlu0 %2603 }
 0x3dc   : > { %v2616_v47 = vsel %vm489_vm9, %v2606_v61, %v2608_v63  ;;  %v2615_v34 = vsel %vm489_vm9, %v2604_v44, %v2606_v61  ;;  %v6378_v63 = vld [vmem:[%s8015_s3 + $0xd8] sm:$0xff]  }
 0x3df   : > { %v2735_v55 = vpop.permute.xlu1 %2734  ;;  %v2852_v32 = vpop.permute.xlu0 %2851 }
 0x3e3   : > { %v2733_v28 = vpop.permute.xlu1 %2732  ;;  %v2737_v27 = vpop.permute.xlu0 %2736 }
 0x3e4   : > { %v2740_v4 = vsel %vm600_vm11, %v2733_v28, %v2735_v55  ;;  %v2741_v43 = vsel %vm600_vm11, %v2735_v55, %v2737_v27 }
 0x3e5   : > { %2764 = vmatprep.subr.bf16.mxu1 %v2741_v43  ;;  %v6379_v43 = vld [vmem:[%s8015_s3 + $0xe0] sm:$0xff]  }
 0x3e6   : > { %2765 = vmatpush1.bf16.msra.mxu1 %v2740_v4 }
 0x3e7   : > { %v2612_v15 = vpop.permute.xlu1 %2611  ;;  %2766 = vmatprep.subr.bf16.mxu1 %v2739_v19  ;;  %v2614_v7 = vpop.permute.xlu0 %2613 }
 0x3e8   : > { %v2618_v52 = vsel %vm489_vm9, %v2612_v15, %v2614_v7 }
 0x3e9   : > { %2641 = vmatprep.subr.bf16.mxu0 %v2618_v52 }
 0x3ea   : > { %2767 = vmatpush1.bf16.msra.mxu1 %v2738_v37 }
 0x3eb   : > { %v2610_v31 = vpop.permute.xlu1 %2609  ;;  %v2850_v1 = vpop.permute.xlu0 %2849 }
 0x3ec   : > { %v2617_v48 = vsel %vm489_vm9, %v2610_v31, %v2612_v15  ;;  %v2861_v21 = vsel %vm709_vm13, %v2850_v1, %v2852_v32  ;;  %v6380_v31 = vld [vmem:[%s8015_s3 + $0xf0] sm:$0xff]  }
 0x3ed   : > { %2642 = vmatpush1.bf16.msra.mxu0 %v2617_v48  ;;  %6019 = vmatmul.mubr.msk.bf16.vlgmr.msra.gmra.mxu1 %vm1539_vm4, %v6370_v46 }
 0x3ee   : > { %2643 = vmatprep.subr.bf16.mxu0 %v2616_v47  ;;  %2794 = vmatprep.mubr.bf16.mxu1 %v8096_v33 }
 0x3ef   : > { %v2854_v10 = vpop.permute.xlu1 %2853  ;;  %v2949_v22 = vpop.permute.xlu0 %2948 }
 0x3f0   : > { %v2862_v62 = vsel %vm709_vm13, %v2852_v32, %v2854_v10  ;;  %v6381_v10 = vld [vmem:[%s8015_s3 + $0xe8] sm:$0xff]  }
 0x3f1   : > { %2644 = vmatpush1.bf16.msra.mxu0 %v2615_v34 }
 0x3f3   : > { %v2951_v14 = vpop.permute.xlu1 %2950  ;;  %v2947_v54 = vpop.permute.xlu0 %2946 }
 0x3f4   : > { %6009 = vmatmul.mubr.msk.bf16.vlgmr.msra.gmra.mxu0 %vm1539_vm4, %v6369_v49 }
 0x3f5   : > { %2671 = vmatprep.mubr.bf16.mxu0 %v8096_v33  ;;  %6020 = vmatmul.mubr.msk.bf16.gmra.mxu1 %vm1539_vm4, %v6372_v25  ;;  %v6382_v25 = vld [vmem:[%s8015_s3 + $0xf8] sm:$0xff]  }
 0x3f6   : > { %3004 = vmatprep.mubr.bf16.mxu1 %v8096_v33 }
 0x3f7   : > { %v7216_v45 = vpop.permute.xlu1 %3132  ;;  %v2858_v12 = vpop.permute.xlu0 %2857 }
 0x3fb   : > { %v2860_v35 = vpop.permute.xlu1 %2859  ;;  %v2856_v53 = vpop.permute.xlu0 %2855 }
 0x3fc   : > { %v2863_v23 = vsel %vm709_vm13, %v2856_v53, %v2858_v12  ;;  %6010 = vmatmul.mubr.msk.bf16.gmra.mxu0 %vm1539_vm4, %v6371_v58  ;;  %v2864_v38 = vsel %vm709_vm13, %v2858_v12, %v2860_v35  ;;  %v6383_v58 = vld [vmem:[%s8015_s3 + $0x100] sm:$0xff]  }
 0x3fd   : > { %2887 = vmatprep.subr.bf16.mxu0 %v2864_v38  ;;  %2907 = vmatprep.mubr.bf16.mxu0 %v8096_v33 }
 0x3fe   : > { %2888 = vmatpush1.bf16.msra.mxu0 %v2863_v23 }
 0x3ff   : > { %v3131_v39 = vpop.permute.xlu1 %3130  ;;  %2889 = vmatprep.subr.bf16.mxu0 %v2862_v62  ;;  %v3135_v17 = vpop.permute.xlu0 %3134  ;;  %v6384_v62 = vld [vmem:[%s8015_s3 + $0x110] sm:$0xff]  }
 0x400   : > { %v3143_v44 = vsel %vm977_vm15, %v7216_v45, %v3135_v17  ;;  %v3142_v4 = vsel %vm977_vm15, %v3131_v39, %v7216_v45  ;;  %v6385_v39 = vld [vmem:[%s8015_s3 + $0x108] sm:$0xff]   ;;  %v6386_v17 = vld [vmem:[%s8015_s3 + $0x118] sm:$0xff]  }
 0x402   : > { %2890 = vmatpush1.bf16.msra.mxu0 %v2861_v21 }
 0x403   : > { %v2955_v51 = vpop.permute.xlu1 %2954  ;;  %3065 = vmatprep.subr.bf16.mxu0 %v7118_v50  ;;  %v3236_v8 = vpop.permute.xlu0 %3235  ;;  %v6374_v50 = vld [vmem:[%s8015_s3 + $0xb8] sm:$0xff]  }
 0x405   : > { %6029 = vmatmul.mubr.msk.bf16.vlgmr.msra.gmra.mxu0 %vm1539_vm4, %v6373_v29 }
 0x406   : > { %3066 = vmatpush1.bf16.msra.mxu0 %v7110_v42  ;;  %2917 = vmatprep.mubr.bf16.mxu0 %v8096_v33  ;;  %v2959_v42 = vsel %vm801_vm14, %v2949_v22, %v2951_v14 }
 0x407   : > { %v2953_v0 = vpop.permute.xlu1 %2952  ;;  %3067 = vmatprep.subr.bf16.mxu0 %v7090_v5  ;;  %v2957_v59 = vpop.permute.xlu0 %2956  ;;  %v2958_v5 = vsel %vm801_vm14, %v2947_v54, %v2949_v22 }
 0x408   : > { %v2960_v26 = vsel %vm801_vm14, %v2953_v0, %v2955_v51  ;;  %v2961_v3 = vsel %vm801_vm14, %v2955_v51, %v2957_v59 }
 0x409   : > { %2984 = vmatprep.subr.bf16.mxu1 %v2961_v3 }
 0x40a   : > { %2985 = vmatpush1.bf16.msra.mxu1 %v2960_v26  ;;  %3068 = vmatpush1.bf16.msra.mxu0 %v7092_v9  ;;  %v6376_v9 = vld [vmem:[%s8015_s3 + $0xd0] sm:$0xff]  }
 0x40b   : > { %v3238_v60 = vpop.permute.xlu1 %3237  ;;  %2986 = vmatprep.subr.bf16.mxu1 %v2959_v42  ;;  %v3234_v40 = vpop.permute.xlu0 %3233 }
 0x40c   : > { %v3246_v15 = vsel %vm1070_vm0, %v3236_v8, %v3238_v60  ;;  %v3245_v46 = vsel %vm1070_vm0, %v3234_v40, %v3236_v8 }
 0x40d   : > { %6030 = vmatmul.mubr.msk.bf16.gmra.mxu0 %vm1539_vm4, %v6374_v50 }
 0x40e   : > { %2987 = vmatpush1.bf16.msra.mxu1 %v2958_v5  ;;  %3085 = vmatprep.mubr.bf16.mxu0 %v8096_v33 }
 0x40f   : > { %v3345_v18 = vpop.permute.xlu1 %3344  ;;  %v3347_v11 = vpop.permute.xlu0 %3346 }
 0x410   : > { %v3351_v19 = vsel %vm1163_vm1, %v3345_v18, %v3347_v11 }
 0x411   : > { %6033 = vmatmul.mubr.msk.bf16.vlgmr.msra.gmra.mxu1 %vm1539_vm4, %v6375_v57 }
 0x412   : > { %3014 = vmatprep.mubr.bf16.mxu1 %v8096_v33 }
 0x413   : > { %v3139_v6 = vpop.permute.xlu1 %3138  ;;  %v3141_v41 = vpop.permute.xlu0 %3140 }
 0x414   : > { %v3145_v56 = vsel %vm977_vm15, %v3139_v6, %v3141_v41 }
 0x415   : > { %6037 = vmatmul.mubr.msk.bf16.vlgmr.msra.gmra.mxu0 %vm1539_vm4, %v6376_v9  ;;  %3168 = vmatprep.subr.bf16.mxu1 %v3145_v56 }
 0x416   : > { %3095 = vmatprep.mubr.bf16.mxu0 %v8096_v33 }
 0x417   : > { %v3137_v36 = vpop.permute.xlu1 %3136  ;;  %v3242_v24 = vpop.permute.xlu0 %3241 }
 0x418   : > { %v3144_v61 = vsel %vm977_vm15, %v3137_v36, %v3139_v6 }
 0x419   : > { %6034 = vmatmul.mubr.msk.bf16.gmra.mxu1 %vm1539_vm4, %v6377_v2 }
 0x41a   : > { %3169 = vmatpush1.bf16.msra.mxu1 %v3144_v61  ;;  %3188 = vmatprep.mubr.bf16.mxu1 %v8096_v33 }
 0x41b   : > { %3170 = vmatprep.subr.bf16.mxu1 %v3143_v44  ;;  %v3244_v55 = vpop.permute.xlu1 %3243  ;;  %v3240_v32 = vpop.permute.xlu0 %3239 }
 0x41c   : > { %v3247_v28 = vsel %vm1070_vm0, %v3240_v32, %v3242_v24  ;;  %v3248_v27 = vsel %vm1070_vm0, %v3242_v24, %v3244_v55 }
 0x41d   : > { %6038 = vmatmul.mubr.msk.bf16.gmra.mxu0 %vm1539_vm4, %v6378_v63  ;;  %3271 = vmatprep.subr.bf16.mxu0 %v3248_v27 }
 0x41e   : > { %3171 = vmatpush1.bf16.msra.mxu1 %v3142_v4  ;;  %3272 = vmatpush1.bf16.msra.mxu0 %v3247_v28 }
 0x41f   : > { %3374 = vmatprep.subr.bf16.mxu1 %v3351_v19  ;;  %v3343_v7 = vpop.permute.xlu1 %3342  ;;  %3273 = vmatprep.subr.bf16.mxu0 %v3246_v15  ;;  %v3341_v52 = vpop.permute.xlu0 %3340 }
 0x420   : > { %v3350_v37 = vsel %vm1163_vm1, %v3343_v7, %v3345_v18  ;;  %3291 = vmatprep.mubr.bf16.mxu0 %v8096_v33 }
 0x421   : > { %6043 = vmatmul.mubr.msk.bf16.vlgmr.msra.gmra.mxu1 %vm1539_vm4, %v6379_v43 }
 0x422   : > { %3375 = vmatpush1.bf16.msra.mxu1 %v3350_v37  ;;  %3274 = vmatpush1.bf16.msra.mxu0 %v3245_v46 }
 0x423   : > { %v3339_v1 = vpop.permute.xlu1 %3338  ;;  %v3436_v48 = vpop.permute.xlu0 %3435  ;;  %3198 = vmatprep.mubr.bf16.mxu1 %v8096_v33 }
 0x424   : > { %v3349_v47 = vsel %vm1163_vm1, %v3339_v1, %v3341_v52 }
 0x425   : > { %6049 = vmatmul.mubr.msk.bf16.vlgmr.msra.gmra.mxu0 %vm1539_vm4, %v6380_v31  ;;  %3376 = vmatprep.subr.bf16.mxu1 %v3349_v47 }
 0x426   : > { %3301 = vmatprep.mubr.bf16.mxu0 %v8096_v33 }
 0x427   : > { %v3337_v22 = vpop.permute.xlu1 %3336  ;;  %v3442_v34 = vpop.permute.xlu0 %3441 }
 0x428   : > { %v3348_v49 = vsel %vm1163_vm1, %v3337_v22, %v3339_v1 }
 0x429   : > { %6044 = vmatmul.mubr.msk.bf16.gmra.mxu1 %vm1539_vm4, %v6381_v10 }
 0x42a   : > { %3377 = vmatpush1.bf16.msra.mxu1 %v3348_v49  ;;  %3394 = vmatprep.mubr.bf16.mxu1 %v8096_v33 }
 0x42b   : > { %v3444_v14 = vpop.permute.xlu1 %3443  ;;  %v3440_v54 = vpop.permute.xlu0 %3439 }
 0x42c   : > { %v3447_v45 = vsel %vm1255_vm2, %v3440_v54, %v3442_v34  ;;  %v3448_v12 = vsel %vm1255_vm2, %v3442_v34, %v3444_v14 }
 0x42d   : > { %6050 = vmatmul.mubr.msk.bf16.gmra.mxu0 %vm1539_vm4, %v6382_v25  ;;  %3471 = vmatprep.subr.bf16.mxu0 %v3448_v12 }
 0x42e   : > { %3472 = vmatpush1.bf16.msra.mxu0 %v3447_v45  ;;  %3491 = vmatprep.mubr.bf16.mxu0 %v8096_v33 }
 0x42f   : > { %v3438_v35 = vpop.permute.xlu1 %3437  ;;  %v3434_v53 = vpop.permute.xlu0 %3433 }
 0x430   : > { %v3445_v23 = vsel %vm1255_vm2, %v3434_v53, %v3436_v48  ;;  %v3446_v38 = vsel %vm1255_vm2, %v3436_v48, %v3438_v35 }
 0x431   : > { %6055 = vmatmul.mubr.msk.bf16.vlgmr.msra.gmra.mxu1 %vm1539_vm4, %v6383_v58  ;;  %3473 = vmatprep.subr.bf16.mxu0 %v3446_v38 }
 0x432   : > { %3474 = vmatpush1.bf16.msra.mxu0 %v3445_v23  ;;  %3404 = vmatprep.mubr.bf16.mxu1 %v8096_v33 }
 0x435   : > { %6059 = vmatmul.mubr.msk.bf16.vlgmr.msra.gmra.mxu0 %vm1539_vm4, %v6384_v62 }
 0x436   : > { %3501 = vmatprep.mubr.bf16.mxu0 %v8096_v33 }
 0x439   : > { %6056 = vmatmul.mubr.msk.bf16.gmra.mxu1 %vm1539_vm4, %v6385_v39 }
 0x43a   : > { %3744 = vmatprep.mubr.bf16.mxu1 %v8096_v33 }
 0x43c   : > { %v2560_v7 = vpop.permute.xlu1 %2559  ;;  %v2565_v1 = vpop.permute.xlu0 %2564 }
 0x43d   : > { %6060 = vmatmul.mubr.msk.bf16.gmra.mxu0 %vm1539_vm4, %v6386_v17 }
 0x43e   : > { %3867 = vmatprep.mubr.bf16.mxu0 %v8096_v33 }
 0x440   : > { %v2550_v10 = vpop.permute.xlu1 %2549  ;;  %v2555_v54 = vpop.permute.xlu0 %2554 }
 0x4ad   : > { %v2786_v21 = vpop.f32.mrf.mxu1 }
 0x4af   : > { %v2788_v8 = vpop.f32.mrf.mxu1 }
 0x4b1   : > { %v2790_v26 = vpop.f32.mrf.mxu1 }
 0x4b3   : > { %v2792_v42 = vpop.f32.mrf.mxu1 }
 0x4b4   : > { %v2663_v29 = vpop.f32.mrf.mxu0 }
 0x4b5   : > { %v2796_v5 = vpop.f32.mrf.mxu1  ;;  %v2682_v49 = vadd.f32 %v2663_v29, %v2550_v10 }
 0x4b6   : > { %v2665_v51 = vpop.f32.mrf.mxu0 }
 0x4b7   : > { %v7327_v18 = vpop.f32.mrf.mxu1  ;;  %v2683_v45 = vadd.f32 %v2665_v51, %v2550_v10  ;;  %v2805_v35 = vadd.f32 %v2786_v21, %v2682_v49 }
 0x4b8   : > { %v2667_v0 = vpop.f32.mrf.mxu0 }
 0x4b9   : > { %v7329_v6 = vpop.f32.mrf.mxu1  ;;  %v2684_v53 = vadd.f32 %v2667_v0, %v2555_v54  ;;  %v2806_v62 = vadd.f32 %v2788_v8, %v2683_v45 }
 0x4ba   : > { %v2669_v59 = vpop.f32.mrf.mxu0 }
 0x4bb   : > { %v7333_v2 = vpop.f32.mrf.mxu1  ;;  %v2685_v39 = vadd.f32 %v2669_v59, %v2555_v54  ;;  %v2807_v13 = vadd.f32 %v2790_v26, %v2684_v53 }
 0x4bc   : > { %v2673_v3 = vpop.f32.mrf.mxu0 }
 0x4bd   : > { %v2686_v33 = vadd.f32 %v2673_v3, %v2560_v7 }
 0x4be   : > { %v2675_v50 = vpop.f32.mrf.mxu0 }
 0x4bf   : > { %v2687_v29 = vadd.f32 %v2675_v50, %v2560_v7  ;;  %v2809_v21 = vadd.f32 %v2796_v5, %v2686_v33 }
 0x4c0   : > { %v7323_v60 = vpop.f32.mrf.mxu0 }
 0x4c1   : > { %v2688_v0 = vadd.f32 %v7323_v60, %v2565_v1  ;;  %v2810_v26 = vadd.f32 %v7327_v18, %v2687_v29  ;;  %v8106_v29 = vld [vmem:[#allocation8_spill] sm:$0xff] }
 0x4c2   : > { %v7325_v40 = vpop.f32.mrf.mxu0 }
 0x4c3   : > { %v2811_v60 = vadd.f32 %v7329_v6, %v2688_v0 }
 0x4c5   : > { %v2909_v57 = vpop.f32.mrf.mxu0 }
 0x4c6   : > { %v2928_v17 = vadd.f32 %v2909_v57, %v2805_v35 }
 0x4c7   : > { %v2911_v11 = vpop.f32.mrf.mxu0 }
 0x4c8   : > { %v2929_v16 = vadd.f32 %v2911_v11, %v2806_v62  ;;  %v2689_v11 = vadd.f32 %v7325_v40, %v2565_v1 }
 0x4c9   : > { %v2913_v9 = vpop.f32.mrf.mxu0 }
 0x4ca   : > { %v2930_v51 = vadd.f32 %v2913_v9, %v2807_v13  ;;  %v2812_v40 = vadd.f32 %v7333_v2, %v2689_v11 }
 0x4cb   : > { %v2915_v41 = vpop.f32.mrf.mxu0 }
 0x4cd   : > { %v7331_v56 = vpop.f32.mrf.mxu0 }
 0x4ce   : > { %v2932_v50 = vadd.f32 %v7331_v56, %v2809_v21 }
 0x4cf   : > { %v7335_v36 = vpop.f32.mrf.mxu0 }
 0x4d0   : > { %v2933_v5 = vadd.f32 %v7335_v36, %v2810_v26 }
 0x4d1   : > { %v7337_v24 = vpop.f32.mrf.mxu0  ;;  %v3006_v61 = vpop.f32.mrf.mxu1 }
 0x4d2   : > { %v2934_v56 = vadd.f32 %v7337_v24, %v2811_v60  ;;  %v8113_v60 = vld [vmem:[#allocation11_spill] sm:$0xff] }
 0x4d3   : > { %v7339_v63 = vpop.f32.mrf.mxu0  ;;  %v3008_v44 = vpop.f32.mrf.mxu1 }
 0x4d4   : > { %v3026_v10 = vadd.f32 %v3008_v44, %v2929_v16 }
 0x4d5   : > { %v3010_v55 = vpop.f32.mrf.mxu1  ;;  %v3087_v32 = vpop.f32.mrf.mxu0 }
 0x4d6   : > { %v3027_v57 = vadd.f32 %v3010_v55, %v2930_v51 }
 0x4d7   : > { %v3012_v28 = vpop.f32.mrf.mxu1  ;;  %v3089_v27 = vpop.f32.mrf.mxu0 }
 0x4d8   : > { %v3107_v3 = vadd.f32 %v3089_v27, %v3026_v10  ;;  %v8108_v10 = vld [vmem:[#allocation9_spill] sm:$0xff] }
 0x4d9   : > { %v3016_v4 = vpop.f32.mrf.mxu1  ;;  %v3091_v43 = vpop.f32.mrf.mxu0 }
 0x4da   : > { %v3108_v16 = vadd.f32 %v3091_v43, %v3027_v57 }
 0x4db   : > { %v7341_v19 = vpop.f32.mrf.mxu1  ;;  %v3093_v15 = vpop.f32.mrf.mxu0 }
 0x4dd   : > { %v7343_v52 = vpop.f32.mrf.mxu1  ;;  %v7345_v37 = vpop.f32.mrf.mxu0 }
 0x4de   : > { %8097 = vst [vmem:[#allocation16_spill] sm:$0xff] %v7343_v52 }
 0x4df   : > { %v7347_v46 = vpop.f32.mrf.mxu1  ;;  %v7349_v31 = vpop.f32.mrf.mxu0 }
 0x4e0   : > { %8098 = vst [vmem:[#allocation18_spill] sm:$0xff] %v7347_v46  ;;  %8099 = vst [vmem:[#allocation17_spill] sm:$0xff] %v7349_v31  ;;  %v2808_v31 = vadd.f32 %v2792_v42, %v2685_v39 }
 0x4e1   : > { %v7351_v48 = vpop.f32.mrf.mxu0  ;;  %v3190_v47 = vpop.f32.mrf.mxu1 }
 0x4e2   : > { %8100 = vst [vmem:[#allocation19_spill] sm:$0xff] %v7351_v48  ;;  %v2931_v59 = vadd.f32 %v2915_v41, %v2808_v31  ;;  %v3029_v41 = vadd.f32 %v3016_v4, %v2932_v50 }
 0x4e3   : > { %v7353_v22 = vpop.f32.mrf.mxu0  ;;  %v3192_v34 = vpop.f32.mrf.mxu1 }
 0x4e4   : > { %8101 = vst [vmem:[#allocation20_spill] sm:$0xff] %v7353_v22  ;;  %v3025_v22 = vadd.f32 %v3006_v61, %v2928_v17  ;;  %v3028_v13 = vadd.f32 %v3012_v28, %v2931_v59  ;;  %v3210_v9 = vadd.f32 %v3192_v34, %v3107_v3  ;;  %v3030_v28 = vadd.f32 %v7341_v19, %v2933_v5 }
 0x4e5   : > { %v3194_v25 = vpop.f32.mrf.mxu1  ;;  %v3293_v14 = vpop.f32.mrf.mxu0  ;;  %v3110_v43 = vadd.f32 %v7345_v37, %v3029_v41 }
 0x4e6   : > { %v3106_v52 = vadd.f32 %v3087_v32, %v3025_v22  ;;  %v3109_v32 = vadd.f32 %v3093_v15, %v3028_v13  ;;  %v3211_v27 = vadd.f32 %v3194_v25, %v3108_v16  ;;  %v8102_v15 = vld [vmem:[#allocation16_spill] sm:$0xff]  ;;  %v8111_v16 = vld [vmem:[#allocation10_spill] sm:$0xff] }
 0x4e7   : > { %v3196_v12 = vpop.f32.mrf.mxu1  ;;  %v3295_v58 = vpop.f32.mrf.mxu0  ;;  %v3031_v22 = vadd.f32 %v8102_v15, %v2934_v56  ;;  %v8103_v34 = vld [vmem:[#allocation17_spill] sm:$0xff]  ;;  %v8104_v35 = vld [vmem:[#allocation18_spill] sm:$0xff] }
 0x4e8   : > { %v3209_v54 = vadd.f32 %v3190_v47, %v3106_v52  ;;  %v3313_v18 = vadd.f32 %v3295_v58, %v3210_v9  ;;  %v3212_v6 = vadd.f32 %v3196_v12, %v3109_v32  ;;  %v2935_v47 = vadd.f32 %v7339_v63, %v2812_v40  ;;  %v8117_v56 = vld [vmem:[#allocation13_spill] sm:$0xff] }
 0x4e9   : > { %v3200_v23 = vpop.f32.mrf.mxu1  ;;  %v3297_v38 = vpop.f32.mrf.mxu0  ;;  %v3111_v25 = vadd.f32 %v8103_v34, %v3030_v28  ;;  %v8105_v53 = vld [vmem:[#allocation19_spill] sm:$0xff] }
 0x4ea   : > { %v3312_v33 = vadd.f32 %v3293_v14, %v3209_v54  ;;  %v3314_v1 = vadd.f32 %v3297_v38, %v3211_v27  ;;  %v3213_v14 = vadd.f32 %v3200_v23, %v3110_v43  ;;  %v3032_v37 = vadd.f32 %v8104_v35, %v2935_v47 }
 0x4eb   : > { %v3202_v30 = vpop.f32.mrf.mxu1  ;;  %v3299_v20 = vpop.f32.mrf.mxu0  ;;  %v3112_v62 = vadd.f32 %v8105_v53, %v3031_v22  ;;  %v8110_v0 = vld [vmem:[#allocation20_spill] sm:$0xff] }
 0x4ec   : > { %v3315_v24 = vadd.f32 %v3299_v20, %v3212_v6  ;;  %v3214_v12 = vadd.f32 %v3202_v30, %v3111_v25  ;;  %v3113_v20 = vadd.f32 %v8110_v0, %v3032_v37  ;;  %v8119_v6 = vld [vmem:[#allocation14_spill] sm:$0xff]  ;;  %v8124_v37 = vld [vmem:[#allocation5_spill] sm:$0xff] }
 0x4ed   : > { %v3204_v48 = vpop.f32.mrf.mxu1  ;;  %v3303_v46 = vpop.f32.mrf.mxu0 }
 0x4ee   : > { %v3316_v38 = vadd.f32 %v3303_v46, %v3213_v14  ;;  %v3215_v59 = vadd.f32 %v3204_v48, %v3112_v62 }
 0x4ef   : > { %v3206_v49 = vpop.f32.mrf.mxu1  ;;  %v3305_v8 = vpop.f32.mrf.mxu0 }
 0x4f0   : > { %v3317_v54 = vadd.f32 %v3305_v8, %v3214_v12  ;;  %v3216_v11 = vadd.f32 %v3206_v49, %v3113_v20 }
 0x4f1   : > { %v3307_v61 = vpop.f32.mrf.mxu0  ;;  %v3396_v42 = vpop.f32.mrf.mxu1 }
 0x4f2   : > { %v3415_v7 = vadd.f32 %v3396_v42, %v3312_v33  ;;  %v3318_v50 = vadd.f32 %v3307_v61, %v3215_v59 }
 0x4f3   : > { %v3309_v44 = vpop.f32.mrf.mxu0  ;;  %v3398_v55 = vpop.f32.mrf.mxu1 }
 0x4f4   : > { %v3416_v36 = vadd.f32 %v3398_v55, %v3313_v18  ;;  %v3319_v55 = vadd.f32 %v3309_v44, %v3216_v11  ;;  %v8115_v18 = vld [vmem:[#allocation12_spill] sm:$0xff] }
 0x4f5   : > { %v3400_v52 = vpop.f32.mrf.mxu1  ;;  %v3493_v31 = vpop.f32.mrf.mxu0 }
 0x4f6   : > { %v3512_v4 = vadd.f32 %v3493_v31, %v3415_v7  ;;  %v3417_v58 = vadd.f32 %v3400_v52, %v3314_v1 }
 0x4f7   : > { %v3402_v2 = vpop.f32.mrf.mxu1  ;;  %v3495_v45 = vpop.f32.mrf.mxu0 }
 0x4f8   : > { %v3513_v19 = vadd.f32 %v3495_v45, %v3416_v36  ;;  %v7371_v63 = vadd.f32 %v3512_v4, %v8106_v29  ;;  %v3418_v51 = vadd.f32 %v3402_v2, %v3315_v24  ;;  %v8121_v36 = vld [vmem:[#allocation15_spill] sm:$0xff]  ;;  %v8123_v45 = vld [vmem:[#allocation4_spill] sm:$0xff] }
 0x4f9   : > { %v3406_v39 = vpop.f32.mrf.mxu1  ;;  %v3497_v17 = vpop.f32.mrf.mxu0 }
 0x4fa   : > { %8107 = vst [vmem:[#allocation16_spill] sm:$0xff] %v7371_v63  ;;  %v7374_v21 = vadd.f32 %v3513_v19, %v8108_v10  ;;  %v3514_v23 = vadd.f32 %v3497_v17, %v3417_v58  ;;  %v3419_v46 = vadd.f32 %v3406_v39, %v3316_v38  ;;  %v8125_v39 = vld [vmem:[#allocation6_spill] sm:$0xff] }
 0x4fb   : > { %v3408_v57 = vpop.f32.mrf.mxu1  ;;  %v3499_v3 = vpop.f32.mrf.mxu0 }
 0x4fc   : > { %8109 = vst [vmem:[#allocation17_spill] sm:$0xff] %v7374_v21  ;;  %v6285_v30 = vpack.c.bf16 %v7374_v21, %v7371_v63  ;;  %v3515_v26 = vadd.f32 %v3499_v3, %v3418_v51  ;;  %v7380_v9 = vadd.f32 %v3514_v23, %v8111_v16  ;;  %v3420_v33 = vadd.f32 %v3408_v57, %v3317_v54  ;;  %v8126_v16 = vld [vmem:[#allocation7_spill] sm:$0xff] }
 0x4fd   : > { %v3410_v42 = vpop.f32.mrf.mxu1  ;;  %v3503_v13 = vpop.f32.mrf.mxu0 }
 0x4fe   : > { %3602 = vst [vmem:[#allocation3 + $0x4] sm:$0xff] %v6285_v30  ;;  %8112 = vst [vmem:[#allocation18_spill] sm:$0xff] %v7380_v9  ;;  %v7383_v5 = vadd.f32 %v3515_v26, %v8113_v60  ;;  %v3516_v48 = vadd.f32 %v3503_v13, %v3419_v46  ;;  %v3421_v27 = vadd.f32 %v3410_v42, %v3318_v50 }
 0x4ff   : > { %v3412_v41 = vpop.f32.mrf.mxu1  ;;  %v3505_v8 = vpop.f32.mrf.mxu0 }
 0x500   : > { %8114 = vst [vmem:[#allocation19_spill] sm:$0xff] %v7383_v5  ;;  %v6286_v32 = vpack.c.bf16 %v7383_v5, %v7380_v9  ;;  %v3517_v49 = vadd.f32 %v3505_v8, %v3420_v33  ;;  %v7388_v7 = vadd.f32 %v3516_v48, %v8115_v18  ;;  %v3422_v40 = vadd.f32 %v3412_v41, %v3319_v55 }
 0x501   : > { %v3507_v61 = vpop.f32.mrf.mxu0 }
 0x502   : > { %3603 = vst [vmem:[#allocation3 + $0x14] sm:$0xff] %v6286_v32  ;;  %8116 = vst [vmem:[#allocation8_spill] sm:$0xff] %v7388_v7  ;;  %v7391_v28 = vadd.f32 %v3517_v49, %v8117_v56  ;;  %v3518_v43 = vadd.f32 %v3507_v61, %v3421_v27 }
 0x503   : > { %v3509_v52 = vpop.f32.mrf.mxu0 }
 0x504   : > { %8118 = vst [vmem:[#allocation9_spill] sm:$0xff] %v7391_v28  ;;  %v6287_v31 = vpack.c.bf16 %v7391_v28, %v7388_v7  ;;  %v3519_v44 = vadd.f32 %v3509_v52, %v3422_v40  ;;  %v7396_v1 = vadd.f32 %v3518_v43, %v8119_v6  ;;  %v6100_v6 = vld [vmem:[%s8016_s4 + $0x58] sm:$0xff] }
 0x505   : > { %v7403_v15 = vld [vmem:[#allocation3 + $0x8] sm:$0xff]  ;;  %v3606_v34 = vld [vmem:[#allocation3] sm:$0xff] }
 0x506   : > { %3604 = vst [vmem:[#allocation3 + $0x24] sm:$0xff] %v6287_v31  ;;  %8120 = vst [vmem:[#allocation20_spill] sm:$0xff] %v7396_v1  ;;  %v7399_v4 = vadd.f32 %v3519_v44, %v8121_v36  ;;  %v3614_v58 = vmul.bf16 %v8123_v45, %v3606_v34  ;;  %v3615_v62 = vmul.bf16 %v8124_v37, %v7403_v15  ;;  %v6099_v44 = vld [vmem:[%s8016_s4 + $0x50] sm:$0xff]  ;;  %v6097_v36 = vld [vmem:[%s8016_s4 + $0x40] sm:$0xff] }
 0x507   : > { %v3622_v51 = vmul.bf16 %v8125_v39, %v3606_v34  ;;  %v3623_v60 = vmul.bf16 %v8126_v16, %v7403_v15 }
 0x508   : > { %8122 = vst [vmem:[#allocation10_spill] sm:$0xff] %v7399_v4  ;;  %v6288_v47 = vpack.c.bf16 %v7399_v4, %v7396_v1 }
 0x509   : > { %v7405_v22 = vld [vmem:[#allocation3 + $0x18] sm:$0xff]  ;;  %v3608_v25 = vld [vmem:[#allocation3 + $0x10] sm:$0xff] }
 0x50a   : > { %3605 = vst [vmem:[#allocation3 + $0x34] sm:$0xff] %v6288_v47  ;;  %v7409_v14 = vcombine.low %v7403_v15, %v7405_v22  ;;  %v7411_v2 = vcombine.high %v3606_v34, %v3608_v25  ;;  %v3616_v24 = vmul.bf16 %v8123_v45, %v3608_v25  ;;  %v6117_v19 = vcombine.low %v3606_v34, %v3608_v25  ;;  %v6098_v47 = vld [vmem:[%s8016_s4 + $0x48] sm:$0xff] }
 0x50b   : > { %v3617_v53 = vmul.bf16 %v8124_v37, %v7405_v22  ;;  %v3624_v17 = vmul.bf16 %v8125_v39, %v3608_v25  ;;  %v3625_v33 = vmul.bf16 %v8126_v16, %v7405_v22  ;;  %v6157_v31 = vcombine.high %v7403_v15, %v7405_v22 }
 0x50c   : > { %3813 = vrot.lane.b32.xlu0 %v7409_v14, %s6451_s25  ;;  %3811 = vrot.lane.b32.xlu1 %v7411_v2, %s6451_s25  ;;  %v6108_v35 = vcombine.high %v3614_v58, %v3616_v24  ;;  %v6107_v38 = vcombine.low %v3614_v58, %v3616_v24 }
 0x50d   : > { %v6109_v12 = vcombine.low %v3615_v62, %v3617_v53  ;;  %v3610_v10 = vld [vmem:[#allocation3 + $0x20] sm:$0xff]  ;;  %v7431_v0 = vcombine.high %v3622_v51, %v3624_v17  ;;  %v3611_v59 = vld [vmem:[#allocation3 + $0x28] sm:$0xff]  ;;  %v6127_v13 = vcombine.low %v3622_v51, %v3624_v17  ;;  %v6129_v48 = vcombine.low %v3623_v60, %v3625_v33 }
 0x50e   : > { %v3618_v46 = vmul.bf16 %v8123_v45, %v3610_v10  ;;  %v3619_v26 = vmul.bf16 %v8124_v37, %v3611_v59  ;;  %v3626_v8 = vmul.bf16 %v8125_v39, %v3610_v10  ;;  %v3627_v27 = vmul.bf16 %v8126_v16, %v3611_v59 }
 0x50f   : > { %v6145_v18 = vcombine.high %v3623_v60, %v3625_v33  ;;  %v6151_v40 = vcombine.high %v3615_v62, %v3617_v53 }
 0x510   : > { %3809 = vrot.lane.b32.xlu1 %v6117_v19, %s6451_s25  ;;  %3688 = vrot.lane.b32.xlu0 %v6108_v35, %s6450_s24 }
 0x511   : > { %v3612_v29 = vld [vmem:[#allocation3 + $0x30] sm:$0xff]  ;;  %v3613_v20 = vld [vmem:[#allocation3 + $0x38] sm:$0xff] }
 0x512   : > { %v7429_v23 = vcombine.high %v3610_v10, %v3612_v29  ;;  %v6120_v57 = vcombine.low %v3610_v10, %v3612_v29  ;;  %v7437_v3 = vcombine.low %v3611_v59, %v3613_v20  ;;  %v3620_v54 = vmul.bf16 %v8123_v45, %v3612_v29 }
 0x513   : > { %v3621_v30 = vmul.bf16 %v8124_v37, %v3613_v20  ;;  %v3628_v41 = vmul.bf16 %v8125_v39, %v3612_v29  ;;  %v3629_v32 = vmul.bf16 %v8126_v16, %v3613_v20  ;;  %v6158_v56 = vcombine.high %v3611_v59, %v3613_v20  ;;  %v6396_v20 = vld [vmem:[%s8015_s3 + $0x130] sm:$0xff]  }
 0x514   : > { %3690 = vrot.lane.b32.xlu1 %v6109_v12, %s6450_s24  ;;  %3686 = vrot.lane.b32.xlu0 %v6107_v38, %s6450_s24  ;;  %v6111_v11 = vcombine.high %v3618_v46, %v3620_v54  ;;  %v6110_v42 = vcombine.low %v3618_v46, %v3620_v54  ;;  %v8127_v46 = vmov 0  }
 0x515   : > { %v6112_v50 = vcombine.low %v3619_v26, %v3621_v30  ;;  %v6131_v55 = vcombine.high %v3626_v8, %v3628_v41  ;;  %v6132_v49 = vcombine.low %v3627_v27, %v3629_v32  ;;  %v6130_v61 = vcombine.low %v3626_v8, %v3628_v41  ;;  %v6397_v8 = vld [vmem:[%s8015_s3 + $0x128] sm:$0xff]  }
 0x516   : > { %v6146_v43 = vcombine.high %v3627_v27, %v3629_v32  ;;  %v6152_v52 = vcombine.high %v3619_v26, %v3621_v30 }
 0x518   : > { %3817 = vrot.lane.b32.xlu1 %v7429_v23, %s6451_s25  ;;  %3934 = vrot.lane.b32.xlu0 %v7431_v0, %s6452_s26 }
 0x51c   : > { %3815 = vrot.lane.b32.xlu1 %v6120_v57, %s6451_s25  ;;  %3819 = vrot.lane.b32.xlu0 %v7437_v3, %s6451_s25 }
 0x520   : > { %3694 = vrot.lane.b32.xlu1 %v6111_v11, %s6450_s24  ;;  %3696 = vrot.lane.b32.xlu0 %v6112_v50, %s6450_s24 }
 0x524   : > { %3692 = vrot.lane.b32.xlu1 %v6110_v42, %s6450_s24  ;;  %3932 = vrot.lane.b32.xlu0 %v6127_v13, %s6452_s26  ;;  %v6398_v13 = vld [vmem:[%s8015_s3 + $0x138] sm:$0xff]  }
 0x528   : > { %3936 = vrot.lane.b32.xlu1 %v6129_v48, %s6452_s26  ;;  %4031 = vrot.lane.b32.xlu0 %v6108_v35, %s6453_s27 }
 0x52c   : > { %4033 = vrot.lane.b32.xlu1 %v6109_v12, %s6453_s27  ;;  %4029 = vrot.lane.b32.xlu0 %v6107_v38, %s6453_s27 }
 0x530   : > { %4215 = vrot.lane.b32.xlu1 %v6129_v48, %s6454_s28  ;;  %3940 = vrot.lane.b32.xlu0 %v6131_v55, %s6452_s26 }
 0x534   : > { %3942 = vrot.lane.b32.xlu1 %v6132_v49, %s6452_s26  ;;  %3938 = vrot.lane.b32.xlu0 %v6130_v61, %s6452_s26 }
 0x538   : > { %4213 = vrot.lane.b32.xlu1 %v7431_v0, %s6454_s28  ;;  %4217 = vrot.lane.b32.xlu0 %v6145_v18, %s6454_s28 }
 0x53c   : > { %4037 = vrot.lane.b32.xlu1 %v6111_v11, %s6453_s27  ;;  %4318 = vrot.lane.b32.xlu0 %v6109_v12, %s6455_s29 }
 0x540   : > { %4035 = vrot.lane.b32.xlu1 %v6110_v42, %s6453_s27  ;;  %4039 = vrot.lane.b32.xlu0 %v6112_v50, %s6453_s27  ;;  %v6395_v42 = vld [vmem:[%s8015_s3 + $0x120] sm:$0xff]  }
 0x544   : > { %4320 = vrot.lane.b32.xlu1 %v6151_v40, %s6455_s29  ;;  %4316 = vrot.lane.b32.xlu0 %v6108_v35, %s6455_s29 }
 0x548   : > { %4427 = vrot.lane.b32.xlu1 %v7437_v3, %s6456_s30  ;;  %4429 = vrot.lane.b32.xlu0 %v6158_v56, %s6456_s30 }
 0x54c   : > { %4221 = vrot.lane.b32.xlu1 %v6132_v49, %s6454_s28  ;;  %4223 = vrot.lane.b32.xlu0 %v6146_v43, %s6454_s28 }
 0x550   : > { %4219 = vrot.lane.b32.xlu1 %v6131_v55, %s6454_s28  ;;  %4324 = vrot.lane.b32.xlu0 %v6112_v50, %s6455_s29 }
 0x554   : > { %4326 = vrot.lane.b32.xlu1 %v6152_v52, %s6455_s29  ;;  %4322 = vrot.lane.b32.xlu0 %v6111_v11, %s6455_s29 }
 0x558   : > { %4425 = vrot.lane.b32.xlu1 %v7429_v23, %s6456_s30  ;;  %4423 = vrot.lane.b32.xlu0 %v6157_v31, %s6456_s30 }
 0x55c   : > { %4421 = vrot.lane.b32.xlu1 %v7409_v14, %s6456_s30  ;;  %4518 = vrot.lane.b32.xlu0 %v6129_v48, %s6457_s6 }
 0x560   : > { %4419 = vrot.lane.b32.xlu1 %v7411_v2, %s6456_s30  ;;  %4524 = vrot.lane.b32.xlu0 %v6132_v49, %s6457_s6 }
 0x564   : > { %4526 = vrot.lane.b32.xlu1 %v6146_v43, %s6457_s6  ;;  %4522 = vrot.lane.b32.xlu0 %v6131_v55, %s6457_s6  ;;  %v6399_v43 = vld [vmem:[%s8015_s3 + $0x140] sm:$0xff]  }
 0x568   : > { %4520 = vrot.lane.b32.xlu1 %v6145_v18, %s6457_s6  ;;  %4516 = vrot.lane.b32.xlu0 %v7431_v0, %s6457_s6 }
 0x56c   : > { %3642 = vperm.xlu1 %6315, %v6099_v44   ;;  %3647 = vperm.xlu0 %6314, %v6100_v6  }
 0x570   : > { %3632 = vperm.xlu1 %6315, %v6097_v36   ;;  %3637 = vperm.xlu0 %6314, %v6098_v47  }
 0x57e   : > { %v3814_v15 = vpop.permute.xlu0 %3813  ;;  %v3812_v22 = vpop.permute.xlu1 %3811 }
 0x57f   : > { %v3822_v17 = vsel %vm600_vm11, %v3812_v22, %v3814_v15 }
 0x582   : > { %v3810_v34 = vpop.permute.xlu1 %3809  ;;  %v3689_v25 = vpop.permute.xlu0 %3688 }
 0x583   : > { %v3821_v0 = vsel %vm600_vm11, %v3810_v34, %v3812_v22  ;;  %v6401_v34 = vld [vmem:[%s8015_s3 + $0x150] sm:$0xff]  }
 0x586   : > { %v3691_v24 = vpop.permute.xlu1 %3690  ;;  %v3687_v58 = vpop.permute.xlu0 %3686 }
 0x587   : > { %v3699_v30 = vsel %vm489_vm9, %v3689_v25, %v3691_v24  ;;  %v3698_v50 = vsel %vm489_vm9, %v3687_v58, %v3689_v25 }
 0x58a   : > { %v3818_v19 = vpop.permute.xlu1 %3817  ;;  %v3935_v35 = vpop.permute.xlu0 %3934 }
 0x58e   : > { %v3816_v53 = vpop.permute.xlu1 %3815  ;;  %v3820_v62 = vpop.permute.xlu0 %3819 }
 0x58f   : > { %v3823_v12 = vsel %vm600_vm11, %v3816_v53, %v3818_v19  ;;  %v3824_v38 = vsel %vm600_vm11, %v3818_v19, %v3820_v62  ;;  %v6403_v53 = vld [vmem:[%s8015_s3 + $0x158] sm:$0xff]  }
 0x590   : > { %3847 = vmatprep.subr.bf16.mxu0 %v3824_v38 }
 0x591   : > { %3848 = vmatpush1.bf16.msra.mxu0 %v3823_v12 }
 0x592   : > { %v3695_v29 = vpop.permute.xlu1 %3694  ;;  %3849 = vmatprep.subr.bf16.mxu0 %v3822_v17  ;;  %v3697_v51 = vpop.permute.xlu0 %3696  ;;  %v6404_v17 = vld [vmem:[%s8015_s3 + $0x168] sm:$0xff]  }
 0x593   : > { %v3701_v10 = vsel %vm489_vm9, %v3695_v29, %v3697_v51 }
 0x594   : > { %3724 = vmatprep.subr.bf16.mxu1 %v3701_v10 }
 0x595   : > { %3850 = vmatpush1.bf16.msra.mxu0 %v3821_v0 }
 0x596   : > { %v3693_v59 = vpop.permute.xlu1 %3692  ;;  %v3933_v57 = vpop.permute.xlu0 %3932 }
 0x597   : > { %v3700_v54 = vsel %vm489_vm9, %v3693_v59, %v3695_v29  ;;  %v3944_v56 = vsel %vm709_vm13, %v3933_v57, %v3935_v35  ;;  %v6405_v57 = vld [vmem:[%s8015_s3 + $0x170] sm:$0xff]  }
 0x598   : > { %3725 = vmatpush1.bf16.msra.mxu1 %v3700_v54  ;;  %6123 = vmatmul.mubr.msk.bf16.vlgmr.msra.gmra.mxu0 %vm1539_vm4, %v6396_v20 }
 0x599   : > { %3726 = vmatprep.subr.bf16.mxu1 %v3699_v30  ;;  %3877 = vmatprep.mubr.bf16.mxu0 %v8127_v46 }
 0x59a   : > { %v3937_v26 = vpop.permute.xlu1 %3936  ;;  %v4032_v11 = vpop.permute.xlu0 %4031 }
 0x59b   : > { %v3945_v61 = vsel %vm709_vm13, %v3935_v35, %v3937_v26 }
 0x59c   : > { %3727 = vmatpush1.bf16.msra.mxu1 %v3698_v50 }
 0x59e   : > { %v4034_v33 = vpop.permute.xlu1 %4033  ;;  %v4030_v60 = vpop.permute.xlu0 %4029 }
 0x59f   : > { %6113 = vmatmul.mubr.msk.bf16.vlgmr.msra.gmra.mxu1 %vm1539_vm4, %v6395_v42 }
 0x5a0   : > { %3754 = vmatprep.mubr.bf16.mxu1 %v8127_v46  ;;  %6124 = vmatmul.mubr.msk.bf16.gmra.mxu0 %vm1539_vm4, %v6398_v13  ;;  %v6406_v13 = vld [vmem:[%s8015_s3 + $0x180] sm:$0xff]  }
 0x5a1   : > { %4087 = vmatprep.mubr.bf16.mxu0 %v8127_v46 }
 0x5a2   : > { %v7535_v48 = vpop.permute.xlu1 %4215  ;;  %v3941_v41 = vpop.permute.xlu0 %3940 }
 0x5a6   : > { %v3943_v55 = vpop.permute.xlu1 %3942  ;;  %v3939_v32 = vpop.permute.xlu0 %3938 }
 0x5a7   : > { %v3946_v27 = vsel %vm709_vm13, %v3939_v32, %v3941_v41  ;;  %6114 = vmatmul.mubr.msk.bf16.gmra.mxu1 %vm1539_vm4, %v6397_v8  ;;  %v3947_v49 = vsel %vm709_vm13, %v3941_v41, %v3943_v55  ;;  %v6407_v41 = vld [vmem:[%s8015_s3 + $0x178] sm:$0xff]  }
 0x5a8   : > { %3970 = vmatprep.subr.bf16.mxu1 %v3947_v49  ;;  %3990 = vmatprep.mubr.bf16.mxu1 %v8127_v46 }
 0x5a9   : > { %3971 = vmatpush1.bf16.msra.mxu1 %v3946_v27  ;;  %v6408_v27 = vld [vmem:[%s8015_s3 + $0x188] sm:$0xff]  }
 0x5aa   : > { %v4214_v18 = vpop.permute.xlu1 %4213  ;;  %3972 = vmatprep.subr.bf16.mxu1 %v3945_v61  ;;  %v4218_v40 = vpop.permute.xlu0 %4217 }
 0x5ab   : > { %v4226_v29 = vsel %vm977_vm15, %v7535_v48, %v4218_v40  ;;  %v4225_v59 = vsel %vm977_vm15, %v4214_v18, %v7535_v48 }
 0x5ad   : > { %3973 = vmatpush1.bf16.msra.mxu1 %v3944_v56  ;;  %v6409_v56 = vld [vmem:[%s8015_s3 + $0x190] sm:$0xff]  }
 0x5ae   : > { %v4038_v52 = vpop.permute.xlu1 %4037  ;;  %4148 = vmatprep.subr.bf16.mxu1 %v7437_v3  ;;  %v4319_v31 = vpop.permute.xlu0 %4318  ;;  %v6400_v3 = vld [vmem:[%s8015_s3 + $0x148] sm:$0xff]  }
 0x5b0   : > { %6133 = vmatmul.mubr.msk.bf16.vlgmr.msra.gmra.mxu1 %vm1539_vm4, %v6399_v43 }
 0x5b1   : > { %4149 = vmatpush1.bf16.msra.mxu1 %v7429_v23  ;;  %4000 = vmatprep.mubr.bf16.mxu1 %v8127_v46  ;;  %v4042_v23 = vsel %vm801_vm14, %v4032_v11, %v4034_v33 }
 0x5b2   : > { %v4036_v44 = vpop.permute.xlu1 %4035  ;;  %4150 = vmatprep.subr.bf16.mxu1 %v7409_v14  ;;  %v4040_v6 = vpop.permute.xlu0 %4039  ;;  %v4041_v14 = vsel %vm801_vm14, %v4030_v60, %v4032_v11 }
 0x5b3   : > { %v4043_v36 = vsel %vm801_vm14, %v4036_v44, %v4038_v52  ;;  %v4044_v47 = vsel %vm801_vm14, %v4038_v52, %v4040_v6  ;;  %v6410_v6 = vld [vmem:[%s8015_s3 + $0x1a0] sm:$0xff]  }
 0x5b4   : > { %4067 = vmatprep.subr.bf16.mxu0 %v4044_v47  ;;  %v6412_v47 = vld [vmem:[%s8015_s3 + $0x1a8] sm:$0xff]  }
 0x5b5   : > { %4068 = vmatpush1.bf16.msra.mxu0 %v4043_v36  ;;  %4151 = vmatpush1.bf16.msra.mxu1 %v7411_v2  ;;  %v6402_v2 = vld [vmem:[%s8015_s3 + $0x160] sm:$0xff]   ;;  %v6411_v36 = vld [vmem:[%s8015_s3 + $0x198] sm:$0xff]  }
 0x5b6   : > { %v4321_v15 = vpop.permute.xlu1 %4320  ;;  %4069 = vmatprep.subr.bf16.mxu0 %v4042_v23  ;;  %v4317_v22 = vpop.permute.xlu0 %4316 }
 0x5b7   : > { %v4329_v30 = vsel %vm1070_vm0, %v4319_v31, %v4321_v15  ;;  %v4328_v42 = vsel %vm1070_vm0, %v4317_v22, %v4319_v31 }
 0x5b8   : > { %6134 = vmatmul.mubr.msk.bf16.gmra.mxu1 %vm1539_vm4, %v6400_v3 }
 0x5b9   : > { %4070 = vmatpush1.bf16.msra.mxu0 %v4041_v14  ;;  %4168 = vmatprep.mubr.bf16.mxu1 %v8127_v46 }
 0x5ba   : > { %v4428_v25 = vpop.permute.xlu1 %4427  ;;  %v4430_v24 = vpop.permute.xlu0 %4429 }
 0x5bb   : > { %v4434_v54 = vsel %vm1163_vm1, %v4428_v25, %v4430_v24 }
 0x5bc   : > { %6137 = vmatmul.mubr.msk.bf16.vlgmr.msra.gmra.mxu0 %vm1539_vm4, %v6401_v34 }
 0x5bd   : > { %4097 = vmatprep.mubr.bf16.mxu0 %v8127_v46 }
 0x5be   : > { %v4222_v58 = vpop.permute.xlu1 %4221  ;;  %v4224_v19 = vpop.permute.xlu0 %4223 }
 0x5bf   : > { %v4228_v35 = vsel %vm977_vm15, %v4222_v58, %v4224_v19 }
 0x5c0   : > { %6141 = vmatmul.mubr.msk.bf16.vlgmr.msra.gmra.mxu1 %vm1539_vm4, %v6402_v2  ;;  %4251 = vmatprep.subr.bf16.mxu0 %v4228_v35 }
 0x5c1   : > { %4178 = vmatprep.mubr.bf16.mxu1 %v8127_v46 }
 0x5c2   : > { %v4220_v62 = vpop.permute.xlu1 %4219  ;;  %v4325_v12 = vpop.permute.xlu0 %4324 }
 0x5c3   : > { %v4227_v38 = vsel %vm977_vm15, %v4220_v62, %v4222_v58 }
 0x5c4   : > { %6138 = vmatmul.mubr.msk.bf16.gmra.mxu0 %vm1539_vm4, %v6403_v53 }
 0x5c5   : > { %4252 = vmatpush1.bf16.msra.mxu0 %v4227_v38  ;;  %4271 = vmatprep.mubr.bf16.mxu0 %v8127_v46 }
 0x5c6   : > { %4253 = vmatprep.subr.bf16.mxu0 %v4226_v29  ;;  %v4327_v51 = vpop.permute.xlu1 %4326  ;;  %v4323_v10 = vpop.permute.xlu0 %4322 }
 0x5c7   : > { %v4330_v0 = vsel %vm1070_vm0, %v4323_v10, %v4325_v12  ;;  %v4331_v20 = vsel %vm1070_vm0, %v4325_v12, %v4327_v51 }
 0x5c8   : > { %6142 = vmatmul.mubr.msk.bf16.gmra.mxu1 %vm1539_vm4, %v6404_v17  ;;  %4354 = vmatprep.subr.bf16.mxu1 %v4331_v20 }
 0x5c9   : > { %4254 = vmatpush1.bf16.msra.mxu0 %v4225_v59  ;;  %4355 = vmatpush1.bf16.msra.mxu1 %v4330_v0 }
 0x5ca   : > { %4457 = vmatprep.subr.bf16.mxu0 %v4434_v54  ;;  %v4426_v26 = vpop.permute.xlu1 %4425  ;;  %4356 = vmatprep.subr.bf16.mxu1 %v4329_v30  ;;  %v4424_v11 = vpop.permute.xlu0 %4423 }
 0x5cb   : > { %v4433_v50 = vsel %vm1163_vm1, %v4426_v26, %v4428_v25  ;;  %4374 = vmatprep.mubr.bf16.mxu1 %v8127_v46 }
 0x5cc   : > { %6147 = vmatmul.mubr.msk.bf16.vlgmr.msra.gmra.mxu0 %vm1539_vm4, %v6405_v57 }
 0x5cd   : > { %4458 = vmatpush1.bf16.msra.mxu0 %v4433_v50  ;;  %4357 = vmatpush1.bf16.msra.mxu1 %v4328_v42 }
 0x5ce   : > { %v4422_v33 = vpop.permute.xlu1 %4421  ;;  %v4519_v60 = vpop.permute.xlu0 %4518  ;;  %4281 = vmatprep.mubr.bf16.mxu0 %v8127_v46 }
 0x5cf   : > { %v4432_v48 = vsel %vm1163_vm1, %v4422_v33, %v4424_v11 }
 0x5d0   : > { %6153 = vmatmul.mubr.msk.bf16.vlgmr.msra.gmra.mxu1 %vm1539_vm4, %v6406_v13  ;;  %4459 = vmatprep.subr.bf16.mxu0 %v4432_v48 }
 0x5d1   : > { %4384 = vmatprep.mubr.bf16.mxu1 %v8127_v46 }
 0x5d2   : > { %v4420_v8 = vpop.permute.xlu1 %4419  ;;  %v4525_v55 = vpop.permute.xlu0 %4524 }
 0x5d3   : > { %v4431_v32 = vsel %vm1163_vm1, %v4420_v8, %v4422_v33 }
 0x5d4   : > { %6148 = vmatmul.mubr.msk.bf16.gmra.mxu0 %vm1539_vm4, %v6407_v41 }
 0x5d5   : > { %4460 = vmatpush1.bf16.msra.mxu0 %v4431_v32  ;;  %4477 = vmatprep.mubr.bf16.mxu0 %v8127_v46 }
 0x5d6   : > { %v4527_v49 = vpop.permute.xlu1 %4526  ;;  %v4523_v61 = vpop.permute.xlu0 %4522 }
 0x5d7   : > { %v4530_v18 = vsel %vm1255_vm2, %v4523_v61, %v4525_v55  ;;  %v4531_v40 = vsel %vm1255_vm2, %v4525_v55, %v4527_v49 }
 0x5d8   : > { %6154 = vmatmul.mubr.msk.bf16.gmra.mxu1 %vm1539_vm4, %v6408_v27  ;;  %4554 = vmatprep.subr.bf16.mxu1 %v4531_v40 }
 0x5d9   : > { %4555 = vmatpush1.bf16.msra.mxu1 %v4530_v18  ;;  %4574 = vmatprep.mubr.bf16.mxu1 %v8127_v46 }
 0x5da   : > { %v4521_v43 = vpop.permute.xlu1 %4520  ;;  %v4517_v52 = vpop.permute.xlu0 %4516 }
 0x5db   : > { %v4528_v31 = vsel %vm1255_vm2, %v4517_v52, %v4519_v60  ;;  %v4529_v44 = vsel %vm1255_vm2, %v4519_v60, %v4521_v43 }
 0x5dc   : > { %6159 = vmatmul.mubr.msk.bf16.vlgmr.msra.gmra.mxu0 %vm1539_vm4, %v6409_v56  ;;  %4556 = vmatprep.subr.bf16.mxu1 %v4529_v44 }
 0x5dd   : > { %4557 = vmatpush1.bf16.msra.mxu1 %v4528_v31  ;;  %4487 = vmatprep.mubr.bf16.mxu0 %v8127_v46 }
 0x5e0   : > { %6163 = vmatmul.mubr.msk.bf16.vlgmr.msra.gmra.mxu1 %vm1539_vm4, %v6410_v6 }
 0x5e1   : > { %4584 = vmatprep.mubr.bf16.mxu1 %v8127_v46 }
 0x5e4   : > { %6160 = vmatmul.mubr.msk.bf16.gmra.mxu0 %vm1539_vm4, %v6411_v36 }
 0x5e5   : > { %4827 = vmatprep.mubr.bf16.mxu0 %v8127_v46 }
 0x5e7   : > { %v3643_v41 = vpop.permute.xlu1 %3642  ;;  %v3648_v49 = vpop.permute.xlu0 %3647 }
 0x5e8   : > { %6164 = vmatmul.mubr.msk.bf16.gmra.mxu1 %vm1539_vm4, %v6412_v47 }
 0x5e9   : > { %4950 = vmatprep.mubr.bf16.mxu1 %v8127_v46 }
 0x5eb   : > { %v3633_v40 = vpop.permute.xlu1 %3632  ;;  %v3638_v6 = vpop.permute.xlu0 %3637 }
 0x658   : > { %v3869_v3 = vpop.f32.mrf.mxu0 }
 0x65a   : > { %v3871_v22 = vpop.f32.mrf.mxu0 }
 0x65c   : > { %v3873_v25 = vpop.f32.mrf.mxu0 }
 0x65e   : > { %v3875_v58 = vpop.f32.mrf.mxu0 }
 0x65f   : > { %v3746_v23 = vpop.f32.mrf.mxu1 }
 0x660   : > { %v3879_v53 = vpop.f32.mrf.mxu0  ;;  %v3765_v52 = vadd.f32 %v3746_v23, %v3633_v40 }
 0x661   : > { %v3748_v15 = vpop.f32.mrf.mxu1 }
 0x662   : > { %v7646_v12 = vpop.f32.mrf.mxu0  ;;  %v3766_v36 = vadd.f32 %v3748_v15, %v3633_v40  ;;  %v3888_v1 = vadd.f32 %v3869_v3, %v3765_v52 }
 0x663   : > { %v3750_v14 = vpop.f32.mrf.mxu1 }
 0x664   : > { %v7648_v29 = vpop.f32.mrf.mxu0  ;;  %v3767_v28 = vadd.f32 %v3750_v14, %v3638_v6  ;;  %v3889_v9 = vadd.f32 %v3871_v22, %v3766_v36 }
 0x665   : > { %v3752_v34 = vpop.f32.mrf.mxu1 }
 0x666   : > { %v7652_v0 = vpop.f32.mrf.mxu0  ;;  %v3768_v21 = vadd.f32 %v3752_v34, %v3638_v6  ;;  %v3890_v37 = vadd.f32 %v3873_v25, %v3767_v28 }
 0x667   : > { %v3756_v24 = vpop.f32.mrf.mxu1 }
 0x668   : > { %v3769_v46 = vadd.f32 %v3756_v24, %v3643_v41 }
 0x669   : > { %v3758_v2 = vpop.f32.mrf.mxu1 }
 0x66a   : > { %v3770_v23 = vadd.f32 %v3758_v2, %v3643_v41  ;;  %v3892_v3 = vadd.f32 %v3879_v53, %v3769_v46 }
 0x66b   : > { %v7642_v19 = vpop.f32.mrf.mxu1 }
 0x66c   : > { %v3771_v14 = vadd.f32 %v7642_v19, %v3648_v49  ;;  %v3893_v28 = vadd.f32 %v7646_v12, %v3770_v23 }
 0x66d   : > { %v7644_v35 = vpop.f32.mrf.mxu1 }
 0x670   : > { %v3992_v62 = vpop.f32.mrf.mxu1 }
 0x671   : > { %v4011_v63 = vadd.f32 %v3992_v62, %v3888_v1 }
 0x672   : > { %v3994_v38 = vpop.f32.mrf.mxu1 }
 0x673   : > { %v4012_v45 = vadd.f32 %v3994_v38, %v3889_v9 }
 0x674   : > { %v3996_v17 = vpop.f32.mrf.mxu1 }
 0x675   : > { %v4013_v15 = vadd.f32 %v3996_v17, %v3890_v37 }
 0x676   : > { %v3998_v51 = vpop.f32.mrf.mxu1 }
 0x678   : > { %v7650_v10 = vpop.f32.mrf.mxu1 }
 0x679   : > { %v4015_v9 = vadd.f32 %v7650_v10, %v3892_v3 }
 0x67a   : > { %v7654_v20 = vpop.f32.mrf.mxu1 }
 0x67b   : > { %v4016_v19 = vadd.f32 %v7654_v20, %v3893_v28 }
 0x67c   : > { %v7656_v59 = vpop.f32.mrf.mxu1  ;;  %v4089_v57 = vpop.f32.mrf.mxu0 }
 0x67e   : > { %v7658_v54 = vpop.f32.mrf.mxu1  ;;  %v4091_v30 = vpop.f32.mrf.mxu0 }
 0x67f   : > { %v4109_v40 = vadd.f32 %v4091_v30, %v4012_v45 }
 0x680   : > { %v4093_v26 = vpop.f32.mrf.mxu0  ;;  %v4170_v11 = vpop.f32.mrf.mxu1 }
 0x681   : > { %v4110_v1 = vadd.f32 %v4093_v26, %v4013_v15 }
 0x682   : > { %v4095_v50 = vpop.f32.mrf.mxu0  ;;  %v4172_v42 = vpop.f32.mrf.mxu1 }
 0x683   : > { %v4190_v24 = vadd.f32 %v4172_v42, %v4109_v40 }
 0x684   : > { %v4099_v13 = vpop.f32.mrf.mxu0  ;;  %v4174_v33 = vpop.f32.mrf.mxu1 }
 0x685   : > { %v4191_v45 = vadd.f32 %v4174_v33, %v4110_v1  ;;  %v4112_v53 = vadd.f32 %v4099_v13, %v4015_v9 }
 0x686   : > { %v7660_v60 = vpop.f32.mrf.mxu0  ;;  %v4176_v48 = vpop.f32.mrf.mxu1 }
 0x687   : > { %v4113_v26 = vadd.f32 %v7660_v60, %v4016_v19 }
 0x688   : > { %v7662_v8 = vpop.f32.mrf.mxu0  ;;  %v7664_v55 = vpop.f32.mrf.mxu1 }
 0x689   : > { %8128 = vst [vmem:[#allocation11_spill] sm:$0xff] %v7662_v8 }
 0x68a   : > { %v7666_v32 = vpop.f32.mrf.mxu0  ;;  %v7668_v27 = vpop.f32.mrf.mxu1 }
 0x68b   : > { %8129 = vst [vmem:[#allocation12_spill] sm:$0xff] %v7666_v32  ;;  %8130 = vst [vmem:[#allocation13_spill] sm:$0xff] %v7668_v27  ;;  %v3891_v27 = vadd.f32 %v3875_v58, %v3768_v21  ;;  %v3894_v58 = vadd.f32 %v7648_v29, %v3771_v14 }
 0x68c   : > { %v7670_v61 = vpop.f32.mrf.mxu1  ;;  %v4273_v18 = vpop.f32.mrf.mxu0 }
 0x68d   : > { %8131 = vst [vmem:[#allocation14_spill] sm:$0xff] %v7670_v61  ;;  %v4014_v34 = vadd.f32 %v3998_v51, %v3891_v27  ;;  %v4017_v10 = vadd.f32 %v7656_v59, %v3894_v58 }
 0x68e   : > { %v7672_v56 = vpop.f32.mrf.mxu1  ;;  %v4275_v43 = vpop.f32.mrf.mxu0 }
 0x68f   : > { %8132 = vst [vmem:[#allocation15_spill] sm:$0xff] %v7672_v56  ;;  %v4108_v56 = vadd.f32 %v4089_v57, %v4011_v63  ;;  %v3772_v63 = vadd.f32 %v7644_v35, %v3648_v49  ;;  %v4111_v37 = vadd.f32 %v4095_v50, %v4014_v34  ;;  %v4293_v2 = vadd.f32 %v4275_v43, %v4190_v24 }
 0x690   : > { %v4277_v31 = vpop.f32.mrf.mxu0  ;;  %v4376_v44 = vpop.f32.mrf.mxu1 }
 0x691   : > { %v4189_v8 = vadd.f32 %v4170_v11, %v4108_v56  ;;  %v4192_v51 = vadd.f32 %v4176_v48, %v4111_v37  ;;  %v4294_v57 = vadd.f32 %v4277_v31, %v4191_v45  ;;  %v3895_v35 = vadd.f32 %v7652_v0, %v3772_v63  ;;  %v8133_v48 = vld [vmem:[#allocation11_spill] sm:$0xff] }
 0x692   : > { %v4279_v47 = vpop.f32.mrf.mxu0  ;;  %v4378_v4 = vpop.f32.mrf.mxu1  ;;  %v4193_v11 = vadd.f32 %v7664_v55, %v4112_v53  ;;  %v8135_v43 = vld [vmem:[#allocation12_spill] sm:$0xff] }
 0x693   : > { %v4292_v62 = vadd.f32 %v4273_v18, %v4189_v8  ;;  %v4396_v12 = vadd.f32 %v4378_v4, %v4293_v2  ;;  %v4295_v29 = vadd.f32 %v4279_v47, %v4192_v51  ;;  %v4018_v41 = vadd.f32 %v7658_v54, %v3895_v35  ;;  %v8134_v4 = vld [vmem:[#allocation13_spill] sm:$0xff] }
 0x694   : > { %v4283_v7 = vpop.f32.mrf.mxu0  ;;  %v4380_v5 = vpop.f32.mrf.mxu1  ;;  %v4114_v8 = vadd.f32 %v8133_v48, %v4017_v10  ;;  %v4194_v27 = vadd.f32 %v8134_v4, %v4113_v26  ;;  %v8136_v31 = vld [vmem:[#allocation14_spill] sm:$0xff] }
 0x695   : > { %v4395_v46 = vadd.f32 %v4376_v44, %v4292_v62  ;;  %v4397_v33 = vadd.f32 %v4380_v5, %v4294_v57  ;;  %v4296_v49 = vadd.f32 %v4283_v7, %v4193_v11  ;;  %v4115_v55 = vadd.f32 %v8135_v43, %v4018_v41 }
 0x696   : > { %v4285_v16 = vpop.f32.mrf.mxu0  ;;  %v4382_v39 = vpop.f32.mrf.mxu1  ;;  %v4195_v44 = vadd.f32 %v8136_v31, %v4114_v8  ;;  %v8137_v3 = vld [vmem:[#allocation15_spill] sm:$0xff] }
 0x697   : > { %v4398_v59 = vadd.f32 %v4382_v39, %v4295_v29  ;;  %v4297_v6 = vadd.f32 %v4285_v16, %v4194_v27  ;;  %v4196_v14 = vadd.f32 %v8137_v3, %v4115_v55 }
 0x698   : > { %v4287_v61 = vpop.f32.mrf.mxu0  ;;  %v4386_v32 = vpop.f32.mrf.mxu1 }
 0x699   : > { %v4399_v5 = vadd.f32 %v4386_v32, %v4296_v49  ;;  %v4298_v7 = vadd.f32 %v4287_v61, %v4195_v44  ;;  %v8139_v49 = vld [vmem:[#allocation5_spill] sm:$0xff] }
 0x69a   : > { %v4289_v52 = vpop.f32.mrf.mxu0  ;;  %v4388_v22 = vpop.f32.mrf.mxu1 }
 0x69b   : > { %v4400_v39 = vadd.f32 %v4388_v22, %v4297_v6  ;;  %v4299_v63 = vadd.f32 %v4289_v52, %v4196_v14 }
 0x69c   : > { %v4390_v25 = vpop.f32.mrf.mxu1  ;;  %v4479_v21 = vpop.f32.mrf.mxu0 }
 0x69d   : > { %v4498_v30 = vadd.f32 %v4479_v21, %v4395_v46  ;;  %v4401_v9 = vadd.f32 %v4390_v25, %v4298_v7 }
 0x69e   : > { %v4392_v38 = vpop.f32.mrf.mxu1  ;;  %v4481_v17 = vpop.f32.mrf.mxu0 }
 0x69f   : > { %v4499_v20 = vadd.f32 %v4481_v17, %v4396_v12  ;;  %v4402_v19 = vadd.f32 %v4392_v38, %v4299_v63 }
 0x6a0   : > { %v4483_v50 = vpop.f32.mrf.mxu0  ;;  %v4576_v42 = vpop.f32.mrf.mxu1 }
 0x6a1   : > { %v4595_v13 = vadd.f32 %v4576_v42, %v4498_v30  ;;  %v4500_v56 = vadd.f32 %v4483_v50, %v4397_v33 }
 0x6a2   : > { %v4485_v0 = vpop.f32.mrf.mxu0  ;;  %v4578_v18 = vpop.f32.mrf.mxu1 }
 0x6a3   : > { %v4596_v60 = vadd.f32 %v4578_v18, %v4499_v20  ;;  %v4603_v23 = vmax.f32 %v4595_v13, 0.0  ;;  %v4501_v54 = vadd.f32 %v4485_v0, %v4398_v59  ;;  %v8138_v13 = vld [vmem:[#allocation4_spill] sm:$0xff] }
 0x6a4   : > { %v4489_v36 = vpop.f32.mrf.mxu0  ;;  %v4580_v47 = vpop.f32.mrf.mxu1 }
 0x6a5   : > { %v4604_v15 = vmax.f32 %v4596_v60, 0.0  ;;  %v4597_v40 = vadd.f32 %v4580_v47, %v4500_v56  ;;  %v4502_v62 = vadd.f32 %v4489_v36, %v4399_v5  ;;  %v8140_v60 = vld [vmem:[#allocation6_spill] sm:$0xff] }
 0x6a6   : > { %v4491_v34 = vpop.f32.mrf.mxu0  ;;  %v4582_v1 = vpop.f32.mrf.mxu1 }
 0x6a7   : > { %v6289_v24 = vpack.c.bf16 %v4604_v15, %v4603_v23  ;;  %v4598_v28 = vadd.f32 %v4582_v1, %v4501_v54  ;;  %v4605_v32 = vmax.f32 %v4597_v40, 0.0  ;;  %v4503_v37 = vadd.f32 %v4491_v34, %v4400_v39 }
 0x6a8   : > { %v4493_v21 = vpop.f32.mrf.mxu0  ;;  %v4586_v16 = vpop.f32.mrf.mxu1 }
 0x6a9   : > { %4685 = vst [vmem:[#allocation3 + $0x4] sm:$0xff] %v6289_v24  ;;  %v4606_v45 = vmax.f32 %v4598_v28, 0.0  ;;  %v4599_v2 = vadd.f32 %v4586_v16, %v4502_v62  ;;  %v4504_v61 = vadd.f32 %v4493_v21, %v4401_v9  ;;  %v8141_v24 = vld [vmem:[#allocation7_spill] sm:$0xff] }
 0x6aa   : > { %v4495_v46 = vpop.f32.mrf.mxu0  ;;  %v4588_v58 = vpop.f32.mrf.mxu1 }
 0x6ab   : > { %v6290_v53 = vpack.c.bf16 %v4606_v45, %v4605_v32  ;;  %v4600_v17 = vadd.f32 %v4588_v58, %v4503_v37  ;;  %v4607_v22 = vmax.f32 %v4599_v2, 0.0  ;;  %v4505_v57 = vadd.f32 %v4495_v46, %v4402_v19 }
 0x6ac   : > { %v4590_v51 = vpop.f32.mrf.mxu1 }
 0x6ad   : > { %4686 = vst [vmem:[#allocation3 + $0x14] sm:$0xff] %v6290_v53  ;;  %v4608_v12 = vmax.f32 %v4600_v17, 0.0  ;;  %v4601_v52 = vadd.f32 %v4590_v51, %v4504_v61  ;;  %v6201_v17 = vld [vmem:[%s8016_s4 + $0x60] sm:$0xff]  ;;  %v6202_v51 = vld [vmem:[%s8016_s4 + $0x68] sm:$0xff] }
 0x6ae   : > { %v4592_v25 = vpop.f32.mrf.mxu1 }
 0x6af   : > { %v6291_v30 = vpack.c.bf16 %v4608_v12, %v4607_v22  ;;  %v4602_v35 = vadd.f32 %v4592_v25, %v4505_v57  ;;  %v4609_v10 = vmax.f32 %v4601_v52, 0.0  ;;  %v6203_v22 = vld [vmem:[%s8016_s4 + $0x70] sm:$0xff]  ;;  %v6204_v57 = vld [vmem:[%s8016_s4 + $0x78] sm:$0xff] }
 0x6b0   : > { %v7690_v50 = vld [vmem:[#allocation3 + $0x8] sm:$0xff]  ;;  %v4689_v38 = vld [vmem:[#allocation3] sm:$0xff] }
 0x6b1   : > { %4687 = vst [vmem:[#allocation3 + $0x24] sm:$0xff] %v6291_v30  ;;  %v4610_v26 = vmax.f32 %v4602_v35, 0.0  ;;  %v4697_v8 = vmul.bf16 %v8138_v13, %v4689_v38  ;;  %v4698_v18 = vmul.bf16 %v8139_v49, %v7690_v50  ;;  %v4705_v31 = vmul.bf16 %v8140_v60, %v4689_v38 }
 0x6b2   : > { %v4706_v28 = vmul.bf16 %v8141_v24, %v7690_v50 }
 0x6b3   : > { %v6292_v11 = vpack.c.bf16 %v4610_v26, %v4609_v10 }
 0x6b4   : > { %v7692_v42 = vld [vmem:[#allocation3 + $0x18] sm:$0xff]  ;;  %v4691_v29 = vld [vmem:[#allocation3 + $0x10] sm:$0xff] }
 0x6b5   : > { %4688 = vst [vmem:[#allocation3 + $0x34] sm:$0xff] %v6292_v11  ;;  %v7696_v33 = vcombine.low %v7690_v50, %v7692_v42  ;;  %v7698_v20 = vcombine.high %v4689_v38, %v4691_v29  ;;  %v4699_v41 = vmul.bf16 %v8138_v13, %v4691_v29  ;;  %v6261_v48 = vcombine.high %v7690_v50, %v7692_v42 }
 0x6b6   : > { %v6221_v4 = vcombine.low %v4689_v38, %v4691_v29  ;;  %v4700_v0 = vmul.bf16 %v8139_v49, %v7692_v42  ;;  %v4707_v43 = vmul.bf16 %v8140_v60, %v4691_v29  ;;  %v4708_v62 = vmul.bf16 %v8141_v24, %v7692_v42 }
 0x6b7   : > { %4896 = vrot.lane.b32.xlu0 %v7696_v33, %s6451_s25  ;;  %4894 = vrot.lane.b32.xlu1 %v7698_v20, %s6451_s25  ;;  %v6212_v27 = vcombine.high %v4697_v8, %v4699_v41  ;;  %v6211_v56 = vcombine.low %v4697_v8, %v4699_v41 }
 0x6b8   : > { %v6213_v59 = vcombine.low %v4698_v18, %v4700_v0  ;;  %v4693_v44 = vld [vmem:[#allocation3 + $0x20] sm:$0xff]  ;;  %v7720_v5 = vcombine.high %v4705_v31, %v4707_v43  ;;  %v4694_v47 = vld [vmem:[#allocation3 + $0x28] sm:$0xff]  ;;  %v6231_v39 = vcombine.low %v4705_v31, %v4707_v43  ;;  %v6233_v63 = vcombine.low %v4706_v28, %v4708_v62 }
 0x6b9   : > { %v4701_v3 = vmul.bf16 %v8138_v13, %v4693_v44  ;;  %v4702_v14 = vmul.bf16 %v8139_v49, %v4694_v47  ;;  %v4709_v21 = vmul.bf16 %v8140_v60, %v4693_v44  ;;  %v4710_v37 = vmul.bf16 %v8141_v24, %v4694_v47  ;;  %v6421_v31 = vld [vmem:[%s8015_s3 + $0x1b0] sm:$0xff]  }
 0x6ba   : > { %v6249_v46 = vcombine.high %v4706_v28, %v4708_v62  ;;  %v6255_v58 = vcombine.high %v4698_v18, %v4700_v0  ;;  %v6425_v62 = vld [vmem:[%s8015_s3 + $0x1d0] sm:$0xff]  }
 0x6bb   : > { %4892 = vrot.lane.b32.xlu1 %v6221_v4, %s6451_s25  ;;  %4771 = vrot.lane.b32.xlu0 %v6212_v27, %s6450_s24 }
 0x6bc   : > { %v4695_v55 = vld [vmem:[#allocation3 + $0x30] sm:$0xff]  ;;  %v4696_v36 = vld [vmem:[#allocation3 + $0x38] sm:$0xff] }
 0x6bd   : > { %v7718_v6 = vcombine.high %v4693_v44, %v4695_v55  ;;  %v6224_v23 = vcombine.low %v4693_v44, %v4695_v55  ;;  %v7726_v54 = vcombine.low %v4694_v47, %v4696_v36  ;;  %v4703_v15 = vmul.bf16 %v8138_v13, %v4695_v55  ;;  %v6424_v44 = vld [vmem:[%s8015_s3 + $0x1c8] sm:$0xff]  }
 0x6be   : > { %v4704_v40 = vmul.bf16 %v8139_v49, %v4696_v36  ;;  %v4711_v9 = vmul.bf16 %v8140_v60, %v4695_v55  ;;  %v4712_v32 = vmul.bf16 %v8141_v24, %v4696_v36  ;;  %v6262_v19 = vcombine.high %v4694_v47, %v4696_v36 }
 0x6bf   : > { %4773 = vrot.lane.b32.xlu1 %v6213_v59, %s6450_s24  ;;  %4769 = vrot.lane.b32.xlu0 %v6211_v56, %s6450_s24  ;;  %v6215_v7 = vcombine.high %v4701_v3, %v4703_v15  ;;  %v6214_v1 = vcombine.low %v4701_v3, %v4703_v15  ;;  %v6423_v15 = vld [vmem:[%s8015_s3 + $0x1b8] sm:$0xff]  }
 0x6c0   : > { %v6216_v34 = vcombine.low %v4702_v14, %v4704_v40  ;;  %v6235_v16 = vcombine.high %v4709_v21, %v4711_v9  ;;  %v6236_v45 = vcombine.low %v4710_v37, %v4712_v32  ;;  %v6234_v2 = vcombine.low %v4709_v21, %v4711_v9 }
 0x6c1   : > { %v6250_v53 = vcombine.high %v4710_v37, %v4712_v32  ;;  %v6256_v61 = vcombine.high %v4702_v14, %v4704_v40 }
 0x6c3   : > { %4900 = vrot.lane.b32.xlu1 %v7718_v6, %s6451_s25  ;;  %5017 = vrot.lane.b32.xlu0 %v7720_v5, %s6452_s26 }
 0x6c7   : > { %4898 = vrot.lane.b32.xlu1 %v6224_v23, %s6451_s25  ;;  %4902 = vrot.lane.b32.xlu0 %v7726_v54, %s6451_s25 }
 0x6cb   : > { %4777 = vrot.lane.b32.xlu1 %v6215_v7, %s6450_s24  ;;  %4779 = vrot.lane.b32.xlu0 %v6216_v34, %s6450_s24 }
 0x6cf   : > { %4775 = vrot.lane.b32.xlu1 %v6214_v1, %s6450_s24  ;;  %5015 = vrot.lane.b32.xlu0 %v6231_v39, %s6452_s26  ;;  %s7985_s24 = scalar_lea.vmem %s8017_s5, %s6272_s16 }
 0x6d3   : > { %5019 = vrot.lane.b32.xlu1 %v6233_v63, %s6452_s26  ;;  %5114 = vrot.lane.b32.xlu0 %v6212_v27, %s6453_s27 }
 0x6d7   : > { %5116 = vrot.lane.b32.xlu1 %v6213_v59, %s6453_s27  ;;  %5112 = vrot.lane.b32.xlu0 %v6211_v56, %s6453_s27  ;;  %v8142_v56 = vmov 0  }
 0x6db   : > { %5298 = vrot.lane.b32.xlu1 %v6233_v63, %s6454_s28  ;;  %5023 = vrot.lane.b32.xlu0 %v6235_v16, %s6452_s26 }
 0x6df   : > { %5025 = vrot.lane.b32.xlu1 %v6236_v45, %s6452_s26  ;;  %5021 = vrot.lane.b32.xlu0 %v6234_v2, %s6452_s26  ;;  %v6427_v2 = vld [vmem:[%s8015_s3 + $0x1e0] sm:$0xff]  }
 0x6e3   : > { %5296 = vrot.lane.b32.xlu1 %v7720_v5, %s6454_s28  ;;  %5300 = vrot.lane.b32.xlu0 %v6249_v46, %s6454_s28 }
 0x6e7   : > { %5120 = vrot.lane.b32.xlu1 %v6215_v7, %s6453_s27  ;;  %5401 = vrot.lane.b32.xlu0 %v6213_v59, %s6455_s29 }
 0x6eb   : > { %5118 = vrot.lane.b32.xlu1 %v6214_v1, %s6453_s27  ;;  %5122 = vrot.lane.b32.xlu0 %v6216_v34, %s6453_s27 }
 0x6ef   : > { %5403 = vrot.lane.b32.xlu1 %v6255_v58, %s6455_s29  ;;  %5399 = vrot.lane.b32.xlu0 %v6212_v27, %s6455_s29  ;;  %v6422_v27 = vld [vmem:[%s8015_s3 + $0x1c0] sm:$0xff]  }
 0x6f3   : > { %5510 = vrot.lane.b32.xlu1 %v7726_v54, %s6456_s30  ;;  %5512 = vrot.lane.b32.xlu0 %v6262_v19, %s6456_s30 }
 0x6f7   : > { %5304 = vrot.lane.b32.xlu1 %v6236_v45, %s6454_s28  ;;  %5306 = vrot.lane.b32.xlu0 %v6250_v53, %s6454_s28 }
 0x6fb   : > { %5302 = vrot.lane.b32.xlu1 %v6235_v16, %s6454_s28  ;;  %5407 = vrot.lane.b32.xlu0 %v6216_v34, %s6455_s29 }
 0x6ff   : > { %5409 = vrot.lane.b32.xlu1 %v6256_v61, %s6455_s29  ;;  %5405 = vrot.lane.b32.xlu0 %v6215_v7, %s6455_s29 }
 0x703   : > { %5508 = vrot.lane.b32.xlu1 %v7718_v6, %s6456_s30  ;;  %5506 = vrot.lane.b32.xlu0 %v6261_v48, %s6456_s30 }
 0x707   : > { %5504 = vrot.lane.b32.xlu1 %v7696_v33, %s6456_s30  ;;  %5601 = vrot.lane.b32.xlu0 %v6233_v63, %s6457_s6 }
 0x70b   : > { %5502 = vrot.lane.b32.xlu1 %v7698_v20, %s6456_s30  ;;  %5607 = vrot.lane.b32.xlu0 %v6236_v45, %s6457_s6 }
 0x70f   : > { %5609 = vrot.lane.b32.xlu1 %v6250_v53, %s6457_s6  ;;  %5605 = vrot.lane.b32.xlu0 %v6235_v16, %s6457_s6 }
 0x713   : > { %5603 = vrot.lane.b32.xlu1 %v6249_v46, %s6457_s6  ;;  %5599 = vrot.lane.b32.xlu0 %v7720_v5, %s6457_s6 }
 0x717   : > { %4715 = vperm.xlu1 %6315, %v6201_v17   ;;  %4720 = vperm.xlu0 %6314, %v6202_v51   ;;  %v6429_v17 = vld [vmem:[%s8015_s3 + $0x1e8] sm:$0xff]  }
 0x71b   : > { %4725 = vperm.xlu1 %6315, %v6203_v22   ;;  %4730 = vperm.xlu0 %6314, %v6204_v57  }
 0x729   : > { %v4897_v12 = vpop.permute.xlu0 %4896  ;;  %v4895_v52 = vpop.permute.xlu1 %4894 }
 0x72a   : > { %v4905_v13 = vsel %vm600_vm11, %v4895_v52, %v4897_v12  ;;  %v6430_v12 = vld [vmem:[%s8015_s3 + $0x1f8] sm:$0xff]  }
 0x72d   : > { %v4893_v25 = vpop.permute.xlu1 %4892  ;;  %v4772_v30 = vpop.permute.xlu0 %4771 }
 0x72e   : > { %v4904_v4 = vsel %vm600_vm11, %v4893_v25, %v4895_v52 }
 0x731   : > { %v4774_v35 = vpop.permute.xlu1 %4773  ;;  %v4770_v10 = vpop.permute.xlu0 %4769 }
 0x732   : > { %v4782_v59 = vsel %vm489_vm9, %v4772_v30, %v4774_v35  ;;  %v4781_v55 = vsel %vm489_vm9, %v4770_v10, %v4772_v30 }
 0x735   : > { %v4901_v26 = vpop.permute.xlu1 %4900  ;;  %v5018_v11 = vpop.permute.xlu0 %5017 }
 0x739   : > { %v4899_v50 = vpop.permute.xlu1 %4898  ;;  %v4903_v42 = vpop.permute.xlu0 %4902 }
 0x73a   : > { %v4906_v38 = vsel %vm600_vm11, %v4899_v50, %v4901_v26  ;;  %v4907_v29 = vsel %vm600_vm11, %v4901_v26, %v4903_v42 }
 0x73b   : > { %4930 = vmatprep.subr.bf16.mxu1 %v4907_v29 }
 0x73c   : > { %4931 = vmatpush1.bf16.msra.mxu1 %v4906_v38 }
 0x73d   : > { %v4778_v41 = vpop.permute.xlu1 %4777  ;;  %4932 = vmatprep.subr.bf16.mxu1 %v4905_v13  ;;  %v4780_v48 = vpop.permute.xlu0 %4779 }
 0x73e   : > { %v4784_v8 = vsel %vm489_vm9, %v4778_v41, %v4780_v48  ;;  %v6432_v48 = vld [vmem:[%s8015_s3 + $0x210] sm:$0xff]  }
 0x73f   : > { %4807 = vmatprep.subr.bf16.mxu0 %v4784_v8 }
 0x740   : > { %4933 = vmatpush1.bf16.msra.mxu1 %v4904_v4 }
 0x741   : > { %v4776_v49 = vpop.permute.xlu1 %4775  ;;  %v5016_v0 = vpop.permute.xlu0 %5015 }
 0x742   : > { %v4783_v18 = vsel %vm489_vm9, %v4776_v49, %v4778_v41  ;;  %v5027_v24 = vsel %vm709_vm13, %v5016_v0, %v5018_v11  ;;  %v6433_v49 = vld [vmem:[%s8015_s3 + $0x208] sm:$0xff]  }
 0x743   : > { %4808 = vmatpush1.bf16.msra.mxu0 %v4783_v18  ;;  %6227 = vmatmul.mubr.msk.bf16.vlgmr.msra.gmra.mxu1 %vm1539_vm4, %v6422_v27 }
 0x744   : > { %4809 = vmatprep.subr.bf16.mxu0 %v4782_v59  ;;  %4960 = vmatprep.mubr.bf16.mxu1 %v8142_v56 }
 0x745   : > { %v5020_v60 = vpop.permute.xlu1 %5019  ;;  %v5115_v43 = vpop.permute.xlu0 %5114 }
 0x746   : > { %v5028_v34 = vsel %vm709_vm13, %v5018_v11, %v5020_v60  ;;  %v6431_v11 = vld [vmem:[%s8015_s3 + $0x200] sm:$0xff]   ;;  %v6434_v60 = vld [vmem:[%s8015_s3 + $0x218] sm:$0xff]  }
 0x747   : > { %4810 = vmatpush1.bf16.msra.mxu0 %v4781_v55 }
 0x749   : > { %v5117_v5 = vpop.permute.xlu1 %5116  ;;  %v5113_v36 = vpop.permute.xlu0 %5112 }
 0x74a   : > { %6217 = vmatmul.mubr.msk.bf16.vlgmr.msra.gmra.mxu0 %vm1539_vm4, %v6421_v31 }
 0x74b   : > { %4837 = vmatprep.mubr.bf16.mxu0 %v8142_v56  ;;  %6228 = vmatmul.mubr.msk.bf16.gmra.mxu1 %vm1539_vm4, %v6424_v44 }
 0x74c   : > { %5170 = vmatprep.mubr.bf16.mxu1 %v8142_v56 }
 0x74d   : > { %v7825_v47 = vpop.permute.xlu1 %5298  ;;  %v5024_v23 = vpop.permute.xlu0 %5023 }
 0x751   : > { %v5026_v40 = vpop.permute.xlu1 %5025  ;;  %v5022_v3 = vpop.permute.xlu0 %5021 }
 0x752   : > { %v5029_v14 = vsel %vm709_vm13, %v5022_v3, %v5024_v23  ;;  %6218 = vmatmul.mubr.msk.bf16.gmra.mxu0 %vm1539_vm4, %v6423_v15  ;;  %v5030_v7 = vsel %vm709_vm13, %v5024_v23, %v5026_v40  ;;  %v6436_v40 = vld [vmem:[%s8015_s3 + $0x230] sm:$0xff]   ;;  %v6437_v3 = vld [vmem:[%s8015_s3 + $0x228] sm:$0xff]  }
 0x753   : > { %5053 = vmatprep.subr.bf16.mxu0 %v5030_v7  ;;  %5073 = vmatprep.mubr.bf16.mxu0 %v8142_v56 }
 0x754   : > { %5054 = vmatpush1.bf16.msra.mxu0 %v5029_v14  ;;  %v6438_v14 = vld [vmem:[%s8015_s3 + $0x238] sm:$0xff]  }
 0x755   : > { %v5297_v1 = vpop.permute.xlu1 %5296  ;;  %5055 = vmatprep.subr.bf16.mxu0 %v5028_v34  ;;  %v5301_v39 = vpop.permute.xlu0 %5300 }
 0x756   : > { %v5309_v52 = vsel %vm977_vm15, %v7825_v47, %v5301_v39  ;;  %v5308_v26 = vsel %vm977_vm15, %v5297_v1, %v7825_v47 }
 0x758   : > { %5056 = vmatpush1.bf16.msra.mxu0 %v5027_v24 }
 0x759   : > { %v5121_v28 = vpop.permute.xlu1 %5120  ;;  %5231 = vmatprep.subr.bf16.mxu0 %v7726_v54  ;;  %v5402_v63 = vpop.permute.xlu0 %5401  ;;  %v6426_v54 = vld [vmem:[%s8015_s3 + $0x1d8] sm:$0xff]  }
 0x75b   : > { %6237 = vmatmul.mubr.msk.bf16.vlgmr.msra.gmra.mxu0 %vm1539_vm4, %v6425_v62 }
 0x75c   : > { %5232 = vmatpush1.bf16.msra.mxu0 %v7718_v6  ;;  %5083 = vmatprep.mubr.bf16.mxu0 %v8142_v56  ;;  %v5125_v6 = vsel %vm801_vm14, %v5115_v43, %v5117_v5  ;;  %v6435_v5 = vld [vmem:[%s8015_s3 + $0x220] sm:$0xff]  }
 0x75d   : > { %v5119_v9 = vpop.permute.xlu1 %5118  ;;  %5233 = vmatprep.subr.bf16.mxu0 %v7696_v33  ;;  %v5123_v21 = vpop.permute.xlu0 %5122  ;;  %v5124_v33 = vsel %vm801_vm14, %v5113_v36, %v5115_v43 }
 0x75e   : > { %v5126_v16 = vsel %vm801_vm14, %v5119_v9, %v5121_v28  ;;  %v5127_v32 = vsel %vm801_vm14, %v5121_v28, %v5123_v21 }
 0x75f   : > { %5150 = vmatprep.subr.bf16.mxu1 %v5127_v32 }
 0x760   : > { %5151 = vmatpush1.bf16.msra.mxu1 %v5126_v16  ;;  %5234 = vmatpush1.bf16.msra.mxu0 %v7698_v20  ;;  %v6428_v20 = vld [vmem:[%s8015_s3 + $0x1f0] sm:$0xff]  }
 0x761   : > { %v5404_v37 = vpop.permute.xlu1 %5403  ;;  %5152 = vmatprep.subr.bf16.mxu1 %v5125_v6  ;;  %v5400_v45 = vpop.permute.xlu0 %5399 }
 0x762   : > { %v5412_v42 = vsel %vm1070_vm0, %v5402_v63, %v5404_v37  ;;  %v5411_v41 = vsel %vm1070_vm0, %v5400_v45, %v5402_v63 }
 0x763   : > { %6238 = vmatmul.mubr.msk.bf16.gmra.mxu0 %vm1539_vm4, %v6426_v54 }
 0x764   : > { %5153 = vmatpush1.bf16.msra.mxu1 %v5124_v33  ;;  %5251 = vmatprep.mubr.bf16.mxu0 %v8142_v56 }
 0x765   : > { %v5511_v46 = vpop.permute.xlu1 %5510  ;;  %v5513_v58 = vpop.permute.xlu0 %5512 }
 0x766   : > { %v5517_v50 = vsel %vm1163_vm1, %v5511_v46, %v5513_v58 }
 0x767   : > { %6241 = vmatmul.mubr.msk.bf16.vlgmr.msra.gmra.mxu1 %vm1539_vm4, %v6427_v2 }
 0x768   : > { %5180 = vmatprep.mubr.bf16.mxu1 %v8142_v56 }
 0x769   : > { %v5305_v19 = vpop.permute.xlu1 %5304  ;;  %v5307_v53 = vpop.permute.xlu0 %5306 }
 0x76a   : > { %v5311_v61 = vsel %vm977_vm15, %v5305_v19, %v5307_v53 }
 0x76b   : > { %6245 = vmatmul.mubr.msk.bf16.vlgmr.msra.gmra.mxu0 %vm1539_vm4, %v6428_v20  ;;  %5334 = vmatprep.subr.bf16.mxu1 %v5311_v61 }
 0x76c   : > { %5261 = vmatprep.mubr.bf16.mxu0 %v8142_v56 }
 0x76d   : > { %v5303_v51 = vpop.permute.xlu1 %5302  ;;  %v5408_v22 = vpop.permute.xlu0 %5407 }
 0x76e   : > { %v5310_v57 = vsel %vm977_vm15, %v5303_v51, %v5305_v19 }
 0x76f   : > { %6242 = vmatmul.mubr.msk.bf16.gmra.mxu1 %vm1539_vm4, %v6429_v17 }
 0x770   : > { %5335 = vmatpush1.bf16.msra.mxu1 %v5310_v57  ;;  %5354 = vmatprep.mubr.bf16.mxu1 %v8142_v56 }
 0x771   : > { %5336 = vmatprep.subr.bf16.mxu1 %v5309_v52  ;;  %v5410_v25 = vpop.permute.xlu1 %5409  ;;  %v5406_v30 = vpop.permute.xlu0 %5405 }
 0x772   : > { %v5413_v35 = vsel %vm1070_vm0, %v5406_v30, %v5408_v22  ;;  %v5414_v10 = vsel %vm1070_vm0, %v5408_v22, %v5410_v25 }
 0x773   : > { %6246 = vmatmul.mubr.msk.bf16.gmra.mxu0 %vm1539_vm4, %v6430_v12  ;;  %5437 = vmatprep.subr.bf16.mxu0 %v5414_v10 }
 0x774   : > { %5337 = vmatpush1.bf16.msra.mxu1 %v5308_v26  ;;  %5438 = vmatpush1.bf16.msra.mxu0 %v5413_v35 }
 0x775   : > { %5540 = vmatprep.subr.bf16.mxu1 %v5517_v50  ;;  %v5509_v38 = vpop.permute.xlu1 %5508  ;;  %5439 = vmatprep.subr.bf16.mxu0 %v5412_v42  ;;  %v5507_v29 = vpop.permute.xlu0 %5506 }
 0x776   : > { %v5516_v13 = vsel %vm1163_vm1, %v5509_v38, %v5511_v46  ;;  %5457 = vmatprep.mubr.bf16.mxu0 %v8142_v56 }
 0x777   : > { %6251 = vmatmul.mubr.msk.bf16.vlgmr.msra.gmra.mxu1 %vm1539_vm4, %v6431_v11 }
 0x778   : > { %5541 = vmatpush1.bf16.msra.mxu1 %v5516_v13  ;;  %5440 = vmatpush1.bf16.msra.mxu0 %v5411_v41 }
 0x779   : > { %v5505_v8 = vpop.permute.xlu1 %5504  ;;  %v5602_v4 = vpop.permute.xlu0 %5601  ;;  %5364 = vmatprep.mubr.bf16.mxu1 %v8142_v56 }
 0x77a   : > { %v5515_v27 = vsel %vm1163_vm1, %v5505_v8, %v5507_v29 }
 0x77b   : > { %6257 = vmatmul.mubr.msk.bf16.vlgmr.msra.gmra.mxu0 %vm1539_vm4, %v6432_v48  ;;  %5542 = vmatprep.subr.bf16.mxu1 %v5515_v27 }
 0x77c   : > { %5467 = vmatprep.mubr.bf16.mxu0 %v8142_v56 }
 0x77d   : > { %v5503_v0 = vpop.permute.xlu1 %5502  ;;  %v5608_v18 = vpop.permute.xlu0 %5607 }
 0x77e   : > { %v5514_v59 = vsel %vm1163_vm1, %v5503_v0, %v5505_v8 }
 0x77f   : > { %6252 = vmatmul.mubr.msk.bf16.gmra.mxu1 %vm1539_vm4, %v6433_v49 }
 0x780   : > { %5543 = vmatpush1.bf16.msra.mxu1 %v5514_v59  ;;  %5560 = vmatprep.mubr.bf16.mxu1 %v8142_v56 }
 0x781   : > { %v5610_v43 = vpop.permute.xlu1 %5609  ;;  %v5606_v55 = vpop.permute.xlu0 %5605 }
 0x782   : > { %v5613_v31 = vsel %vm1255_vm2, %v5606_v55, %v5608_v18  ;;  %v5614_v44 = vsel %vm1255_vm2, %v5608_v18, %v5610_v43 }
 0x783   : > { %6258 = vmatmul.mubr.msk.bf16.gmra.mxu0 %vm1539_vm4, %v6434_v60  ;;  %5637 = vmatprep.subr.bf16.mxu0 %v5614_v44 }
 0x784   : > { %5638 = vmatpush1.bf16.msra.mxu0 %v5613_v31  ;;  %5657 = vmatprep.mubr.bf16.mxu0 %v8142_v56 }
 0x785   : > { %v5604_v36 = vpop.permute.xlu1 %5603  ;;  %v5600_v47 = vpop.permute.xlu0 %5599 }
 0x786   : > { %v5611_v23 = vsel %vm1255_vm2, %v5600_v47, %v5602_v4  ;;  %v5612_v15 = vsel %vm1255_vm2, %v5602_v4, %v5604_v36 }
 0x787   : > { %6263 = vmatmul.mubr.msk.bf16.vlgmr.msra.gmra.mxu1 %vm1539_vm4, %v6435_v5  ;;  %5639 = vmatprep.subr.bf16.mxu0 %v5612_v15 }
 0x788   : > { %5640 = vmatpush1.bf16.msra.mxu0 %v5611_v23  ;;  %5570 = vmatprep.mubr.bf16.mxu1 %v8142_v56 }
 0x78b   : > { %6267 = vmatmul.mubr.msk.bf16.vlgmr.msra.gmra.mxu0 %vm1539_vm4, %v6436_v40 }
 0x78c   : > { %5667 = vmatprep.mubr.bf16.mxu0 %v8142_v56 }
 0x78f   : > { %6264 = vmatmul.mubr.msk.bf16.gmra.mxu1 %vm1539_vm4, %v6437_v3 }
 0x792   : > { %v4716_v29 = vpop.permute.xlu1 %4715  ;;  %v4721_v27 = vpop.permute.xlu0 %4720 }
 0x793   : > { %6268 = vmatmul.mubr.msk.bf16.gmra.mxu0 %vm1539_vm4, %v6438_v14 }
 0x796   : > { %v4726_v31 = vpop.permute.xlu1 %4725 }
 0x803   : > { %v4952_v7 = vpop.f32.mrf.mxu1 }
 0x805   : > { %v4954_v39 = vpop.f32.mrf.mxu1 }
 0x807   : > { %v4956_v28 = vpop.f32.mrf.mxu1 }
 0x809   : > { %v4958_v21 = vpop.f32.mrf.mxu1 }
 0x80a   : > { %v4829_v34 = vpop.f32.mrf.mxu0 }
 0x80b   : > { %v4962_v32 = vpop.f32.mrf.mxu1  ;;  %v4848_v48 = vadd.f32 %v4829_v34, %v4716_v29 }
 0x80c   : > { %v4831_v1 = vpop.f32.mrf.mxu0 }
 0x80d   : > { %v7934_v6 = vpop.f32.mrf.mxu1  ;;  %v4849_v49 = vadd.f32 %v4831_v1, %v4716_v29  ;;  %v4971_v59 = vadd.f32 %v4952_v7, %v4848_v48  ;;  %v4731_v29 = vpop.permute.xlu0 %4730 }
 0x80e   : > { %v4833_v24 = vpop.f32.mrf.mxu0 }
 0x80f   : > { %v7936_v33 = vpop.f32.mrf.mxu1  ;;  %v4850_v60 = vadd.f32 %v4833_v24, %v4721_v27  ;;  %v4972_v44 = vadd.f32 %v4954_v39, %v4849_v49 }
 0x810   : > { %v4835_v62 = vpop.f32.mrf.mxu0 }
 0x811   : > { %v7940_v58 = vpop.f32.mrf.mxu1  ;;  %v4851_v5 = vadd.f32 %v4835_v62, %v4721_v27  ;;  %v4973_v40 = vadd.f32 %v4956_v28, %v4850_v60 }
 0x812   : > { %v4839_v63 = vpop.f32.mrf.mxu0 }
 0x813   : > { %v4852_v47 = vadd.f32 %v4839_v63, %v4726_v31  ;;  %v4974_v7 = vadd.f32 %v4958_v21, %v4851_v5 }
 0x814   : > { %v4841_v9 = vpop.f32.mrf.mxu0 }
 0x815   : > { %v4853_v34 = vadd.f32 %v4841_v9, %v4726_v31 }
 0x816   : > { %v7930_v16 = vpop.f32.mrf.mxu0 }
 0x817   : > { %v4854_v39 = vadd.f32 %v7930_v16, %v4731_v29  ;;  %v4976_v9 = vadd.f32 %v7934_v6, %v4853_v34  ;;  %v8149_v34 = vld [vmem:[#allocation17_spill] sm:$0xff] }
 0x818   : > { %v7932_v56 = vpop.f32.mrf.mxu0 }
 0x81b   : > { %v5075_v54 = vpop.f32.mrf.mxu0 }
 0x81c   : > { %v5094_v36 = vadd.f32 %v5075_v54, %v4971_v59  ;;  %v4977_v59 = vadd.f32 %v7936_v33, %v4854_v39 }
 0x81d   : > { %v5077_v37 = vpop.f32.mrf.mxu0 }
 0x81e   : > { %v5095_v3 = vadd.f32 %v5077_v37, %v4972_v44 }
 0x81f   : > { %v5079_v45 = vpop.f32.mrf.mxu0 }
 0x820   : > { %v5096_v24 = vadd.f32 %v5079_v45, %v4973_v40 }
 0x821   : > { %v5081_v2 = vpop.f32.mrf.mxu0 }
 0x822   : > { %v5097_v54 = vadd.f32 %v5081_v2, %v4974_v7 }
 0x823   : > { %v7938_v46 = vpop.f32.mrf.mxu0 }
 0x825   : > { %v7942_v20 = vpop.f32.mrf.mxu0 }
 0x826   : > { %v5099_v2 = vadd.f32 %v7942_v20, %v4976_v9 }
 0x827   : > { %v7944_v19 = vpop.f32.mrf.mxu0  ;;  %v5172_v53 = vpop.f32.mrf.mxu1 }
 0x828   : > { %v5191_v14 = vadd.f32 %v5172_v53, %v5094_v36  ;;  %v4855_v53 = vadd.f32 %v7932_v56, %v4731_v29 }
 0x829   : > { %v7946_v61 = vpop.f32.mrf.mxu0  ;;  %v5174_v17 = vpop.f32.mrf.mxu1 }
 0x82a   : > { %v5192_v48 = vadd.f32 %v5174_v17, %v5095_v3 }
 0x82b   : > { %v5176_v51 = vpop.f32.mrf.mxu1  ;;  %v5253_v22 = vpop.f32.mrf.mxu0 }
 0x82c   : > { %v5193_v27 = vadd.f32 %v5176_v51, %v5096_v24 }
 0x82d   : > { %v5178_v57 = vpop.f32.mrf.mxu1  ;;  %v5255_v12 = vpop.f32.mrf.mxu0 }
 0x82e   : > { %v5273_v28 = vadd.f32 %v5255_v12, %v5192_v48  ;;  %v5194_v17 = vadd.f32 %v5178_v57, %v5097_v54 }
 0x82f   : > { %v5182_v52 = vpop.f32.mrf.mxu1  ;;  %v5257_v25 = vpop.f32.mrf.mxu0 }
 0x831   : > { %v7948_v30 = vpop.f32.mrf.mxu1  ;;  %v5259_v35 = vpop.f32.mrf.mxu0 }
 0x832   : > { %v5196_v57 = vadd.f32 %v7948_v30, %v5099_v2 }
 0x833   : > { %v7950_v10 = vpop.f32.mrf.mxu1  ;;  %v7952_v26 = vpop.f32.mrf.mxu0 }
 0x835   : > { %v7954_v11 = vpop.f32.mrf.mxu1  ;;  %v7956_v50 = vpop.f32.mrf.mxu0 }
 0x836   : > { %8143 = vst [vmem:[#allocation11_spill] sm:$0xff] %v7954_v11  ;;  %v4975_v11 = vadd.f32 %v4962_v32, %v4852_v47  ;;  %v5274_v32 = vadd.f32 %v5257_v25, %v5193_v27 }
 0x837   : > { %v7958_v42 = vpop.f32.mrf.mxu0  ;;  %v5356_v38 = vpop.f32.mrf.mxu1 }
 0x838   : > { %8144 = vst [vmem:[#allocation13_spill] sm:$0xff] %v7958_v42  ;;  %v5272_v42 = vadd.f32 %v5253_v22, %v5191_v14  ;;  %v5098_v49 = vadd.f32 %v7938_v46, %v4975_v11  ;;  %v4978_v46 = vadd.f32 %v7940_v58, %v4855_v53  ;;  %v5100_v11 = vadd.f32 %v7944_v19, %v4977_v59 }
 0x839   : > { %v7960_v13 = vpop.f32.mrf.mxu0  ;;  %v5358_v41 = vpop.f32.mrf.mxu1 }
 0x83a   : > { %8145 = vst [vmem:[#allocation12_spill] sm:$0xff] %v7960_v13  ;;  %v5375_v37 = vadd.f32 %v5356_v38, %v5272_v42  ;;  %v5376_v22 = vadd.f32 %v5358_v41, %v5273_v28  ;;  %v5195_v51 = vadd.f32 %v5182_v52, %v5098_v49  ;;  %v5275_v38 = vadd.f32 %v5259_v35, %v5194_v17 }
 0x83b   : > { %v5360_v8 = vpop.f32.mrf.mxu1  ;;  %v5459_v4 = vpop.f32.mrf.mxu0  ;;  %v5101_v35 = vadd.f32 %v7946_v61, %v4978_v46 }
 0x83c   : > { %v5478_v16 = vadd.f32 %v5459_v4, %v5375_v37  ;;  %v5377_v6 = vadd.f32 %v5360_v8, %v5274_v32  ;;  %v5276_v25 = vadd.f32 %v7952_v26, %v5195_v51  ;;  %v5197_v8 = vadd.f32 %v7950_v10, %v5100_v11  ;;  %v8152_v32 = vld [vmem:[#allocation19_spill] sm:$0xff]  ;;  %v8153_v51 = vld [vmem:[#allocation8_spill] sm:$0xff] }
 0x83d   : > { %v5362_v0 = vpop.f32.mrf.mxu1  ;;  %v5461_v18 = vpop.f32.mrf.mxu0  ;;  %v8147_v36 = vld [vmem:[#allocation11_spill] sm:$0xff]  ;;  %v8155_v11 = vld [vmem:[#allocation20_spill] sm:$0xff] }
 0x83e   : > { %v5479_v60 = vadd.f32 %v5461_v18, %v5376_v22  ;;  %v5378_v4 = vadd.f32 %v5362_v0, %v5275_v38  ;;  %v5277_v18 = vadd.f32 %v7956_v50, %v5196_v57  ;;  %v8146_v0 = vld [vmem:[#allocation16_spill] sm:$0xff]  ;;  %v5198_v61 = vadd.f32 %v8147_v36, %v5101_v35 }
 0x83f   : > { %v5366_v43 = vpop.f32.mrf.mxu1  ;;  %v5463_v55 = vpop.f32.mrf.mxu0  ;;  %v8148_v10 = vld [vmem:[#allocation13_spill] sm:$0xff] }
 0x840   : > { %v5480_v20 = vadd.f32 %v5463_v55, %v5377_v6  ;;  %v5379_v44 = vadd.f32 %v5366_v43, %v5276_v25  ;;  %v5278_v47 = vadd.f32 %v8148_v10, %v5197_v8 }
 0x841   : > { %v7962_v23 = vpop.f32.mrf.mxu1  ;;  %v5465_v15 = vpop.f32.mrf.mxu0  ;;  %v8150_v7 = vld [vmem:[#allocation12_spill] sm:$0xff] }
 0x842   : > { %v5481_v30 = vadd.f32 %v5465_v15, %v5378_v4  ;;  %v5380_v50 = vadd.f32 %v7962_v23, %v5277_v18  ;;  %v5279_v24 = vadd.f32 %v8150_v7, %v5198_v61  ;;  %v8151_v23 = vld [vmem:[#allocation18_spill] sm:$0xff] }
 0x843   : > { %v7964_v13 = vpop.f32.mrf.mxu1  ;;  %v5469_v1 = vpop.f32.mrf.mxu0 }
 0x844   : > { %v5482_v3 = vadd.f32 %v5469_v1, %v5379_v44  ;;  %v5381_v48 = vadd.f32 %v7964_v13, %v5278_v47 }
 0x845   : > { %v7967_v62 = vpop.f32.mrf.mxu1  ;;  %v5471_v63 = vpop.f32.mrf.mxu0 }
 0x846   : > { %v5483_v27 = vadd.f32 %v5471_v63, %v5380_v50  ;;  %v5382_v1 = vadd.f32 %v7967_v62, %v5279_v24 }
 0x847   : > { %v5473_v21 = vpop.f32.mrf.mxu0  ;;  %v5562_v45 = vpop.f32.mrf.mxu1 }
 0x848   : > { %v5581_v56 = vadd.f32 %v5562_v45, %v5478_v16  ;;  %v5484_v45 = vadd.f32 %v5473_v21, %v5381_v48  ;;  %v8154_v21 = vld [vmem:[#allocation9_spill] sm:$0xff] }
 0x849   : > { %v5475_v12 = vpop.f32.mrf.mxu0  ;;  %v5564_v42 = vpop.f32.mrf.mxu1 }
 0x84a   : > { %v5582_v52 = vadd.f32 %v5564_v42, %v5479_v60  ;;  %v5485_v59 = vadd.f32 %v5475_v12, %v5382_v1 }
 0x84b   : > { %v5566_v41 = vpop.f32.mrf.mxu1  ;;  %v5659_v33 = vpop.f32.mrf.mxu0 }
 0x84c   : > { %v5678_v31 = vadd.f32 %v5659_v33, %v5581_v56  ;;  %v5583_v26 = vadd.f32 %v5566_v41, %v5480_v20  ;;  %v8156_v41 = vld [vmem:[#allocation10_spill] sm:$0xff] }
 0x84d   : > { %v5568_v58 = vpop.f32.mrf.mxu1  ;;  %v5661_v19 = vpop.f32.mrf.mxu0 }
 0x84e   : > { %v5686_v55 = vadd.f32 %v5678_v31, %v8146_v0  ;;  %v5679_v5 = vadd.f32 %v5661_v19, %v5582_v52  ;;  %v5584_v14 = vadd.f32 %v5568_v58, %v5481_v30 }
 0x84f   : > { %v5572_v43 = vpop.f32.mrf.mxu1  ;;  %v5663_v40 = vpop.f32.mrf.mxu0 }
 0x850   : > { %5694 = vst [vmem:[%s7985_s24] sm:$0xff] %v5686_v55  ;;  %v5687_v29 = vadd.f32 %v5679_v5, %v8149_v34  ;;  %v5680_v15 = vadd.f32 %v5663_v40, %v5583_v26  ;;  %v5585_v28 = vadd.f32 %v5572_v43, %v5482_v3 }
 0x851   : > { %v5574_v39 = vpop.f32.mrf.mxu1  ;;  %v5665_v54 = vpop.f32.mrf.mxu0 }
 0x852   : > { %5695 = vst [vmem:[%s7985_s24 + $0x8] sm:$0xff] %v5687_v29  ;;  %v5688_v37 = vadd.f32 %v5680_v15, %v8151_v23  ;;  %v5681_v9 = vadd.f32 %v5665_v54, %v5584_v14  ;;  %v5586_v17 = vadd.f32 %v5574_v39, %v5483_v27 }
 0x853   : > { %v5576_v53 = vpop.f32.mrf.mxu1  ;;  %v5669_v49 = vpop.f32.mrf.mxu0 }
 0x854   : > { %5696 = vst [vmem:[%s7985_s24 + $0x10] sm:$0xff] %v5688_v37  ;;  %v5689_v13 = vadd.f32 %v5681_v9, %v8152_v32  ;;  %v5682_v22 = vadd.f32 %v5669_v49, %v5585_v28  ;;  %v5587_v2 = vadd.f32 %v5576_v53, %v5484_v45 }
 0x855   : > { %v5578_v16 = vpop.f32.mrf.mxu1  ;;  %v5671_v63 = vpop.f32.mrf.mxu0 }
 0x856   : > { %5697 = vst [vmem:[%s7985_s24 + $0x18] sm:$0xff] %v5689_v13  ;;  %v5690_v42 = vadd.f32 %v5682_v22, %v8153_v51  ;;  %v5683_v62 = vadd.f32 %v5671_v63, %v5586_v17  ;;  %v5588_v6 = vadd.f32 %v5578_v16, %v5485_v59 }
 0x857   : > { %v5673_v38 = vpop.f32.mrf.mxu0 }
 0x858   : > { %5698 = vst [vmem:[%s7985_s24 + $0x20] sm:$0xff] %v5690_v42  ;;  %v5691_v60 = vadd.f32 %v5683_v62, %v8154_v21  ;;  %v5684_v56 = vadd.f32 %v5673_v38, %v5587_v2 }
 0x859   : > { %v5675_v46 = vpop.f32.mrf.mxu0 }
 0x85a   : > { %5699 = vst [vmem:[%s7985_s24 + $0x28] sm:$0xff] %v5691_v60  ;;  %v5692_v57 = vadd.f32 %v5684_v56, %v8155_v11  ;;  %v5685_v25 = vadd.f32 %v5675_v46, %v5588_v6 }
 0x85c   : > { %5700 = vst [vmem:[%s7985_s24 + $0x30] sm:$0xff] %v5692_v57  ;;  %v5693_v12 = vadd.f32 %v5685_v25, %v8156_v41 }
 0x85e   : > { %5701 = vst [vmem:[%s7985_s24 + $0x38] sm:$0xff] %v5693_v12 }
 0x85f PF: > { %s15_s18 = sadd.s32 1, %s6445_s18  }
 0x860   : > { %p12_p4 = scmp.ge.s32.totalorder %s15_s18, 4  }
 0x862   :  { %14 = sbr.rel (!%p12_p4) target bundleno = 1 (0x1), region = 116 }

</bundles_post_ra>
